<compile_context>
chip_gen: v5e
topology: v5e:2x2
jax: 0.10.0
libtpu: 0.0.40
codegen_flags: <defaults>
</compile_context>

<pallas_src>
import functools

import jax
import jax.numpy as jnp
from jax.experimental import pallas as pl
from jax.experimental.pallas import tpu as pltpu


def _pixel_attention_kernel(x_ref, p_ref, wx_ref, wp_ref, b_ref, o_ref, *,
                            KS, WP, OUTW):
    """All refs are lane-dense VMEM slabs.

    x_ref, p_ref  : (BC, FLAT)   reflect-padded images, row-major, row stride WP
    wx_ref, wp_ref: (BC, KS*KS)  per-row tap weights (x-half / pattn1-half)
    b_ref         : (BC, 1)      per-row bias
    o_ref         : (BC, OUTW)   sigmoid(conv) in padded-flat coordinates
    """
    acc = jnp.zeros(o_ref.shape, jnp.float32)
    # Fully unrolled 7x7 depthwise shift-and-accumulate on the VPU.  Each tap is
    # one lane-dense (BC, OUTW) window load per input; the shift is the load
    # offset, the per-row weight column (BC, 1) broadcasts along lanes.
    for kh in range(KS):
        for kw in range(KS):
            t = kh * KS + kw                 # tap index into the weight columns
            s = kh * WP + kw                 # flat shift in padded row-major coords
            acc = (acc
                   + wx_ref[:, t:t + 1] * x_ref[:, s:s + OUTW]
                   + wp_ref[:, t:t + 1] * p_ref[:, s:s + OUTW])
    z = acc + b_ref[...]                     # (BC, 1) bias broadcast along lanes
    # sigmoid(z) = 1 / (1 + exp(-z)); exp + approx reciprocal both run on the EUP.
    o_ref[...] = pl.reciprocal(1.0 + jnp.exp(-z), approx=True)


def pixel_attention(x, pattn1, weight, bias):
    """x, pattn1: (B, C, H, W); weight: (C, 2, KS, KS) (PyTorch grouped-conv layout:
    weight[:, 0] multiplies x, weight[:, 1] multiplies pattn1); bias: (C,)."""
    B, C, H, W = x.shape
    KS = weight.shape[-1]
    P = KS // 2
    Hp, Wp = H + 2 * P, W + 2 * P
    BC = B * C

    # Lane-dense widths (multiples of 128 -> full, unmasked vregs / vst).
    OUTW = pl.cdiv(H * Wp, 128) * 128                        # 384 for H=16, Wp=22
    FLAT = pl.cdiv((KS - 1) * (Wp + 1) + OUTW, 128) * 128    # 640: max shift + OUTW

    def pad_flatten(a):
        # PyTorch 'reflect' padding + flatten rows into the lane axis.  Pure
        # layout plumbing in the wrapper (XLA); keeps masked partial stores and
        # scratch round trips out of the kernel.
        ap = jnp.pad(a.reshape(BC, H, W), ((0, 0), (P, P), (P, P)), mode="reflect")
        af = ap.reshape(BC, Hp * Wp)
        return jnp.pad(af, ((0, 0), (0, FLAT - Hp * Wp)))

    xflat = pad_flatten(x.astype(jnp.float32))
    pflat = pad_flatten(pattn1.astype(jnp.float32))

    # Per-row (= per (b, c) pair, row index r = b*C + c) weight columns and bias.
    wx_cols = jnp.tile(weight[:, 0].reshape(C, KS * KS), (B, 1)).astype(jnp.float32)
    wp_cols = jnp.tile(weight[:, 1].reshape(C, KS * KS), (B, 1)).astype(jnp.float32)
    b_col = jnp.tile(bias, (B,)).reshape(BC, 1).astype(jnp.float32)

    kernel = functools.partial(_pixel_attention_kernel, KS=KS, WP=Wp, OUTW=OUTW)
    out_flat = pl.pallas_call(
        kernel,
        out_shape=jax.ShapeDtypeStruct((BC, OUTW), jnp.float32),
        in_specs=[pl.BlockSpec(memory_space=pltpu.MemorySpace.VMEM)] * 5,
        out_specs=pl.BlockSpec(memory_space=pltpu.MemorySpace.VMEM),
    )(xflat, pflat, wx_cols, wp_cols, b_col)

    # Undo the padded-flat layout: output pixel (h, w) lives at lane h*Wp + w.
    out = out_flat[:, :H * Wp].reshape(BC, H, Wp)[:, :, :W]
    return out.reshape(B, C, H, W)


def pixel_attention_reference(x, pattn1, weight, bias):
    """Pure-JAX reference of the PyTorch module (same math, same layout)."""
    KS = weight.shape[-1]
    P = KS // 2
    H, W = x.shape[-2:]
    xp = jnp.pad(x, ((0, 0), (0, 0), (P, P), (P, P)), mode="reflect")
    pp = jnp.pad(pattn1, ((0, 0), (0, 0), (P, P), (P, P)), mode="reflect")
    acc = jnp.broadcast_to(bias[None, :, None, None], x.shape).astype(jnp.float32)
    for kh in range(KS):
        for kw in range(KS):
            acc = (acc
                   + weight[None, :, 0, kh, kw, None, None] * xp[:, :, kh:kh + H, kw:kw + W]
                   + weight[None, :, 1, kh, kw, None, None] * pp[:, :, kh:kh + H, kw:kw + W])
    return jax.nn.sigmoid(acc)


if __name__ == "__main__":
    B, C, H, W, KS = 2, 4, 16, 16, 7          # dim = 4

    key = jax.random.PRNGKey(0)
    kx, kp, kw_, kb = jax.random.split(key, 4)
    x = jax.random.normal(kx, (B, C, H, W), jnp.float32)
    pattn1 = jax.random.normal(kp, (B, C, H, W), jnp.float32)

    # Conv2d(2C, C, 7, groups=C) parameters: weight (C, 2, 7, 7), bias (C,)
    bound = 1.0 / float((2 * KS * KS) ** 0.5)
    weight = jax.random.uniform(kw_, (C, 2, KS, KS), jnp.float32, -bound, bound)
    bias = jax.random.uniform(kb, (C,), jnp.float32, -bound, bound)

    out = jax.jit(pixel_attention)(x, pattn1, weight, bias)
    out = jax.block_until_ready(out)

    ref = pixel_attention_reference(x, pattn1, weight, bias)
    assert out.shape == (B, C, H, W), out.shape
    max_err = float(jnp.max(jnp.abs(out - ref)))
    assert max_err < 5e-3, f"max abs error {max_err}"

    print("KERNEL_OK")
</pallas_src>

<mosaic_0001>
module attributes {stable_mosaic.version = 11 : i64} {
  func.func @_pixel_attention_kernel(%arg0: memref<8x640xf32, #tpu.memory_space<vmem>>, %arg1: memref<8x640xf32, #tpu.memory_space<vmem>>, %arg2: memref<8x49xf32, #tpu.memory_space<vmem>>, %arg3: memref<8x49xf32, #tpu.memory_space<vmem>>, %arg4: memref<8x1xf32, #tpu.memory_space<vmem>>, %arg5: memref<8x384xf32, #tpu.memory_space<vmem>>) attributes {dimension_semantics = [], scalar_prefetch = 0 : i64, scratch_operands = 0 : i64, tpu.core_type = #tpu.core_type<tc>} {
    %cst = arith.constant 0.000000e+00 : f32
    %0 = vector.broadcast %cst : f32 to vector<8x384xf32>
    %c0 = arith.constant 0 : index
    %c0_0 = arith.constant 0 : index
    %1 = vector.load %arg2[%c0, %c0_0] : memref<8x49xf32, #tpu.memory_space<vmem>>, vector<8x1xf32>
    %c0_1 = arith.constant 0 : index
    %c0_2 = arith.constant 0 : index
    %2 = vector.load %arg0[%c0_1, %c0_2] : memref<8x640xf32, #tpu.memory_space<vmem>>, vector<8x384xf32>
    %3 = vector.broadcast %1 : vector<8x1xf32> to vector<8x384xf32>
    %4 = arith.mulf %3, %2 : vector<8x384xf32>
    %5 = arith.addf %0, %4 : vector<8x384xf32>
    %c0_3 = arith.constant 0 : index
    %c0_4 = arith.constant 0 : index
    %6 = vector.load %arg3[%c0_3, %c0_4] : memref<8x49xf32, #tpu.memory_space<vmem>>, vector<8x1xf32>
    %c0_5 = arith.constant 0 : index
    %c0_6 = arith.constant 0 : index
    %7 = vector.load %arg1[%c0_5, %c0_6] : memref<8x640xf32, #tpu.memory_space<vmem>>, vector<8x384xf32>
    %8 = vector.broadcast %6 : vector<8x1xf32> to vector<8x384xf32>
    %9 = arith.mulf %8, %7 : vector<8x384xf32>
    %10 = arith.addf %5, %9 : vector<8x384xf32>
    %c0_7 = arith.constant 0 : index
    %c1 = arith.constant 1 : index
    %11 = vector.load %arg2[%c0_7, %c1] : memref<8x49xf32, #tpu.memory_space<vmem>>, vector<8x1xf32>
    %c0_8 = arith.constant 0 : index
    %c1_9 = arith.constant 1 : index
    %12 = vector.load %arg0[%c0_8, %c1_9] : memref<8x640xf32, #tpu.memory_space<vmem>>, vector<8x384xf32>
    %13 = vector.broadcast %11 : vector<8x1xf32> to vector<8x384xf32>
    %14 = arith.mulf %13, %12 : vector<8x384xf32>
    %15 = arith.addf %10, %14 : vector<8x384xf32>
    %c0_10 = arith.constant 0 : index
    %c1_11 = arith.constant 1 : index
    %16 = vector.load %arg3[%c0_10, %c1_11] : memref<8x49xf32, #tpu.memory_space<vmem>>, vector<8x1xf32>
    %c0_12 = arith.constant 0 : index
    %c1_13 = arith.constant 1 : index
    %17 = vector.load %arg1[%c0_12, %c1_13] : memref<8x640xf32, #tpu.memory_space<vmem>>, vector<8x384xf32>
    %18 = vector.broadcast %16 : vector<8x1xf32> to vector<8x384xf32>
    %19 = arith.mulf %18, %17 : vector<8x384xf32>
    %20 = arith.addf %15, %19 : vector<8x384xf32>
    %c0_14 = arith.constant 0 : index
    %c2 = arith.constant 2 : index
    %21 = vector.load %arg2[%c0_14, %c2] : memref<8x49xf32, #tpu.memory_space<vmem>>, vector<8x1xf32>
    %c0_15 = arith.constant 0 : index
    %c2_16 = arith.constant 2 : index
    %22 = vector.load %arg0[%c0_15, %c2_16] : memref<8x640xf32, #tpu.memory_space<vmem>>, vector<8x384xf32>
    %23 = vector.broadcast %21 : vector<8x1xf32> to vector<8x384xf32>
    %24 = arith.mulf %23, %22 : vector<8x384xf32>
    %25 = arith.addf %20, %24 : vector<8x384xf32>
    %c0_17 = arith.constant 0 : index
    %c2_18 = arith.constant 2 : index
    %26 = vector.load %arg3[%c0_17, %c2_18] : memref<8x49xf32, #tpu.memory_space<vmem>>, vector<8x1xf32>
    %c0_19 = arith.constant 0 : index
    %c2_20 = arith.constant 2 : index
    %27 = vector.load %arg1[%c0_19, %c2_20] : memref<8x640xf32, #tpu.memory_space<vmem>>, vector<8x384xf32>
    %28 = vector.broadcast %26 : vector<8x1xf32> to vector<8x384xf32>
    %29 = arith.mulf %28, %27 : vector<8x384xf32>
    %30 = arith.addf %25, %29 : vector<8x384xf32>
    %c0_21 = arith.constant 0 : index
    %c3 = arith.constant 3 : index
    %31 = vector.load %arg2[%c0_21, %c3] : memref<8x49xf32, #tpu.memory_space<vmem>>, vector<8x1xf32>
    %c0_22 = arith.constant 0 : index
    %c3_23 = arith.constant 3 : index
    %32 = vector.load %arg0[%c0_22, %c3_23] : memref<8x640xf32, #tpu.memory_space<vmem>>, vector<8x384xf32>
    %33 = vector.broadcast %31 : vector<8x1xf32> to vector<8x384xf32>
    %34 = arith.mulf %33, %32 : vector<8x384xf32>
    %35 = arith.addf %30, %34 : vector<8x384xf32>
    %c0_24 = arith.constant 0 : index
    %c3_25 = arith.constant 3 : index
    %36 = vector.load %arg3[%c0_24, %c3_25] : memref<8x49xf32, #tpu.memory_space<vmem>>, vector<8x1xf32>
    %c0_26 = arith.constant 0 : index
    %c3_27 = arith.constant 3 : index
    %37 = vector.load %arg1[%c0_26, %c3_27] : memref<8x640xf32, #tpu.memory_space<vmem>>, vector<8x384xf32>
    %38 = vector.broadcast %36 : vector<8x1xf32> to vector<8x384xf32>
    %39 = arith.mulf %38, %37 : vector<8x384xf32>
    %40 = arith.addf %35, %39 : vector<8x384xf32>
    %c0_28 = arith.constant 0 : index
    %c4 = arith.constant 4 : index
    %41 = vector.load %arg2[%c0_28, %c4] : memref<8x49xf32, #tpu.memory_space<vmem>>, vector<8x1xf32>
    %c0_29 = arith.constant 0 : index
    %c4_30 = arith.constant 4 : index
    %42 = vector.load %arg0[%c0_29, %c4_30] : memref<8x640xf32, #tpu.memory_space<vmem>>, vector<8x384xf32>
    %43 = vector.broadcast %41 : vector<8x1xf32> to vector<8x384xf32>
    %44 = arith.mulf %43, %42 : vector<8x384xf32>
    %45 = arith.addf %40, %44 : vector<8x384xf32>
    %c0_31 = arith.constant 0 : index
    %c4_32 = arith.constant 4 : index
    %46 = vector.load %arg3[%c0_31, %c4_32] : memref<8x49xf32, #tpu.memory_space<vmem>>, vector<8x1xf32>
    %c0_33 = arith.constant 0 : index
    %c4_34 = arith.constant 4 : index
    %47 = vector.load %arg1[%c0_33, %c4_34] : memref<8x640xf32, #tpu.memory_space<vmem>>, vector<8x384xf32>
    %48 = vector.broadcast %46 : vector<8x1xf32> to vector<8x384xf32>
    %49 = arith.mulf %48, %47 : vector<8x384xf32>
    %50 = arith.addf %45, %49 : vector<8x384xf32>
    %c0_35 = arith.constant 0 : index
    %c5 = arith.constant 5 : index
    %51 = vector.load %arg2[%c0_35, %c5] : memref<8x49xf32, #tpu.memory_space<vmem>>, vector<8x1xf32>
    %c0_36 = arith.constant 0 : index
    %c5_37 = arith.constant 5 : index
    %52 = vector.load %arg0[%c0_36, %c5_37] : memref<8x640xf32, #tpu.memory_space<vmem>>, vector<8x384xf32>
    %53 = vector.broadcast %51 : vector<8x1xf32> to vector<8x384xf32>
    %54 = arith.mulf %53, %52 : vector<8x384xf32>
    %55 = arith.addf %50, %54 : vector<8x384xf32>
    %c0_38 = arith.constant 0 : index
    %c5_39 = arith.constant 5 : index
    %56 = vector.load %arg3[%c0_38, %c5_39] : memref<8x49xf32, #tpu.memory_space<vmem>>, vector<8x1xf32>
    %c0_40 = arith.constant 0 : index
    %c5_41 = arith.constant 5 : index
    %57 = vector.load %arg1[%c0_40, %c5_41] : memref<8x640xf32, #tpu.memory_space<vmem>>, vector<8x384xf32>
    %58 = vector.broadcast %56 : vector<8x1xf32> to vector<8x384xf32>
    %59 = arith.mulf %58, %57 : vector<8x384xf32>
    %60 = arith.addf %55, %59 : vector<8x384xf32>
    %c0_42 = arith.constant 0 : index
    %c6 = arith.constant 6 : index
    %61 = vector.load %arg2[%c0_42, %c6] : memref<8x49xf32, #tpu.memory_space<vmem>>, vector<8x1xf32>
    %c0_43 = arith.constant 0 : index
    %c6_44 = arith.constant 6 : index
    %62 = vector.load %arg0[%c0_43, %c6_44] : memref<8x640xf32, #tpu.memory_space<vmem>>, vector<8x384xf32>
    %63 = vector.broadcast %61 : vector<8x1xf32> to vector<8x384xf32>
    %64 = arith.mulf %63, %62 : vector<8x384xf32>
    %65 = arith.addf %60, %64 : vector<8x384xf32>
    %c0_45 = arith.constant 0 : index
    %c6_46 = arith.constant 6 : index
    %66 = vector.load %arg3[%c0_45, %c6_46] : memref<8x49xf32, #tpu.memory_space<vmem>>, vector<8x1xf32>
    %c0_47 = arith.constant 0 : index
    %c6_48 = arith.constant 6 : index
    %67 = vector.load %arg1[%c0_47, %c6_48] : memref<8x640xf32, #tpu.memory_space<vmem>>, vector<8x384xf32>
    %68 = vector.broadcast %66 : vector<8x1xf32> to vector<8x384xf32>
    %69 = arith.mulf %68, %67 : vector<8x384xf32>
    %70 = arith.addf %65, %69 : vector<8x384xf32>
    %c0_49 = arith.constant 0 : index
    %c7 = arith.constant 7 : index
    %71 = vector.load %arg2[%c0_49, %c7] : memref<8x49xf32, #tpu.memory_space<vmem>>, vector<8x1xf32>
    %c0_50 = arith.constant 0 : index
    %c22 = arith.constant 22 : index
    %72 = vector.load %arg0[%c0_50, %c22] : memref<8x640xf32, #tpu.memory_space<vmem>>, vector<8x384xf32>
    %73 = vector.broadcast %71 : vector<8x1xf32> to vector<8x384xf32>
    %74 = arith.mulf %73, %72 : vector<8x384xf32>
    %75 = arith.addf %70, %74 : vector<8x384xf32>
    %c0_51 = arith.constant 0 : index
    %c7_52 = arith.constant 7 : index
    %76 = vector.load %arg3[%c0_51, %c7_52] : memref<8x49xf32, #tpu.memory_space<vmem>>, vector<8x1xf32>
    %c0_53 = arith.constant 0 : index
    %c22_54 = arith.constant 22 : index
    %77 = vector.load %arg1[%c0_53, %c22_54] : memref<8x640xf32, #tpu.memory_space<vmem>>, vector<8x384xf32>
    %78 = vector.broadcast %76 : vector<8x1xf32> to vector<8x384xf32>
    %79 = arith.mulf %78, %77 : vector<8x384xf32>
    %80 = arith.addf %75, %79 : vector<8x384xf32>
    %c0_55 = arith.constant 0 : index
    %c8 = arith.constant 8 : index
    %81 = vector.load %arg2[%c0_55, %c8] : memref<8x49xf32, #tpu.memory_space<vmem>>, vector<8x1xf32>
    %c0_56 = arith.constant 0 : index
    %c23 = arith.constant 23 : index
    %82 = vector.load %arg0[%c0_56, %c23] : memref<8x640xf32, #tpu.memory_space<vmem>>, vector<8x384xf32>
    %83 = vector.broadcast %81 : vector<8x1xf32> to vector<8x384xf32>
    %84 = arith.mulf %83, %82 : vector<8x384xf32>
    %85 = arith.addf %80, %84 : vector<8x384xf32>
    %c0_57 = arith.constant 0 : index
    %c8_58 = arith.constant 8 : index
    %86 = vector.load %arg3[%c0_57, %c8_58] : memref<8x49xf32, #tpu.memory_space<vmem>>, vector<8x1xf32>
    %c0_59 = arith.constant 0 : index
    %c23_60 = arith.constant 23 : index
    %87 = vector.load %arg1[%c0_59, %c23_60] : memref<8x640xf32, #tpu.memory_space<vmem>>, vector<8x384xf32>
    %88 = vector.broadcast %86 : vector<8x1xf32> to vector<8x384xf32>
    %89 = arith.mulf %88, %87 : vector<8x384xf32>
    %90 = arith.addf %85, %89 : vector<8x384xf32>
    %c0_61 = arith.constant 0 : index
    %c9 = arith.constant 9 : index
    %91 = vector.load %arg2[%c0_61, %c9] : memref<8x49xf32, #tpu.memory_space<vmem>>, vector<8x1xf32>
    %c0_62 = arith.constant 0 : index
    %c24 = arith.constant 24 : index
    %92 = vector.load %arg0[%c0_62, %c24] : memref<8x640xf32, #tpu.memory_space<vmem>>, vector<8x384xf32>
    %93 = vector.broadcast %91 : vector<8x1xf32> to vector<8x384xf32>
    %94 = arith.mulf %93, %92 : vector<8x384xf32>
    %95 = arith.addf %90, %94 : vector<8x384xf32>
    %c0_63 = arith.constant 0 : index
    %c9_64 = arith.constant 9 : index
    %96 = vector.load %arg3[%c0_63, %c9_64] : memref<8x49xf32, #tpu.memory_space<vmem>>, vector<8x1xf32>
    %c0_65 = arith.constant 0 : index
    %c24_66 = arith.constant 24 : index
    %97 = vector.load %arg1[%c0_65, %c24_66] : memref<8x640xf32, #tpu.memory_space<vmem>>, vector<8x384xf32>
    %98 = vector.broadcast %96 : vector<8x1xf32> to vector<8x384xf32>
    %99 = arith.mulf %98, %97 : vector<8x384xf32>
    %100 = arith.addf %95, %99 : vector<8x384xf32>
    %c0_67 = arith.constant 0 : index
    %c10 = arith.constant 10 : index
    %101 = vector.load %arg2[%c0_67, %c10] : memref<8x49xf32, #tpu.memory_space<vmem>>, vector<8x1xf32>
    %c0_68 = arith.constant 0 : index
    %c25 = arith.constant 25 : index
    %102 = vector.load %arg0[%c0_68, %c25] : memref<8x640xf32, #tpu.memory_space<vmem>>, vector<8x384xf32>
    %103 = vector.broadcast %101 : vector<8x1xf32> to vector<8x384xf32>
    %104 = arith.mulf %103, %102 : vector<8x384xf32>
    %105 = arith.addf %100, %104 : vector<8x384xf32>
    %c0_69 = arith.constant 0 : index
    %c10_70 = arith.constant 10 : index
    %106 = vector.load %arg3[%c0_69, %c10_70] : memref<8x49xf32, #tpu.memory_space<vmem>>, vector<8x1xf32>
    %c0_71 = arith.constant 0 : index
    %c25_72 = arith.constant 25 : index
    %107 = vector.load %arg1[%c0_71, %c25_72] : memref<8x640xf32, #tpu.memory_space<vmem>>, vector<8x384xf32>
    %108 = vector.broadcast %106 : vector<8x1xf32> to vector<8x384xf32>
    %109 = arith.mulf %108, %107 : vector<8x384xf32>
    %110 = arith.addf %105, %109 : vector<8x384xf32>
    %c0_73 = arith.constant 0 : index
    %c11 = arith.constant 11 : index
    %111 = vector.load %arg2[%c0_73, %c11] : memref<8x49xf32, #tpu.memory_space<vmem>>, vector<8x1xf32>
    %c0_74 = arith.constant 0 : index
    %c26 = arith.constant 26 : index
    %112 = vector.load %arg0[%c0_74, %c26] : memref<8x640xf32, #tpu.memory_space<vmem>>, vector<8x384xf32>
    %113 = vector.broadcast %111 : vector<8x1xf32> to vector<8x384xf32>
    %114 = arith.mulf %113, %112 : vector<8x384xf32>
    %115 = arith.addf %110, %114 : vector<8x384xf32>
    %c0_75 = arith.constant 0 : index
    %c11_76 = arith.constant 11 : index
    %116 = vector.load %arg3[%c0_75, %c11_76] : memref<8x49xf32, #tpu.memory_space<vmem>>, vector<8x1xf32>
    %c0_77 = arith.constant 0 : index
    %c26_78 = arith.constant 26 : index
    %117 = vector.load %arg1[%c0_77, %c26_78] : memref<8x640xf32, #tpu.memory_space<vmem>>, vector<8x384xf32>
    %118 = vector.broadcast %116 : vector<8x1xf32> to vector<8x384xf32>
    %119 = arith.mulf %118, %117 : vector<8x384xf32>
    %120 = arith.addf %115, %119 : vector<8x384xf32>
    %c0_79 = arith.constant 0 : index
    %c12 = arith.constant 12 : index
    %121 = vector.load %arg2[%c0_79, %c12] : memref<8x49xf32, #tpu.memory_space<vmem>>, vector<8x1xf32>
    %c0_80 = arith.constant 0 : index
    %c27 = arith.constant 27 : index
    %122 = vector.load %arg0[%c0_80, %c27] : memref<8x640xf32, #tpu.memory_space<vmem>>, vector<8x384xf32>
    %123 = vector.broadcast %121 : vector<8x1xf32> to vector<8x384xf32>
    %124 = arith.mulf %123, %122 : vector<8x384xf32>
    %125 = arith.addf %120, %124 : vector<8x384xf32>
    %c0_81 = arith.constant 0 : index
    %c12_82 = arith.constant 12 : index
    %126 = vector.load %arg3[%c0_81, %c12_82] : memref<8x49xf32, #tpu.memory_space<vmem>>, vector<8x1xf32>
    %c0_83 = arith.constant 0 : index
    %c27_84 = arith.constant 27 : index
    %127 = vector.load %arg1[%c0_83, %c27_84] : memref<8x640xf32, #tpu.memory_space<vmem>>, vector<8x384xf32>
    %128 = vector.broadcast %126 : vector<8x1xf32> to vector<8x384xf32>
    %129 = arith.mulf %128, %127 : vector<8x384xf32>
    %130 = arith.addf %125, %129 : vector<8x384xf32>
    %c0_85 = arith.constant 0 : index
    %c13 = arith.constant 13 : index
    %131 = vector.load %arg2[%c0_85, %c13] : memref<8x49xf32, #tpu.memory_space<vmem>>, vector<8x1xf32>
    %c0_86 = arith.constant 0 : index
    %c28 = arith.constant 28 : index
    %132 = vector.load %arg0[%c0_86, %c28] : memref<8x640xf32, #tpu.memory_space<vmem>>, vector<8x384xf32>
    %133 = vector.broadcast %131 : vector<8x1xf32> to vector<8x384xf32>
    %134 = arith.mulf %133, %132 : vector<8x384xf32>
    %135 = arith.addf %130, %134 : vector<8x384xf32>
    %c0_87 = arith.constant 0 : index
    %c13_88 = arith.constant 13 : index
    %136 = vector.load %arg3[%c0_87, %c13_88] : memref<8x49xf32, #tpu.memory_space<vmem>>, vector<8x1xf32>
    %c0_89 = arith.constant 0 : index
    %c28_90 = arith.constant 28 : index
    %137 = vector.load %arg1[%c0_89, %c28_90] : memref<8x640xf32, #tpu.memory_space<vmem>>, vector<8x384xf32>
    %138 = vector.broadcast %136 : vector<8x1xf32> to vector<8x384xf32>
    %139 = arith.mulf %138, %137 : vector<8x384xf32>
    %140 = arith.addf %135, %139 : vector<8x384xf32>
    %c0_91 = arith.constant 0 : index
    %c14 = arith.constant 14 : index
    %141 = vector.load %arg2[%c0_91, %c14] : memref<8x49xf32, #tpu.memory_space<vmem>>, vector<8x1xf32>
    %c0_92 = arith.constant 0 : index
    %c44 = arith.constant 44 : index
    %142 = vector.load %arg0[%c0_92, %c44] : memref<8x640xf32, #tpu.memory_space<vmem>>, vector<8x384xf32>
    %143 = vector.broadcast %141 : vector<8x1xf32> to vector<8x384xf32>
    %144 = arith.mulf %143, %142 : vector<8x384xf32>
    %145 = arith.addf %140, %144 : vector<8x384xf32>
    %c0_93 = arith.constant 0 : index
    %c14_94 = arith.constant 14 : index
    %146 = vector.load %arg3[%c0_93, %c14_94] : memref<8x49xf32, #tpu.memory_space<vmem>>, vector<8x1xf32>
    %c0_95 = arith.constant 0 : index
    %c44_96 = arith.constant 44 : index
    %147 = vector.load %arg1[%c0_95, %c44_96] : memref<8x640xf32, #tpu.memory_space<vmem>>, vector<8x384xf32>
    %148 = vector.broadcast %146 : vector<8x1xf32> to vector<8x384xf32>
    %149 = arith.mulf %148, %147 : vector<8x384xf32>
    %150 = arith.addf %145, %149 : vector<8x384xf32>
    %c0_97 = arith.constant 0 : index
    %c15 = arith.constant 15 : index
    %151 = vector.load %arg2[%c0_97, %c15] : memref<8x49xf32, #tpu.memory_space<vmem>>, vector<8x1xf32>
    %c0_98 = arith.constant 0 : index
    %c45 = arith.constant 45 : index
    %152 = vector.load %arg0[%c0_98, %c45] : memref<8x640xf32, #tpu.memory_space<vmem>>, vector<8x384xf32>
    %153 = vector.broadcast %151 : vector<8x1xf32> to vector<8x384xf32>
    %154 = arith.mulf %153, %152 : vector<8x384xf32>
    %155 = arith.addf %150, %154 : vector<8x384xf32>
    %c0_99 = arith.constant 0 : index
    %c15_100 = arith.constant 15 : index
    %156 = vector.load %arg3[%c0_99, %c15_100] : memref<8x49xf32, #tpu.memory_space<vmem>>, vector<8x1xf32>
    %c0_101 = arith.constant 0 : index
    %c45_102 = arith.constant 45 : index
    %157 = vector.load %arg1[%c0_101, %c45_102] : memref<8x640xf32, #tpu.memory_space<vmem>>, vector<8x384xf32>
    %158 = vector.broadcast %156 : vector<8x1xf32> to vector<8x384xf32>
    %159 = arith.mulf %158, %157 : vector<8x384xf32>
    %160 = arith.addf %155, %159 : vector<8x384xf32>
    %c0_103 = arith.constant 0 : index
    %c16 = arith.constant 16 : index
    %161 = vector.load %arg2[%c0_103, %c16] : memref<8x49xf32, #tpu.memory_space<vmem>>, vector<8x1xf32>
    %c0_104 = arith.constant 0 : index
    %c46 = arith.constant 46 : index
    %162 = vector.load %arg0[%c0_104, %c46] : memref<8x640xf32, #tpu.memory_space<vmem>>, vector<8x384xf32>
    %163 = vector.broadcast %161 : vector<8x1xf32> to vector<8x384xf32>
    %164 = arith.mulf %163, %162 : vector<8x384xf32>
    %165 = arith.addf %160, %164 : vector<8x384xf32>
    %c0_105 = arith.constant 0 : index
    %c16_106 = arith.constant 16 : index
    %166 = vector.load %arg3[%c0_105, %c16_106] : memref<8x49xf32, #tpu.memory_space<vmem>>, vector<8x1xf32>
    %c0_107 = arith.constant 0 : index
    %c46_108 = arith.constant 46 : index
    %167 = vector.load %arg1[%c0_107, %c46_108] : memref<8x640xf32, #tpu.memory_space<vmem>>, vector<8x384xf32>
    %168 = vector.broadcast %166 : vector<8x1xf32> to vector<8x384xf32>
    %169 = arith.mulf %168, %167 : vector<8x384xf32>
    %170 = arith.addf %165, %169 : vector<8x384xf32>
    %c0_109 = arith.constant 0 : index
    %c17 = arith.constant 17 : index
    %171 = vector.load %arg2[%c0_109, %c17] : memref<8x49xf32, #tpu.memory_space<vmem>>, vector<8x1xf32>
    %c0_110 = arith.constant 0 : index
    %c47 = arith.constant 47 : index
    %172 = vector.load %arg0[%c0_110, %c47] : memref<8x640xf32, #tpu.memory_space<vmem>>, vector<8x384xf32>
    %173 = vector.broadcast %171 : vector<8x1xf32> to vector<8x384xf32>
    %174 = arith.mulf %173, %172 : vector<8x384xf32>
    %175 = arith.addf %170, %174 : vector<8x384xf32>
    %c0_111 = arith.constant 0 : index
    %c17_112 = arith.constant 17 : index
    %176 = vector.load %arg3[%c0_111, %c17_112] : memref<8x49xf32, #tpu.memory_space<vmem>>, vector<8x1xf32>
    %c0_113 = arith.constant 0 : index
    %c47_114 = arith.constant 47 : index
    %177 = vector.load %arg1[%c0_113, %c47_114] : memref<8x640xf32, #tpu.memory_space<vmem>>, vector<8x384xf32>
    %178 = vector.broadcast %176 : vector<8x1xf32> to vector<8x384xf32>
    %179 = arith.mulf %178, %177 : vector<8x384xf32>
    %180 = arith.addf %175, %179 : vector<8x384xf32>
    %c0_115 = arith.constant 0 : index
    %c18 = arith.constant 18 : index
    %181 = vector.load %arg2[%c0_115, %c18] : memref<8x49xf32, #tpu.memory_space<vmem>>, vector<8x1xf32>
    %c0_116 = arith.constant 0 : index
    %c48 = arith.constant 48 : index
    %182 = vector.load %arg0[%c0_116, %c48] : memref<8x640xf32, #tpu.memory_space<vmem>>, vector<8x384xf32>
    %183 = vector.broadcast %181 : vector<8x1xf32> to vector<8x384xf32>
    %184 = arith.mulf %183, %182 : vector<8x384xf32>
    %185 = arith.addf %180, %184 : vector<8x384xf32>
    %c0_117 = arith.constant 0 : index
    %c18_118 = arith.constant 18 : index
    %186 = vector.load %arg3[%c0_117, %c18_118] : memref<8x49xf32, #tpu.memory_space<vmem>>, vector<8x1xf32>
    %c0_119 = arith.constant 0 : index
    %c48_120 = arith.constant 48 : index
    %187 = vector.load %arg1[%c0_119, %c48_120] : memref<8x640xf32, #tpu.memory_space<vmem>>, vector<8x384xf32>
    %188 = vector.broadcast %186 : vector<8x1xf32> to vector<8x384xf32>
    %189 = arith.mulf %188, %187 : vector<8x384xf32>
    %190 = arith.addf %185, %189 : vector<8x384xf32>
    %c0_121 = arith.constant 0 : index
    %c19 = arith.constant 19 : index
    %191 = vector.load %arg2[%c0_121, %c19] : memref<8x49xf32, #tpu.memory_space<vmem>>, vector<8x1xf32>
    %c0_122 = arith.constant 0 : index
    %c49 = arith.constant 49 : index
    %192 = vector.load %arg0[%c0_122, %c49] : memref<8x640xf32, #tpu.memory_space<vmem>>, vector<8x384xf32>
    %193 = vector.broadcast %191 : vector<8x1xf32> to vector<8x384xf32>
    %194 = arith.mulf %193, %192 : vector<8x384xf32>
    %195 = arith.addf %190, %194 : vector<8x384xf32>
    %c0_123 = arith.constant 0 : index
    %c19_124 = arith.constant 19 : index
    %196 = vector.load %arg3[%c0_123, %c19_124] : memref<8x49xf32, #tpu.memory_space<vmem>>, vector<8x1xf32>
    %c0_125 = arith.constant 0 : index
    %c49_126 = arith.constant 49 : index
    %197 = vector.load %arg1[%c0_125, %c49_126] : memref<8x640xf32, #tpu.memory_space<vmem>>, vector<8x384xf32>
    %198 = vector.broadcast %196 : vector<8x1xf32> to vector<8x384xf32>
    %199 = arith.mulf %198, %197 : vector<8x384xf32>
    %200 = arith.addf %195, %199 : vector<8x384xf32>
    %c0_127 = arith.constant 0 : index
    %c20 = arith.constant 20 : index
    %201 = vector.load %arg2[%c0_127, %c20] : memref<8x49xf32, #tpu.memory_space<vmem>>, vector<8x1xf32>
    %c0_128 = arith.constant 0 : index
    %c50 = arith.constant 50 : index
    %202 = vector.load %arg0[%c0_128, %c50] : memref<8x640xf32, #tpu.memory_space<vmem>>, vector<8x384xf32>
    %203 = vector.broadcast %201 : vector<8x1xf32> to vector<8x384xf32>
    %204 = arith.mulf %203, %202 : vector<8x384xf32>
    %205 = arith.addf %200, %204 : vector<8x384xf32>
    %c0_129 = arith.constant 0 : index
    %c20_130 = arith.constant 20 : index
    %206 = vector.load %arg3[%c0_129, %c20_130] : memref<8x49xf32, #tpu.memory_space<vmem>>, vector<8x1xf32>
    %c0_131 = arith.constant 0 : index
    %c50_132 = arith.constant 50 : index
    %207 = vector.load %arg1[%c0_131, %c50_132] : memref<8x640xf32, #tpu.memory_space<vmem>>, vector<8x384xf32>
    %208 = vector.broadcast %206 : vector<8x1xf32> to vector<8x384xf32>
    %209 = arith.mulf %208, %207 : vector<8x384xf32>
    %210 = arith.addf %205, %209 : vector<8x384xf32>
    %c0_133 = arith.constant 0 : index
    %c21 = arith.constant 21 : index
    %211 = vector.load %arg2[%c0_133, %c21] : memref<8x49xf32, #tpu.memory_space<vmem>>, vector<8x1xf32>
    %c0_134 = arith.constant 0 : index
    %c66 = arith.constant 66 : index
    %212 = vector.load %arg0[%c0_134, %c66] : memref<8x640xf32, #tpu.memory_space<vmem>>, vector<8x384xf32>
    %213 = vector.broadcast %211 : vector<8x1xf32> to vector<8x384xf32>
    %214 = arith.mulf %213, %212 : vector<8x384xf32>
    %215 = arith.addf %210, %214 : vector<8x384xf32>
    %c0_135 = arith.constant 0 : index
    %c21_136 = arith.constant 21 : index
    %216 = vector.load %arg3[%c0_135, %c21_136] : memref<8x49xf32, #tpu.memory_space<vmem>>, vector<8x1xf32>
    %c0_137 = arith.constant 0 : index
    %c66_138 = arith.constant 66 : index
    %217 = vector.load %arg1[%c0_137, %c66_138] : memref<8x640xf32, #tpu.memory_space<vmem>>, vector<8x384xf32>
    %218 = vector.broadcast %216 : vector<8x1xf32> to vector<8x384xf32>
    %219 = arith.mulf %218, %217 : vector<8x384xf32>
    %220 = arith.addf %215, %219 : vector<8x384xf32>
    %c0_139 = arith.constant 0 : index
    %c22_140 = arith.constant 22 : index
    %221 = vector.load %arg2[%c0_139, %c22_140] : memref<8x49xf32, #tpu.memory_space<vmem>>, vector<8x1xf32>
    %c0_141 = arith.constant 0 : index
    %c67 = arith.constant 67 : index
    %222 = vector.load %arg0[%c0_141, %c67] : memref<8x640xf32, #tpu.memory_space<vmem>>, vector<8x384xf32>
    %223 = vector.broadcast %221 : vector<8x1xf32> to vector<8x384xf32>
    %224 = arith.mulf %223, %222 : vector<8x384xf32>
    %225 = arith.addf %220, %224 : vector<8x384xf32>
    %c0_142 = arith.constant 0 : index
    %c22_143 = arith.constant 22 : index
    %226 = vector.load %arg3[%c0_142, %c22_143] : memref<8x49xf32, #tpu.memory_space<vmem>>, vector<8x1xf32>
    %c0_144 = arith.constant 0 : index
    %c67_145 = arith.constant 67 : index
    %227 = vector.load %arg1[%c0_144, %c67_145] : memref<8x640xf32, #tpu.memory_space<vmem>>, vector<8x384xf32>
    %228 = vector.broadcast %226 : vector<8x1xf32> to vector<8x384xf32>
    %229 = arith.mulf %228, %227 : vector<8x384xf32>
    %230 = arith.addf %225, %229 : vector<8x384xf32>
    %c0_146 = arith.constant 0 : index
    %c23_147 = arith.constant 23 : index
    %231 = vector.load %arg2[%c0_146, %c23_147] : memref<8x49xf32, #tpu.memory_space<vmem>>, vector<8x1xf32>
    %c0_148 = arith.constant 0 : index
    %c68 = arith.constant 68 : index
    %232 = vector.load %arg0[%c0_148, %c68] : memref<8x640xf32, #tpu.memory_space<vmem>>, vector<8x384xf32>
    %233 = vector.broadcast %231 : vector<8x1xf32> to vector<8x384xf32>
    %234 = arith.mulf %233, %232 : vector<8x384xf32>
    %235 = arith.addf %230, %234 : vector<8x384xf32>
    %c0_149 = arith.constant 0 : index
    %c23_150 = arith.constant 23 : index
    %236 = vector.load %arg3[%c0_149, %c23_150] : memref<8x49xf32, #tpu.memory_space<vmem>>, vector<8x1xf32>
    %c0_151 = arith.constant 0 : index
    %c68_152 = arith.constant 68 : index
    %237 = vector.load %arg1[%c0_151, %c68_152] : memref<8x640xf32, #tpu.memory_space<vmem>>, vector<8x384xf32>
    %238 = vector.broadcast %236 : vector<8x1xf32> to vector<8x384xf32>
    %239 = arith.mulf %238, %237 : vector<8x384xf32>
    %240 = arith.addf %235, %239 : vector<8x384xf32>
    %c0_153 = arith.constant 0 : index
    %c24_154 = arith.constant 24 : index
    %241 = vector.load %arg2[%c0_153, %c24_154] : memref<8x49xf32, #tpu.memory_space<vmem>>, vector<8x1xf32>
    %c0_155 = arith.constant 0 : index
    %c69 = arith.constant 69 : index
    %242 = vector.load %arg0[%c0_155, %c69] : memref<8x640xf32, #tpu.memory_space<vmem>>, vector<8x384xf32>
    %243 = vector.broadcast %241 : vector<8x1xf32> to vector<8x384xf32>
    %244 = arith.mulf %243, %242 : vector<8x384xf32>
    %245 = arith.addf %240, %244 : vector<8x384xf32>
    %c0_156 = arith.constant 0 : index
    %c24_157 = arith.constant 24 : index
    %246 = vector.load %arg3[%c0_156, %c24_157] : memref<8x49xf32, #tpu.memory_space<vmem>>, vector<8x1xf32>
    %c0_158 = arith.constant 0 : index
    %c69_159 = arith.constant 69 : index
    %247 = vector.load %arg1[%c0_158, %c69_159] : memref<8x640xf32, #tpu.memory_space<vmem>>, vector<8x384xf32>
    %248 = vector.broadcast %246 : vector<8x1xf32> to vector<8x384xf32>
    %249 = arith.mulf %248, %247 : vector<8x384xf32>
    %250 = arith.addf %245, %249 : vector<8x384xf32>
    %c0_160 = arith.constant 0 : index
    %c25_161 = arith.constant 25 : index
    %251 = vector.load %arg2[%c0_160, %c25_161] : memref<8x49xf32, #tpu.memory_space<vmem>>, vector<8x1xf32>
    %c0_162 = arith.constant 0 : index
    %c70 = arith.constant 70 : index
    %252 = vector.load %arg0[%c0_162, %c70] : memref<8x640xf32, #tpu.memory_space<vmem>>, vector<8x384xf32>
    %253 = vector.broadcast %251 : vector<8x1xf32> to vector<8x384xf32>
    %254 = arith.mulf %253, %252 : vector<8x384xf32>
    %255 = arith.addf %250, %254 : vector<8x384xf32>
    %c0_163 = arith.constant 0 : index
    %c25_164 = arith.constant 25 : index
    %256 = vector.load %arg3[%c0_163, %c25_164] : memref<8x49xf32, #tpu.memory_space<vmem>>, vector<8x1xf32>
    %c0_165 = arith.constant 0 : index
    %c70_166 = arith.constant 70 : index
    %257 = vector.load %arg1[%c0_165, %c70_166] : memref<8x640xf32, #tpu.memory_space<vmem>>, vector<8x384xf32>
    %258 = vector.broadcast %256 : vector<8x1xf32> to vector<8x384xf32>
    %259 = arith.mulf %258, %257 : vector<8x384xf32>
    %260 = arith.addf %255, %259 : vector<8x384xf32>
    %c0_167 = arith.constant 0 : index
    %c26_168 = arith.constant 26 : index
    %261 = vector.load %arg2[%c0_167, %c26_168] : memref<8x49xf32, #tpu.memory_space<vmem>>, vector<8x1xf32>
    %c0_169 = arith.constant 0 : index
    %c71 = arith.constant 71 : index
    %262 = vector.load %arg0[%c0_169, %c71] : memref<8x640xf32, #tpu.memory_space<vmem>>, vector<8x384xf32>
    %263 = vector.broadcast %261 : vector<8x1xf32> to vector<8x384xf32>
    %264 = arith.mulf %263, %262 : vector<8x384xf32>
    %265 = arith.addf %260, %264 : vector<8x384xf32>
    %c0_170 = arith.constant 0 : index
    %c26_171 = arith.constant 26 : index
    %266 = vector.load %arg3[%c0_170, %c26_171] : memref<8x49xf32, #tpu.memory_space<vmem>>, vector<8x1xf32>
    %c0_172 = arith.constant 0 : index
    %c71_173 = arith.constant 71 : index
    %267 = vector.load %arg1[%c0_172, %c71_173] : memref<8x640xf32, #tpu.memory_space<vmem>>, vector<8x384xf32>
    %268 = vector.broadcast %266 : vector<8x1xf32> to vector<8x384xf32>
    %269 = arith.mulf %268, %267 : vector<8x384xf32>
    %270 = arith.addf %265, %269 : vector<8x384xf32>
    %c0_174 = arith.constant 0 : index
    %c27_175 = arith.constant 27 : index
    %271 = vector.load %arg2[%c0_174, %c27_175] : memref<8x49xf32, #tpu.memory_space<vmem>>, vector<8x1xf32>
    %c0_176 = arith.constant 0 : index
    %c72 = arith.constant 72 : index
    %272 = vector.load %arg0[%c0_176, %c72] : memref<8x640xf32, #tpu.memory_space<vmem>>, vector<8x384xf32>
    %273 = vector.broadcast %271 : vector<8x1xf32> to vector<8x384xf32>
    %274 = arith.mulf %273, %272 : vector<8x384xf32>
    %275 = arith.addf %270, %274 : vector<8x384xf32>
    %c0_177 = arith.constant 0 : index
    %c27_178 = arith.constant 27 : index
    %276 = vector.load %arg3[%c0_177, %c27_178] : memref<8x49xf32, #tpu.memory_space<vmem>>, vector<8x1xf32>
    %c0_179 = arith.constant 0 : index
    %c72_180 = arith.constant 72 : index
    %277 = vector.load %arg1[%c0_179, %c72_180] : memref<8x640xf32, #tpu.memory_space<vmem>>, vector<8x384xf32>
    %278 = vector.broadcast %276 : vector<8x1xf32> to vector<8x384xf32>
    %279 = arith.mulf %278, %277 : vector<8x384xf32>
    %280 = arith.addf %275, %279 : vector<8x384xf32>
    %c0_181 = arith.constant 0 : index
    %c28_182 = arith.constant 28 : index
    %281 = vector.load %arg2[%c0_181, %c28_182] : memref<8x49xf32, #tpu.memory_space<vmem>>, vector<8x1xf32>
    %c0_183 = arith.constant 0 : index
    %c88 = arith.constant 88 : index
    %282 = vector.load %arg0[%c0_183, %c88] : memref<8x640xf32, #tpu.memory_space<vmem>>, vector<8x384xf32>
    %283 = vector.broadcast %281 : vector<8x1xf32> to vector<8x384xf32>
    %284 = arith.mulf %283, %282 : vector<8x384xf32>
    %285 = arith.addf %280, %284 : vector<8x384xf32>
    %c0_184 = arith.constant 0 : index
    %c28_185 = arith.constant 28 : index
    %286 = vector.load %arg3[%c0_184, %c28_185] : memref<8x49xf32, #tpu.memory_space<vmem>>, vector<8x1xf32>
    %c0_186 = arith.constant 0 : index
    %c88_187 = arith.constant 88 : index
    %287 = vector.load %arg1[%c0_186, %c88_187] : memref<8x640xf32, #tpu.memory_space<vmem>>, vector<8x384xf32>
    %288 = vector.broadcast %286 : vector<8x1xf32> to vector<8x384xf32>
    %289 = arith.mulf %288, %287 : vector<8x384xf32>
    %290 = arith.addf %285, %289 : vector<8x384xf32>
    %c0_188 = arith.constant 0 : index
    %c29 = arith.constant 29 : index
    %291 = vector.load %arg2[%c0_188, %c29] : memref<8x49xf32, #tpu.memory_space<vmem>>, vector<8x1xf32>
    %c0_189 = arith.constant 0 : index
    %c89 = arith.constant 89 : index
    %292 = vector.load %arg0[%c0_189, %c89] : memref<8x640xf32, #tpu.memory_space<vmem>>, vector<8x384xf32>
    %293 = vector.broadcast %291 : vector<8x1xf32> to vector<8x384xf32>
    %294 = arith.mulf %293, %292 : vector<8x384xf32>
    %295 = arith.addf %290, %294 : vector<8x384xf32>
    %c0_190 = arith.constant 0 : index
    %c29_191 = arith.constant 29 : index
    %296 = vector.load %arg3[%c0_190, %c29_191] : memref<8x49xf32, #tpu.memory_space<vmem>>, vector<8x1xf32>
    %c0_192 = arith.constant 0 : index
    %c89_193 = arith.constant 89 : index
    %297 = vector.load %arg1[%c0_192, %c89_193] : memref<8x640xf32, #tpu.memory_space<vmem>>, vector<8x384xf32>
    %298 = vector.broadcast %296 : vector<8x1xf32> to vector<8x384xf32>
    %299 = arith.mulf %298, %297 : vector<8x384xf32>
    %300 = arith.addf %295, %299 : vector<8x384xf32>
    %c0_194 = arith.constant 0 : index
    %c30 = arith.constant 30 : index
    %301 = vector.load %arg2[%c0_194, %c30] : memref<8x49xf32, #tpu.memory_space<vmem>>, vector<8x1xf32>
    %c0_195 = arith.constant 0 : index
    %c90 = arith.constant 90 : index
    %302 = vector.load %arg0[%c0_195, %c90] : memref<8x640xf32, #tpu.memory_space<vmem>>, vector<8x384xf32>
    %303 = vector.broadcast %301 : vector<8x1xf32> to vector<8x384xf32>
    %304 = arith.mulf %303, %302 : vector<8x384xf32>
    %305 = arith.addf %300, %304 : vector<8x384xf32>
    %c0_196 = arith.constant 0 : index
    %c30_197 = arith.constant 30 : index
    %306 = vector.load %arg3[%c0_196, %c30_197] : memref<8x49xf32, #tpu.memory_space<vmem>>, vector<8x1xf32>
    %c0_198 = arith.constant 0 : index
    %c90_199 = arith.constant 90 : index
    %307 = vector.load %arg1[%c0_198, %c90_199] : memref<8x640xf32, #tpu.memory_space<vmem>>, vector<8x384xf32>
    %308 = vector.broadcast %306 : vector<8x1xf32> to vector<8x384xf32>
    %309 = arith.mulf %308, %307 : vector<8x384xf32>
    %310 = arith.addf %305, %309 : vector<8x384xf32>
    %c0_200 = arith.constant 0 : index
    %c31 = arith.constant 31 : index
    %311 = vector.load %arg2[%c0_200, %c31] : memref<8x49xf32, #tpu.memory_space<vmem>>, vector<8x1xf32>
    %c0_201 = arith.constant 0 : index
    %c91 = arith.constant 91 : index
    %312 = vector.load %arg0[%c0_201, %c91] : memref<8x640xf32, #tpu.memory_space<vmem>>, vector<8x384xf32>
    %313 = vector.broadcast %311 : vector<8x1xf32> to vector<8x384xf32>
    %314 = arith.mulf %313, %312 : vector<8x384xf32>
    %315 = arith.addf %310, %314 : vector<8x384xf32>
    %c0_202 = arith.constant 0 : index
    %c31_203 = arith.constant 31 : index
    %316 = vector.load %arg3[%c0_202, %c31_203] : memref<8x49xf32, #tpu.memory_space<vmem>>, vector<8x1xf32>
    %c0_204 = arith.constant 0 : index
    %c91_205 = arith.constant 91 : index
    %317 = vector.load %arg1[%c0_204, %c91_205] : memref<8x640xf32, #tpu.memory_space<vmem>>, vector<8x384xf32>
    %318 = vector.broadcast %316 : vector<8x1xf32> to vector<8x384xf32>
    %319 = arith.mulf %318, %317 : vector<8x384xf32>
    %320 = arith.addf %315, %319 : vector<8x384xf32>
    %c0_206 = arith.constant 0 : index
    %c32 = arith.constant 32 : index
    %321 = vector.load %arg2[%c0_206, %c32] : memref<8x49xf32, #tpu.memory_space<vmem>>, vector<8x1xf32>
    %c0_207 = arith.constant 0 : index
    %c92 = arith.constant 92 : index
    %322 = vector.load %arg0[%c0_207, %c92] : memref<8x640xf32, #tpu.memory_space<vmem>>, vector<8x384xf32>
    %323 = vector.broadcast %321 : vector<8x1xf32> to vector<8x384xf32>
    %324 = arith.mulf %323, %322 : vector<8x384xf32>
    %325 = arith.addf %320, %324 : vector<8x384xf32>
    %c0_208 = arith.constant 0 : index
    %c32_209 = arith.constant 32 : index
    %326 = vector.load %arg3[%c0_208, %c32_209] : memref<8x49xf32, #tpu.memory_space<vmem>>, vector<8x1xf32>
    %c0_210 = arith.constant 0 : index
    %c92_211 = arith.constant 92 : index
    %327 = vector.load %arg1[%c0_210, %c92_211] : memref<8x640xf32, #tpu.memory_space<vmem>>, vector<8x384xf32>
    %328 = vector.broadcast %326 : vector<8x1xf32> to vector<8x384xf32>
    %329 = arith.mulf %328, %327 : vector<8x384xf32>
    %330 = arith.addf %325, %329 : vector<8x384xf32>
    %c0_212 = arith.constant 0 : index
    %c33 = arith.constant 33 : index
    %331 = vector.load %arg2[%c0_212, %c33] : memref<8x49xf32, #tpu.memory_space<vmem>>, vector<8x1xf32>
    %c0_213 = arith.constant 0 : index
    %c93 = arith.constant 93 : index
    %332 = vector.load %arg0[%c0_213, %c93] : memref<8x640xf32, #tpu.memory_space<vmem>>, vector<8x384xf32>
    %333 = vector.broadcast %331 : vector<8x1xf32> to vector<8x384xf32>
    %334 = arith.mulf %333, %332 : vector<8x384xf32>
    %335 = arith.addf %330, %334 : vector<8x384xf32>
    %c0_214 = arith.constant 0 : index
    %c33_215 = arith.constant 33 : index
    %336 = vector.load %arg3[%c0_214, %c33_215] : memref<8x49xf32, #tpu.memory_space<vmem>>, vector<8x1xf32>
    %c0_216 = arith.constant 0 : index
    %c93_217 = arith.constant 93 : index
    %337 = vector.load %arg1[%c0_216, %c93_217] : memref<8x640xf32, #tpu.memory_space<vmem>>, vector<8x384xf32>
    %338 = vector.broadcast %336 : vector<8x1xf32> to vector<8x384xf32>
    %339 = arith.mulf %338, %337 : vector<8x384xf32>
    %340 = arith.addf %335, %339 : vector<8x384xf32>
    %c0_218 = arith.constant 0 : index
    %c34 = arith.constant 34 : index
    %341 = vector.load %arg2[%c0_218, %c34] : memref<8x49xf32, #tpu.memory_space<vmem>>, vector<8x1xf32>
    %c0_219 = arith.constant 0 : index
    %c94 = arith.constant 94 : index
    %342 = vector.load %arg0[%c0_219, %c94] : memref<8x640xf32, #tpu.memory_space<vmem>>, vector<8x384xf32>
    %343 = vector.broadcast %341 : vector<8x1xf32> to vector<8x384xf32>
    %344 = arith.mulf %343, %342 : vector<8x384xf32>
    %345 = arith.addf %340, %344 : vector<8x384xf32>
    %c0_220 = arith.constant 0 : index
    %c34_221 = arith.constant 34 : index
    %346 = vector.load %arg3[%c0_220, %c34_221] : memref<8x49xf32, #tpu.memory_space<vmem>>, vector<8x1xf32>
    %c0_222 = arith.constant 0 : index
    %c94_223 = arith.constant 94 : index
    %347 = vector.load %arg1[%c0_222, %c94_223] : memref<8x640xf32, #tpu.memory_space<vmem>>, vector<8x384xf32>
    %348 = vector.broadcast %346 : vector<8x1xf32> to vector<8x384xf32>
    %349 = arith.mulf %348, %347 : vector<8x384xf32>
    %350 = arith.addf %345, %349 : vector<8x384xf32>
    %c0_224 = arith.constant 0 : index
    %c35 = arith.constant 35 : index
    %351 = vector.load %arg2[%c0_224, %c35] : memref<8x49xf32, #tpu.memory_space<vmem>>, vector<8x1xf32>
    %c0_225 = arith.constant 0 : index
    %c110 = arith.constant 110 : index
    %352 = vector.load %arg0[%c0_225, %c110] : memref<8x640xf32, #tpu.memory_space<vmem>>, vector<8x384xf32>
    %353 = vector.broadcast %351 : vector<8x1xf32> to vector<8x384xf32>
    %354 = arith.mulf %353, %352 : vector<8x384xf32>
    %355 = arith.addf %350, %354 : vector<8x384xf32>
    %c0_226 = arith.constant 0 : index
    %c35_227 = arith.constant 35 : index
    %356 = vector.load %arg3[%c0_226, %c35_227] : memref<8x49xf32, #tpu.memory_space<vmem>>, vector<8x1xf32>
    %c0_228 = arith.constant 0 : index
    %c110_229 = arith.constant 110 : index
    %357 = vector.load %arg1[%c0_228, %c110_229] : memref<8x640xf32, #tpu.memory_space<vmem>>, vector<8x384xf32>
    %358 = vector.broadcast %356 : vector<8x1xf32> to vector<8x384xf32>
    %359 = arith.mulf %358, %357 : vector<8x384xf32>
    %360 = arith.addf %355, %359 : vector<8x384xf32>
    %c0_230 = arith.constant 0 : index
    %c36 = arith.constant 36 : index
    %361 = vector.load %arg2[%c0_230, %c36] : memref<8x49xf32, #tpu.memory_space<vmem>>, vector<8x1xf32>
    %c0_231 = arith.constant 0 : index
    %c111 = arith.constant 111 : index
    %362 = vector.load %arg0[%c0_231, %c111] : memref<8x640xf32, #tpu.memory_space<vmem>>, vector<8x384xf32>
    %363 = vector.broadcast %361 : vector<8x1xf32> to vector<8x384xf32>
    %364 = arith.mulf %363, %362 : vector<8x384xf32>
    %365 = arith.addf %360, %364 : vector<8x384xf32>
    %c0_232 = arith.constant 0 : index
    %c36_233 = arith.constant 36 : index
    %366 = vector.load %arg3[%c0_232, %c36_233] : memref<8x49xf32, #tpu.memory_space<vmem>>, vector<8x1xf32>
    %c0_234 = arith.constant 0 : index
    %c111_235 = arith.constant 111 : index
    %367 = vector.load %arg1[%c0_234, %c111_235] : memref<8x640xf32, #tpu.memory_space<vmem>>, vector<8x384xf32>
    %368 = vector.broadcast %366 : vector<8x1xf32> to vector<8x384xf32>
    %369 = arith.mulf %368, %367 : vector<8x384xf32>
    %370 = arith.addf %365, %369 : vector<8x384xf32>
    %c0_236 = arith.constant 0 : index
    %c37 = arith.constant 37 : index
    %371 = vector.load %arg2[%c0_236, %c37] : memref<8x49xf32, #tpu.memory_space<vmem>>, vector<8x1xf32>
    %c0_237 = arith.constant 0 : index
    %c112 = arith.constant 112 : index
    %372 = vector.load %arg0[%c0_237, %c112] : memref<8x640xf32, #tpu.memory_space<vmem>>, vector<8x384xf32>
    %373 = vector.broadcast %371 : vector<8x1xf32> to vector<8x384xf32>
    %374 = arith.mulf %373, %372 : vector<8x384xf32>
    %375 = arith.addf %370, %374 : vector<8x384xf32>
    %c0_238 = arith.constant 0 : index
    %c37_239 = arith.constant 37 : index
    %376 = vector.load %arg3[%c0_238, %c37_239] : memref<8x49xf32, #tpu.memory_space<vmem>>, vector<8x1xf32>
    %c0_240 = arith.constant 0 : index
    %c112_241 = arith.constant 112 : index
    %377 = vector.load %arg1[%c0_240, %c112_241] : memref<8x640xf32, #tpu.memory_space<vmem>>, vector<8x384xf32>
    %378 = vector.broadcast %376 : vector<8x1xf32> to vector<8x384xf32>
    %379 = arith.mulf %378, %377 : vector<8x384xf32>
    %380 = arith.addf %375, %379 : vector<8x384xf32>
    %c0_242 = arith.constant 0 : index
    %c38 = arith.constant 38 : index
    %381 = vector.load %arg2[%c0_242, %c38] : memref<8x49xf32, #tpu.memory_space<vmem>>, vector<8x1xf32>
    %c0_243 = arith.constant 0 : index
    %c113 = arith.constant 113 : index
    %382 = vector.load %arg0[%c0_243, %c113] : memref<8x640xf32, #tpu.memory_space<vmem>>, vector<8x384xf32>
    %383 = vector.broadcast %381 : vector<8x1xf32> to vector<8x384xf32>
    %384 = arith.mulf %383, %382 : vector<8x384xf32>
    %385 = arith.addf %380, %384 : vector<8x384xf32>
    %c0_244 = arith.constant 0 : index
    %c38_245 = arith.constant 38 : index
    %386 = vector.load %arg3[%c0_244, %c38_245] : memref<8x49xf32, #tpu.memory_space<vmem>>, vector<8x1xf32>
    %c0_246 = arith.constant 0 : index
    %c113_247 = arith.constant 113 : index
    %387 = vector.load %arg1[%c0_246, %c113_247] : memref<8x640xf32, #tpu.memory_space<vmem>>, vector<8x384xf32>
    %388 = vector.broadcast %386 : vector<8x1xf32> to vector<8x384xf32>
    %389 = arith.mulf %388, %387 : vector<8x384xf32>
    %390 = arith.addf %385, %389 : vector<8x384xf32>
    %c0_248 = arith.constant 0 : index
    %c39 = arith.constant 39 : index
    %391 = vector.load %arg2[%c0_248, %c39] : memref<8x49xf32, #tpu.memory_space<vmem>>, vector<8x1xf32>
    %c0_249 = arith.constant 0 : index
    %c114 = arith.constant 114 : index
    %392 = vector.load %arg0[%c0_249, %c114] : memref<8x640xf32, #tpu.memory_space<vmem>>, vector<8x384xf32>
    %393 = vector.broadcast %391 : vector<8x1xf32> to vector<8x384xf32>
    %394 = arith.mulf %393, %392 : vector<8x384xf32>
    %395 = arith.addf %390, %394 : vector<8x384xf32>
    %c0_250 = arith.constant 0 : index
    %c39_251 = arith.constant 39 : index
    %396 = vector.load %arg3[%c0_250, %c39_251] : memref<8x49xf32, #tpu.memory_space<vmem>>, vector<8x1xf32>
    %c0_252 = arith.constant 0 : index
    %c114_253 = arith.constant 114 : index
    %397 = vector.load %arg1[%c0_252, %c114_253] : memref<8x640xf32, #tpu.memory_space<vmem>>, vector<8x384xf32>
    %398 = vector.broadcast %396 : vector<8x1xf32> to vector<8x384xf32>
    %399 = arith.mulf %398, %397 : vector<8x384xf32>
    %400 = arith.addf %395, %399 : vector<8x384xf32>
    %c0_254 = arith.constant 0 : index
    %c40 = arith.constant 40 : index
    %401 = vector.load %arg2[%c0_254, %c40] : memref<8x49xf32, #tpu.memory_space<vmem>>, vector<8x1xf32>
    %c0_255 = arith.constant 0 : index
    %c115 = arith.constant 115 : index
    %402 = vector.load %arg0[%c0_255, %c115] : memref<8x640xf32, #tpu.memory_space<vmem>>, vector<8x384xf32>
    %403 = vector.broadcast %401 : vector<8x1xf32> to vector<8x384xf32>
    %404 = arith.mulf %403, %402 : vector<8x384xf32>
    %405 = arith.addf %400, %404 : vector<8x384xf32>
    %c0_256 = arith.constant 0 : index
    %c40_257 = arith.constant 40 : index
    %406 = vector.load %arg3[%c0_256, %c40_257] : memref<8x49xf32, #tpu.memory_space<vmem>>, vector<8x1xf32>
    %c0_258 = arith.constant 0 : index
    %c115_259 = arith.constant 115 : index
    %407 = vector.load %arg1[%c0_258, %c115_259] : memref<8x640xf32, #tpu.memory_space<vmem>>, vector<8x384xf32>
    %408 = vector.broadcast %406 : vector<8x1xf32> to vector<8x384xf32>
    %409 = arith.mulf %408, %407 : vector<8x384xf32>
    %410 = arith.addf %405, %409 : vector<8x384xf32>
    %c0_260 = arith.constant 0 : index
    %c41 = arith.constant 41 : index
    %411 = vector.load %arg2[%c0_260, %c41] : memref<8x49xf32, #tpu.memory_space<vmem>>, vector<8x1xf32>
    %c0_261 = arith.constant 0 : index
    %c116 = arith.constant 116 : index
    %412 = vector.load %arg0[%c0_261, %c116] : memref<8x640xf32, #tpu.memory_space<vmem>>, vector<8x384xf32>
    %413 = vector.broadcast %411 : vector<8x1xf32> to vector<8x384xf32>
    %414 = arith.mulf %413, %412 : vector<8x384xf32>
    %415 = arith.addf %410, %414 : vector<8x384xf32>
    %c0_262 = arith.constant 0 : index
    %c41_263 = arith.constant 41 : index
    %416 = vector.load %arg3[%c0_262, %c41_263] : memref<8x49xf32, #tpu.memory_space<vmem>>, vector<8x1xf32>
    %c0_264 = arith.constant 0 : index
    %c116_265 = arith.constant 116 : index
    %417 = vector.load %arg1[%c0_264, %c116_265] : memref<8x640xf32, #tpu.memory_space<vmem>>, vector<8x384xf32>
    %418 = vector.broadcast %416 : vector<8x1xf32> to vector<8x384xf32>
    %419 = arith.mulf %418, %417 : vector<8x384xf32>
    %420 = arith.addf %415, %419 : vector<8x384xf32>
    %c0_266 = arith.constant 0 : index
    %c42 = arith.constant 42 : index
    %421 = vector.load %arg2[%c0_266, %c42] : memref<8x49xf32, #tpu.memory_space<vmem>>, vector<8x1xf32>
    %c0_267 = arith.constant 0 : index
    %c132 = arith.constant 132 : index
    %422 = vector.load %arg0[%c0_267, %c132] : memref<8x640xf32, #tpu.memory_space<vmem>>, vector<8x384xf32>
    %423 = vector.broadcast %421 : vector<8x1xf32> to vector<8x384xf32>
    %424 = arith.mulf %423, %422 : vector<8x384xf32>
    %425 = arith.addf %420, %424 : vector<8x384xf32>
    %c0_268 = arith.constant 0 : index
    %c42_269 = arith.constant 42 : index
    %426 = vector.load %arg3[%c0_268, %c42_269] : memref<8x49xf32, #tpu.memory_space<vmem>>, vector<8x1xf32>
    %c0_270 = arith.constant 0 : index
    %c132_271 = arith.constant 132 : index
    %427 = vector.load %arg1[%c0_270, %c132_271] : memref<8x640xf32, #tpu.memory_space<vmem>>, vector<8x384xf32>
    %428 = vector.broadcast %426 : vector<8x1xf32> to vector<8x384xf32>
    %429 = arith.mulf %428, %427 : vector<8x384xf32>
    %430 = arith.addf %425, %429 : vector<8x384xf32>
    %c0_272 = arith.constant 0 : index
    %c43 = arith.constant 43 : index
    %431 = vector.load %arg2[%c0_272, %c43] : memref<8x49xf32, #tpu.memory_space<vmem>>, vector<8x1xf32>
    %c0_273 = arith.constant 0 : index
    %c133 = arith.constant 133 : index
    %432 = vector.load %arg0[%c0_273, %c133] : memref<8x640xf32, #tpu.memory_space<vmem>>, vector<8x384xf32>
    %433 = vector.broadcast %431 : vector<8x1xf32> to vector<8x384xf32>
    %434 = arith.mulf %433, %432 : vector<8x384xf32>
    %435 = arith.addf %430, %434 : vector<8x384xf32>
    %c0_274 = arith.constant 0 : index
    %c43_275 = arith.constant 43 : index
    %436 = vector.load %arg3[%c0_274, %c43_275] : memref<8x49xf32, #tpu.memory_space<vmem>>, vector<8x1xf32>
    %c0_276 = arith.constant 0 : index
    %c133_277 = arith.constant 133 : index
    %437 = vector.load %arg1[%c0_276, %c133_277] : memref<8x640xf32, #tpu.memory_space<vmem>>, vector<8x384xf32>
    %438 = vector.broadcast %436 : vector<8x1xf32> to vector<8x384xf32>
    %439 = arith.mulf %438, %437 : vector<8x384xf32>
    %440 = arith.addf %435, %439 : vector<8x384xf32>
    %c0_278 = arith.constant 0 : index
    %c44_279 = arith.constant 44 : index
    %441 = vector.load %arg2[%c0_278, %c44_279] : memref<8x49xf32, #tpu.memory_space<vmem>>, vector<8x1xf32>
    %c0_280 = arith.constant 0 : index
    %c134 = arith.constant 134 : index
    %442 = vector.load %arg0[%c0_280, %c134] : memref<8x640xf32, #tpu.memory_space<vmem>>, vector<8x384xf32>
    %443 = vector.broadcast %441 : vector<8x1xf32> to vector<8x384xf32>
    %444 = arith.mulf %443, %442 : vector<8x384xf32>
    %445 = arith.addf %440, %444 : vector<8x384xf32>
    %c0_281 = arith.constant 0 : index
    %c44_282 = arith.constant 44 : index
    %446 = vector.load %arg3[%c0_281, %c44_282] : memref<8x49xf32, #tpu.memory_space<vmem>>, vector<8x1xf32>
    %c0_283 = arith.constant 0 : index
    %c134_284 = arith.constant 134 : index
    %447 = vector.load %arg1[%c0_283, %c134_284] : memref<8x640xf32, #tpu.memory_space<vmem>>, vector<8x384xf32>
    %448 = vector.broadcast %446 : vector<8x1xf32> to vector<8x384xf32>
    %449 = arith.mulf %448, %447 : vector<8x384xf32>
    %450 = arith.addf %445, %449 : vector<8x384xf32>
    %c0_285 = arith.constant 0 : index
    %c45_286 = arith.constant 45 : index
    %451 = vector.load %arg2[%c0_285, %c45_286] : memref<8x49xf32, #tpu.memory_space<vmem>>, vector<8x1xf32>
    %c0_287 = arith.constant 0 : index
    %c135 = arith.constant 135 : index
    %452 = vector.load %arg0[%c0_287, %c135] : memref<8x640xf32, #tpu.memory_space<vmem>>, vector<8x384xf32>
    %453 = vector.broadcast %451 : vector<8x1xf32> to vector<8x384xf32>
    %454 = arith.mulf %453, %452 : vector<8x384xf32>
    %455 = arith.addf %450, %454 : vector<8x384xf32>
    %c0_288 = arith.constant 0 : index
    %c45_289 = arith.constant 45 : index
    %456 = vector.load %arg3[%c0_288, %c45_289] : memref<8x49xf32, #tpu.memory_space<vmem>>, vector<8x1xf32>
    %c0_290 = arith.constant 0 : index
    %c135_291 = arith.constant 135 : index
    %457 = vector.load %arg1[%c0_290, %c135_291] : memref<8x640xf32, #tpu.memory_space<vmem>>, vector<8x384xf32>
    %458 = vector.broadcast %456 : vector<8x1xf32> to vector<8x384xf32>
    %459 = arith.mulf %458, %457 : vector<8x384xf32>
    %460 = arith.addf %455, %459 : vector<8x384xf32>
    %c0_292 = arith.constant 0 : index
    %c46_293 = arith.constant 46 : index
    %461 = vector.load %arg2[%c0_292, %c46_293] : memref<8x49xf32, #tpu.memory_space<vmem>>, vector<8x1xf32>
    %c0_294 = arith.constant 0 : index
    %c136 = arith.constant 136 : index
    %462 = vector.load %arg0[%c0_294, %c136] : memref<8x640xf32, #tpu.memory_space<vmem>>, vector<8x384xf32>
    %463 = vector.broadcast %461 : vector<8x1xf32> to vector<8x384xf32>
    %464 = arith.mulf %463, %462 : vector<8x384xf32>
    %465 = arith.addf %460, %464 : vector<8x384xf32>
    %c0_295 = arith.constant 0 : index
    %c46_296 = arith.constant 46 : index
    %466 = vector.load %arg3[%c0_295, %c46_296] : memref<8x49xf32, #tpu.memory_space<vmem>>, vector<8x1xf32>
    %c0_297 = arith.constant 0 : index
    %c136_298 = arith.constant 136 : index
    %467 = vector.load %arg1[%c0_297, %c136_298] : memref<8x640xf32, #tpu.memory_space<vmem>>, vector<8x384xf32>
    %468 = vector.broadcast %466 : vector<8x1xf32> to vector<8x384xf32>
    %469 = arith.mulf %468, %467 : vector<8x384xf32>
    %470 = arith.addf %465, %469 : vector<8x384xf32>
    %c0_299 = arith.constant 0 : index
    %c47_300 = arith.constant 47 : index
    %471 = vector.load %arg2[%c0_299, %c47_300] : memref<8x49xf32, #tpu.memory_space<vmem>>, vector<8x1xf32>
    %c0_301 = arith.constant 0 : index
    %c137 = arith.constant 137 : index
    %472 = vector.load %arg0[%c0_301, %c137] : memref<8x640xf32, #tpu.memory_space<vmem>>, vector<8x384xf32>
    %473 = vector.broadcast %471 : vector<8x1xf32> to vector<8x384xf32>
    %474 = arith.mulf %473, %472 : vector<8x384xf32>
    %475 = arith.addf %470, %474 : vector<8x384xf32>
    %c0_302 = arith.constant 0 : index
    %c47_303 = arith.constant 47 : index
    %476 = vector.load %arg3[%c0_302, %c47_303] : memref<8x49xf32, #tpu.memory_space<vmem>>, vector<8x1xf32>
    %c0_304 = arith.constant 0 : index
    %c137_305 = arith.constant 137 : index
    %477 = vector.load %arg1[%c0_304, %c137_305] : memref<8x640xf32, #tpu.memory_space<vmem>>, vector<8x384xf32>
    %478 = vector.broadcast %476 : vector<8x1xf32> to vector<8x384xf32>
    %479 = arith.mulf %478, %477 : vector<8x384xf32>
    %480 = arith.addf %475, %479 : vector<8x384xf32>
    %c0_306 = arith.constant 0 : index
    %c48_307 = arith.constant 48 : index
    %481 = vector.load %arg2[%c0_306, %c48_307] : memref<8x49xf32, #tpu.memory_space<vmem>>, vector<8x1xf32>
    %c0_308 = arith.constant 0 : index
    %c138 = arith.constant 138 : index
    %482 = vector.load %arg0[%c0_308, %c138] : memref<8x640xf32, #tpu.memory_space<vmem>>, vector<8x384xf32>
    %483 = vector.broadcast %481 : vector<8x1xf32> to vector<8x384xf32>
    %484 = arith.mulf %483, %482 : vector<8x384xf32>
    %485 = arith.addf %480, %484 : vector<8x384xf32>
    %c0_309 = arith.constant 0 : index
    %c48_310 = arith.constant 48 : index
    %486 = vector.load %arg3[%c0_309, %c48_310] : memref<8x49xf32, #tpu.memory_space<vmem>>, vector<8x1xf32>
    %c0_311 = arith.constant 0 : index
    %c138_312 = arith.constant 138 : index
    %487 = vector.load %arg1[%c0_311, %c138_312] : memref<8x640xf32, #tpu.memory_space<vmem>>, vector<8x384xf32>
    %488 = vector.broadcast %486 : vector<8x1xf32> to vector<8x384xf32>
    %489 = arith.mulf %488, %487 : vector<8x384xf32>
    %490 = arith.addf %485, %489 : vector<8x384xf32>
    %c0_313 = arith.constant 0 : index
    %c0_314 = arith.constant 0 : index
    %491 = vector.load %arg4[%c0_313, %c0_314] : memref<8x1xf32, #tpu.memory_space<vmem>>, vector<8x1xf32>
    %492 = vector.broadcast %491 : vector<8x1xf32> to vector<8x384xf32>
    %493 = arith.addf %490, %492 : vector<8x384xf32>
    %cst_315 = arith.constant 0.000000e+00 : f32
    %494 = vector.broadcast %cst_315 : f32 to vector<8x384xf32>
    %495 = arith.subf %494, %493 : vector<8x384xf32>
    %496 = math.exp %495 : vector<8x384xf32>
    %cst_316 = arith.constant 1.000000e+00 : f32
    %497 = vector.broadcast %cst_316 : f32 to vector<8x384xf32>
    %498 = arith.addf %497, %496 : vector<8x384xf32>
    %499 = tpu.reciprocal %498 {approx = true} : vector<8x384xf32> -> vector<8x384xf32>
    %c0_317 = arith.constant 0 : index
    %c0_318 = arith.constant 0 : index
    %500 = vector.load %arg5[%c0_317, %c0_318] : memref<8x384xf32, #tpu.memory_space<vmem>>, vector<8x384xf32>
    tpu.vector_store %arg5[%c0_317, %c0_318], %499 {strides = array<i32>} : memref<8x384xf32, #tpu.memory_space<vmem>>, vector<8x384xf32>,
    return
  }
}

</mosaic_0001>

<bundles_post_ra>
// kernel: tile.24
= control target key start
LH: loop header
LB: loop body
LE: loop exit
PB: predicated region body
PF: predicated region fallthrough
CT: control target
= control target key end

     0   :  { %s22_s0 = inlined_call_operand.vmem [shape: f32[4], index: 0, kind: input, shape index: {}]   ;;  %s23_s1 = inlined_call_operand.vmem [shape: f32[2,4], index: 1, kind: output, shape index: {}]  }
   0x1   :  { %v4_v0 = vld [vmem:[%s22_s0] ss:$0 sm:$0xff] }
   0x2   :  { %5 = vst [vmem:[%s23_s1] sm:$0x3] %v4_v0 }

// kernel: tile.0
= control target key start
LH: loop header
LB: loop body
LE: loop exit
PB: predicated region body
PF: predicated region fallthrough
CT: control target
= control target key end

     0   :  { %s34_s8 = smov 125   ;;  %s35_s9 = smov 126   ;;  %vm7_vm0 = vcmask 7168   ;;  %s61_s0 = inlined_call_operand.vmem [shape: f32[2,4], index: 0, kind: input, shape index: {}]   ;;  %s62_s1 = inlined_call_operand.vmem [shape: f32[8,1], index: 1, kind: output, shape index: {}]  }
   0x1   :  { %v4_v0 = vld [vmem:[%s61_s0] sm:$0x3]  ;;  %s33_s0 = smov 127  }
   0x2   :  { %5 = vst [vmem:[#allocation0] sm:$0x3] %v4_v0 }
   0x9   :  { %v9_v1 = vld [vmem:[#allocation0] sm:$0x3]  }
   0xa   :  { %v21_v2 = vld [vmem:[#allocation0] sm:$0x3]   ;;  %10 = vrot.lane.b32.xlu0 %v9_v1, %s33_s0 }
   0xb   :  { %22 = vrot.lane.b32.xlu1 %v21_v2, %s34_s8  ;;  %v15_v3 = vld [vmem:[#allocation0] sm:$0x3]  }
   0xc   :  { %v6_v4 = vld [vmem:[#allocation0] sm:$0x3]  }
   0xd   :  { %8 = vst.msk [vmem:[%s62_s1] ss:$4 sm:$0x3] %vm7_vm0, %v6_v4  }
  0x12   :  { %16 = vrot.lane.b32.xlu0 %v15_v3, %s35_s9 }
  0x7c   :  { %v11_v5 = vpop.permute.xlu0 %10  }
  0x7d   :  { %v23_v6 = vpop.permute.xlu1 %22   ;;  %27 = vst.msk [vmem:[%s62_s1 + $0x1] ss:$4 sm:$0x3] %vm7_vm0, %v11_v5  }
  0x7e   :  { %29 = vst.msk [vmem:[%s62_s1 + $0x3] ss:$4 sm:$0x3] %vm7_vm0, %v23_v6  }
  0x84   :  { %v17_v7 = vpop.permute.xlu0 %16  }
  0x85   :  { %28 = vst.msk [vmem:[%s62_s1 + $0x2] ss:$4 sm:$0x3] %vm7_vm0, %v17_v7  }

// kernel: pixel_attention.1
= control target key start
LH: loop header
LB: loop body
LE: loop exit
PB: predicated region body
PF: predicated region fallthrough
CT: control target
= control target key end

     0   :  { %v3138_v0 = vmov 1   ;;  %v5421_v1 = vmov 0   ;;  %v3140_v3 = vmov 3   ;;  %v3141_v5 = vmov 5   ;;  %s3144_s28 = smov 127   ;;  %s3145_s12 = smov 126   ;;  %s5415_s2 = inlined_call_operand.vmem [shape: f32[8,49], index: 2, kind: input, shape index: {}]   ;;  %s5416_s3 = inlined_call_operand.vmem [shape: f32[8,49], index: 3, kind: input, shape index: {}]   ;;  %s5417_s0 = inlined_call_operand.vmem [shape: f32[8,640], index: 0, kind: input, shape index: {}]   ;;  %s5418_s1 = inlined_call_operand.vmem [shape: f32[8,640], index: 1, kind: input, shape index: {}]   ;;  %s5419_s4 = inlined_call_operand.vmem [shape: f32[8,1], index: 4, kind: input, shape index: {}]   ;;  %s5420_s5 = inlined_call_operand.vmem [shape: f32[8,384], index: 5, kind: output, shape index: {}]  }
   0x1   :  { %3021 = vset.pattern.permute.xlu1 %v3138_v0  ;;  %3020 = vset.pattern.permute.xlu0 %v5421_v1  ;;  %v3266_v2 = vld [vmem:[%s5415_s2] sm:$0xff]  ;;  %v3142_v6 = vmov 2   ;;  %v3143_v7 = vmov 4   ;;  %v3287_v8 = vld [vmem:[%s5417_s0 + $0x18] sm:$0xff]  ;;  %v3297_v10 = vld [vmem:[%s5417_s0 + $0x8] sm:$0xff]  ;;  %s3146_s15 = smov 125  }
   0x2   :  { %55 = vperm.xlu1 %3021, %v3266_v2   ;;  %26 = vperm.xlu0 %3020, %v3266_v2   ;;  %v3274_v4 = vld [vmem:[%s5416_s3] sm:$0xff]  ;;  %v3307_v16 = vld [vmem:[%s5418_s1 + $0x8] sm:$0xff]  ;;  %v3312_v17 = vld [vmem:[%s5417_s0 + $0x10] sm:$0xff]  ;;  %s3147_s16 = smov 124   ;;  %s3148_s17 = smov 123   ;;  %vm74_vm0 = vcmask 1039360  }
   0x3   :  { %3023 = vset.pattern.permute.xlu2 %v3140_v3  ;;  %v3292_v9 = vld [vmem:[%s5417_s0] sm:$0xff]  ;;  %v3317_v18 = vld [vmem:[%s5418_s1 + $0x10] sm:$0xff]  ;;  %v3334_v28 = vld [vmem:[%s5418_s1 + $0x18] sm:$0xff]  ;;  %s3151_s18 = smov 122   ;;  %s3152_s19 = smov 106   ;;  %vm137_vm1 = vcmask 1031168  }
   0x4   :  { %177 = vperm.xlu2 %3023, %v3266_v2   ;;  %v3327_v24 = vld [vmem:[%s5418_s1] sm:$0xff]  ;;  %s3155_s20 = smov 105   ;;  %s3156_s21 = smov 104   ;;  %vm196_vm2 = vcmask 1022976   ;;  %vm255_vm3 = vcmask 1014784   ;;  %vm314_vm4 = vcmask 1006592  }
   0x5   :  { %s3159_s22 = smov 103   ;;  %s3160_s23 = smov 102   ;;  %vm373_vm5 = vcmask 998400   ;;  %vm432_vm6 = vcmask 867328   ;;  %vm5561_vm7 = vcmask 859136   ;;  %vm5559_vm8 = vcmask 850944  }
   0x6   :  { %s3163_s24 = smov 101   ;;  %s3164_s25 = smov 100   ;;  %vm5558_vm9 = vcmask 842752   ;;  %vm5557_vm10 = vcmask 834560   ;;  %vm5560_vm11 = vcmask 826368   ;;  %vm5526_vm12 = vcmask 818176  }
   0x7   :  { %s3167_s26 = smov 84   ;;  %s3168_s27 = smov 83   ;;  %vm5527_vm13 = vcmask 687104   ;;  %vm5528_vm14 = vcmask 678912   ;;  %vm5529_vm15 = vcmask 670720  }
   0x8   :  { %s3172_s29 = smov 81   ;;  %s3175_s13 = smov 80  }
   0x9   :  { %s3179_s30 = smov 78   ;;  %s3180_s6 = smov 62  }
   0xa   :  { %89 = vperm.xlu1 %3021, %v3274_v4   ;;  %41 = vperm.xlu0 %3020, %v3274_v4   ;;  %s3183_s7 = smov 61   ;;  %s3184_s8 = smov 60  }
   0xb   :  { %s3187_s9 = smov 59   ;;  %s3188_s10 = smov 58  }
   0xc   :  { %3026 = vset.pattern.permute.xlu2 %v3141_v5  ;;  %s3191_s11 = smov 57   ;;  %s3196_s14 = smov 39  }
   0xd   :  { %295 = vperm.xlu2 %3026, %v3266_v2  }
  0x12   :  { %3022 = vset.pattern.permute.xlu0 %v3142_v6  ;;  %3024 = vset.pattern.permute.xlu1 %v3140_v3 }
  0x13   :  { %118 = vperm.xlu0 %3022, %v3266_v2   ;;  %207 = vperm.xlu1 %3024, %v3274_v4  }
  0x1b   :  { %148 = vperm.xlu0 %3022, %v3274_v4   ;;  %3027 = vset.pattern.permute.xlu1 %v3141_v5 }
  0x23   :  { %3025 = vset.pattern.permute.xlu0 %v3143_v7 }
  0x24   :  { %236 = vperm.xlu0 %3025, %v3266_v2  }
  0x2c   :  { %266 = vperm.xlu0 %3025, %v3274_v4  }
  0x5e   :  { %v178_v33 = vpop.permute.xlu2 %177 }
  0x5f   :  { %v180_v34 = vmul.f32 %v178_v33, %v3292_v9  ;;  %v183_v37 = vmul.f32 %v178_v33, %v3287_v8  ;;  %v181_v43 = vmul.f32 %v178_v33, %v3297_v10  ;;  %v182_v48 = vmul.f32 %v178_v33, %v3312_v17 }
  0x67   :  { %v296_v49 = vpop.permute.xlu2 %295 }
  0x68   :  { %v298_v50 = vmul.f32 %v296_v49, %v3292_v9  ;;  %v301_v53 = vmul.f32 %v296_v49, %v3287_v8  ;;  %v299_v60 = vmul.f32 %v296_v49, %v3297_v10  ;;  %v300_v62 = vmul.f32 %v296_v49, %v3312_v17 }
  0x74   :  { %v56_v11 = vpop.permute.xlu1 %55  ;;  %v3299_v12 = vpop.permute.xlu0 %26 }
  0x75   :  { %5568 = vst [vmem:[#allocation2_spill] sm:$0xff] %v3299_v12  ;;  %v61_v13 = vmul.f32 %v56_v11, %v3287_v8  ;;  %v59_v14 = vmul.f32 %v56_v11, %v3297_v10  ;;  %v58_v15 = vmul.f32 %v56_v11, %v3292_v9  ;;  %v60_v22 = vmul.f32 %v56_v11, %v3312_v17 }
  0x77   :  { %72 = vrot.lane.b32.xlu0 %v61_v13, %s3144_s28  ;;  %68 = vrot.lane.b32.xlu2 %v59_v14, %s3144_s28 }
  0x78   :  { %66 = vrot.lane.b32.xlu1 %v58_v15, %s3144_s28 }
  0x7c   :  { %v90_v19 = vpop.permute.xlu1 %89  ;;  %v3319_v20 = vpop.permute.xlu0 %41 }
  0x7d   :  { %5569 = vst [vmem:[#allocation3_spill] sm:$0xff] %v3319_v20  ;;  %v93_v21 = vmul.f32 %v90_v19, %v3307_v16  ;;  %v94_v23 = vmul.f32 %v90_v19, %v3317_v18  ;;  %v92_v26 = vmul.f32 %v90_v19, %v3327_v24  ;;  %v95_v30 = vmul.f32 %v90_v19, %v3334_v28 }
  0x7e   :  { %v3149_v19 = vmov 6  }
  0x7f   :  { %102 = vrot.lane.b32.xlu0 %v93_v21, %s3144_s28  ;;  %70 = vrot.lane.b32.xlu2 %v60_v22, %s3144_s28 }
  0x80   :  { %104 = vrot.lane.b32.xlu1 %v94_v23, %s3144_s28  ;;  %3028 = vset.pattern.permute.xlu0 %v3149_v19 }
  0x85   :  { %v119_v25 = vpop.permute.xlu0 %118  ;;  %v208_v41 = vpop.permute.xlu1 %207 }
  0x86   :  { %v121_v27 = vmul.f32 %v119_v25, %v3292_v9  ;;  %v123_v32 = vmul.f32 %v119_v25, %v3312_v17  ;;  %v122_v35 = vmul.f32 %v119_v25, %v3297_v10  ;;  %v124_v38 = vmul.f32 %v119_v25, %v3287_v8 }
  0x87   :  { %100 = vrot.lane.b32.xlu2 %v92_v26, %s3144_s28  ;;  %v211_v42 = vmul.f32 %v208_v41, %v3307_v16  ;;  %v212_v47 = vmul.f32 %v208_v41, %v3317_v18  ;;  %v210_v52 = vmul.f32 %v208_v41, %v3327_v24  ;;  %v213_v54 = vmul.f32 %v208_v41, %v3334_v28 }
  0x88   :  { %129 = vrot.lane.b32.xlu1 %v121_v27, %s3145_s12 }
  0x8d   :  { %v149_v29 = vpop.permute.xlu0 %148 }
  0x8e   :  { %v153_v31 = vmul.f32 %v149_v29, %v3317_v18  ;;  %v151_v36 = vmul.f32 %v149_v29, %v3327_v24  ;;  %v154_v39 = vmul.f32 %v149_v29, %v3334_v28  ;;  %v152_v44 = vmul.f32 %v149_v29, %v3307_v16 }
  0x8f   :  { %106 = vrot.lane.b32.xlu2 %v95_v30, %s3144_s28  ;;  %s3171_s28 = smov 82  }
  0x90   :  { %163 = vrot.lane.b32.xlu0 %v153_v31, %s3145_s12  ;;  %133 = vrot.lane.b32.xlu1 %v123_v32, %s3145_s12 }
  0x96   :  { %v237_v40 = vpop.permute.xlu0 %236 }
  0x97   :  { %131 = vrot.lane.b32.xlu2 %v122_v35, %s3145_s12  ;;  %v239_v51 = vmul.f32 %v237_v40, %v3292_v9  ;;  %v241_v55 = vmul.f32 %v237_v40, %v3312_v17  ;;  %v240_v56 = vmul.f32 %v237_v40, %v3297_v10  ;;  %v242_v58 = vmul.f32 %v237_v40, %v3287_v8 }
  0x98   :  { %188 = vrot.lane.b32.xlu0 %v180_v34, %s3146_s15  ;;  %159 = vrot.lane.b32.xlu1 %v151_v36, %s3145_s12 }
  0x9e   :  { %v267_v45 = vpop.permute.xlu0 %266 }
  0x9f   :  { %135 = vrot.lane.b32.xlu2 %v124_v38, %s3145_s12  ;;  %v271_v46 = vmul.f32 %v267_v45, %v3317_v18  ;;  %v269_v57 = vmul.f32 %v267_v45, %v3327_v24  ;;  %v272_v59 = vmul.f32 %v267_v45, %v3334_v28  ;;  %v270_v61 = vmul.f32 %v267_v45, %v3307_v16 }
  0xa0   :  { %194 = vrot.lane.b32.xlu0 %v183_v37, %s3146_s15  ;;  %165 = vrot.lane.b32.xlu1 %v154_v39, %s3145_s12 }
  0xa7   :  { %161 = vrot.lane.b32.xlu2 %v152_v44, %s3145_s12  ;;  %s3192_s12 = smov 56  }
  0xa8   :  { %220 = vrot.lane.b32.xlu0 %v211_v42, %s3146_s15  ;;  %190 = vrot.lane.b32.xlu1 %v181_v43, %s3146_s15 }
  0xaf   :  { %192 = vrot.lane.b32.xlu2 %v182_v48, %s3146_s15 }
  0xb0   :  { %281 = vrot.lane.b32.xlu0 %v271_v46, %s3147_s16  ;;  %222 = vrot.lane.b32.xlu1 %v212_v47, %s3146_s15  ;;  %v3150_v46 = vmov 7  }
  0xb1   :  { %3029 = vset.pattern.permute.xlu2 %v3150_v46 }
  0xb7   :  { %218 = vrot.lane.b32.xlu2 %v210_v52, %s3146_s15 }
  0xb8   :  { %306 = vrot.lane.b32.xlu0 %v298_v50, %s3148_s17  ;;  %247 = vrot.lane.b32.xlu1 %v239_v51, %s3147_s16 }
  0xbf   :  { %224 = vrot.lane.b32.xlu2 %v213_v54, %s3146_s15  ;;  %s3199_s15 = smov 38  }
  0xc0   :  { %312 = vrot.lane.b32.xlu0 %v301_v53, %s3148_s17  ;;  %251 = vrot.lane.b32.xlu1 %v241_v55, %s3147_s16 }
  0xc7   :  { %249 = vrot.lane.b32.xlu2 %v240_v56, %s3147_s16 }
  0xc8   :  { %277 = vrot.lane.b32.xlu1 %v269_v57, %s3147_s16 }
  0xcf   :  { %253 = vrot.lane.b32.xlu2 %v242_v58, %s3147_s16 }
  0xd0   :  { %283 = vrot.lane.b32.xlu1 %v272_v59, %s3147_s16 }
  0xd1   :  { %v3429_v35 = vpop.permute.xlu2 %68 }
  0xd7   :  { %279 = vrot.lane.b32.xlu2 %v270_v61, %s3147_s16 }
  0xd8   :  { %308 = vrot.lane.b32.xlu1 %v299_v60, %s3148_s17 }
  0xd9   :  { %v3433_v37 = vpop.permute.xlu2 %70 }
  0xda   :  { %5579 = vst [vmem:[#allocation13_spill] sm:$0xff] %v3433_v37 }
  0xdf   :  { %310 = vrot.lane.b32.xlu2 %v300_v62, %s3148_s17 }
  0xe0   :  { %325 = vperm.xlu1 %3027, %v3274_v4  }
  0xe1   :  { %v3437_v39 = vpop.permute.xlu2 %100 }
  0xe8   :  { %3030 = vset.pattern.permute.xlu1 %v3150_v46 }
  0xe9   :  { %v3421_v31 = vpop.permute.xlu0 %72  ;;  %v3441_v41 = vpop.permute.xlu2 %106 }
  0xea   :  { %v3385_v63 = vpop.permute.xlu1 %66  ;;  %5576 = vst [vmem:[#allocation10_spill] sm:$0xff] %v3421_v31  ;;  %v3157_v31 = vmov 10  }
  0xeb   :  { %5581 = vst [vmem:[#allocation15_spill] sm:$0xff] %v3441_v41 }
  0xf1   :  { %v3423_v32 = vpop.permute.xlu0 %102  ;;  %v3445_v43 = vpop.permute.xlu2 %131 }
  0xf2   :  { %v3387_v0 = vpop.permute.xlu1 %104 }
  0xf3   :  { %5570 = vst [vmem:[#allocation4_spill] sm:$0xff] %v3387_v0 }
  0xf9   :  { %v3449_v45 = vpop.permute.xlu2 %135 }
  0xfa   :  { %v3389_v3 = vpop.permute.xlu1 %129  ;;  %5583 = vst [vmem:[#allocation17_spill] sm:$0xff] %v3449_v45 }
 0x101   :  { %v3453_v48 = vpop.permute.xlu2 %161 }
 0x102   :  { %v3391_v5 = vpop.permute.xlu1 %133  ;;  %v3425_v33 = vpop.permute.xlu0 %163 }
 0x103   :  { %5571 = vst [vmem:[#allocation5_spill] sm:$0xff] %v3391_v5  ;;  %v3162_v5 = vmov 13  }
 0x104   :  { %5577 = vst [vmem:[#allocation11_spill] sm:$0xff] %v3425_v33 }
 0x109   :  { %v3459_v52 = vpop.permute.xlu2 %192 }
 0x10a   :  { %v3393_v6 = vpop.permute.xlu1 %159  ;;  %v3427_v34 = vpop.permute.xlu0 %188  ;;  %5584 = vst [vmem:[#allocation18_spill] sm:$0xff] %v3459_v52 }
 0x111   :  { %v3467_v57 = vpop.permute.xlu2 %218 }
 0x112   :  { %v3395_v7 = vpop.permute.xlu1 %165  ;;  %v3431_v36 = vpop.permute.xlu0 %194 }
 0x113   :  { %5572 = vst [vmem:[#allocation6_spill] sm:$0xff] %v3395_v7 }
 0x114   :  { %5578 = vst [vmem:[#allocation12_spill] sm:$0xff] %v3431_v36 }
 0x119   :  { %v3474_v61 = vpop.permute.xlu2 %224 }
 0x11a   :  { %v3397_v11 = vpop.permute.xlu1 %190  ;;  %v3435_v38 = vpop.permute.xlu0 %220  ;;  %5585 = vst [vmem:[#allocation19_spill] sm:$0xff] %v3474_v61 }
 0x121   :  { %v3478_v62 = vpop.permute.xlu2 %249 }
 0x122   :  { %v3399_v13 = vpop.permute.xlu1 %222  ;;  %v3439_v40 = vpop.permute.xlu0 %281 }
 0x123   :  { %5573 = vst [vmem:[#allocation7_spill] sm:$0xff] %v3399_v13  ;;  %v3161_v13 = vmov 12  }
 0x124   :  { %5580 = vst [vmem:[#allocation14_spill] sm:$0xff] %v3439_v40 }
 0x129   :  { %v3480_v19 = vpop.permute.xlu2 %253 }
 0x12a   :  { %v3401_v14 = vpop.permute.xlu1 %247  ;;  %v3443_v42 = vpop.permute.xlu0 %306  ;;  %5586 = vst [vmem:[#allocation20_spill] sm:$0xff] %v3480_v19 }
 0x132   :  { %v3403_v15 = vpop.permute.xlu1 %251  ;;  %v3447_v44 = vpop.permute.xlu0 %312 }
 0x133   :  { %5574 = vst [vmem:[#allocation8_spill] sm:$0xff] %v3403_v15 }
 0x134   :  { %5582 = vst [vmem:[#allocation16_spill] sm:$0xff] %v3447_v44 }
 0x13a   :  { %v3405_v21 = vpop.permute.xlu1 %277 }
 0x142   :  { %v3407_v22 = vpop.permute.xlu1 %283 }
 0x143   :  { %5575 = vst [vmem:[#allocation9_spill] sm:$0xff] %v3407_v22  ;;  %v3154_v22 = vmov 9  }
 0x14a   :  { %v3409_v23 = vpop.permute.xlu1 %308 }
 0x152   :  { %v326_v25 = vpop.permute.xlu1 %325 }
 0x153   :  { %v330_v26 = vmul.f32 %v326_v25, %v3317_v18  ;;  %v329_v27 = vmul.f32 %v326_v25, %v3307_v16  ;;  %v328_v29 = vmul.f32 %v326_v25, %v3327_v24  ;;  %v331_v30 = vmul.f32 %v326_v25, %v3334_v28  ;;  %v3482_v25 = vpop.permute.xlu2 %279 }
 0x155   :  { %340 = vrot.lane.b32.xlu1 %v330_v26, %s3148_s17  ;;  %338 = vrot.lane.b32.xlu0 %v329_v27, %s3148_s17 }
 0x156   :  { %336 = vrot.lane.b32.xlu2 %v328_v29, %s3148_s17 }
 0x15b   :  { %v3484_v26 = vpop.permute.xlu2 %310 }
 0x15c   :  { %5587 = vst [vmem:[#allocation21_spill] sm:$0xff] %v3484_v26 }
 0x15d   :  { %354 = vperm.xlu0 %3028, %v3266_v2  }
 0x15e   :  { %342 = vrot.lane.b32.xlu2 %v331_v30, %s3148_s17 }
 0x165   :  { %384 = vperm.xlu0 %3028, %v3274_v4  }
 0x1b0   :  { %v3486_v27 = vpop.permute.xlu2 %336 }
 0x1b8   :  { %v3488_v29 = vpop.permute.xlu2 %342 }
 0x1b9   :  { %5588 = vst [vmem:[#allocation22_spill] sm:$0xff] %v3488_v29 }
 0x1c7   :  { %v3451_v47 = vpop.permute.xlu0 %338 }
 0x1cf   :  { %v355_v49 = vpop.permute.xlu0 %354 }
 0x1d0   :  { %v357_v50 = vmul.f32 %v355_v49, %v3292_v9  ;;  %v358_v51 = vmul.f32 %v355_v49, %v3297_v10  ;;  %v359_v54 = vmul.f32 %v355_v49, %v3312_v17  ;;  %v360_v56 = vmul.f32 %v355_v49, %v3287_v8 }
 0x1d2   :  { %365 = vrot.lane.b32.xlu1 %v357_v50, %s3151_s18  ;;  %367 = vrot.lane.b32.xlu2 %v358_v51, %s3151_s18 }
 0x1d7   :  { %v385_v53 = vpop.permute.xlu0 %384 }
 0x1d8   :  { %v389_v55 = vmul.f32 %v385_v53, %v3317_v18  ;;  %v387_v58 = vmul.f32 %v385_v53, %v3327_v24  ;;  %v388_v59 = vmul.f32 %v385_v53, %v3307_v16  ;;  %v390_v60 = vmul.f32 %v385_v53, %v3334_v28 }
 0x1da   :  { %369 = vrot.lane.b32.xlu1 %v359_v54, %s3151_s18  ;;  %399 = vrot.lane.b32.xlu0 %v389_v55, %s3151_s18 }
 0x1db   :  { %371 = vrot.lane.b32.xlu2 %v360_v56, %s3151_s18  ;;  %v3501_v56 = vpop.permute.xlu1 %340 }
 0x1dc   :  { %5590 = vst [vmem:[#allocation24_spill] sm:$0xff] %v3501_v56 }
 0x1e2   :  { %395 = vrot.lane.b32.xlu1 %v387_v58, %s3151_s18 }
 0x1e3   :  { %397 = vrot.lane.b32.xlu2 %v388_v59, %s3151_s18 }
 0x1ea   :  { %401 = vrot.lane.b32.xlu1 %v390_v60, %s3151_s18  ;;  %v3153_v60 = vmov 8  }
 0x1eb   :  { %413 = vperm.xlu2 %3029, %v3266_v2   ;;  %3031 = vset.pattern.permute.xlu0 %v3153_v60 }
 0x1f3   :  { %3032 = vset.pattern.permute.xlu2 %v3154_v22 }
 0x22c   :  { %v3490_v30 = vpop.permute.xlu2 %367 }
 0x235   :  { %v3492_v46 = vpop.permute.xlu2 %371 }
 0x236   :  { %5589 = vst [vmem:[#allocation23_spill] sm:$0xff] %v3492_v46 }
 0x23d   :  { %v3494_v49 = vpop.permute.xlu2 %397 }
 0x244   :  { %v3503_v58 = vpop.permute.xlu1 %365 }
 0x245   :  { %v414_v50 = vpop.permute.xlu2 %413 }
 0x246   :  { %v418_v51 = vmul.f32 %v414_v50, %v3312_v17  ;;  %v417_v53 = vmul.f32 %v414_v50, %v3297_v10  ;;  %v416_v54 = vmul.f32 %v414_v50, %v3292_v9  ;;  %v419_v55 = vmul.f32 %v414_v50, %v3287_v8 }
 0x248   :  { %428 = vrot.lane.b32.xlu2 %v418_v51, %s3152_s19  ;;  %426 = vrot.lane.b32.xlu1 %v417_v53, %s3152_s19 }
 0x249   :  { %424 = vrot.lane.b32.xlu0 %v416_v54, %s3152_s19 }
 0x24c   :  { %v3505_v59 = vpop.permute.xlu1 %369  ;;  %v3519_v60 = vpop.permute.xlu0 %399 }
 0x24d   :  { %5591 = vst [vmem:[#allocation25_spill] sm:$0xff] %v3505_v59  ;;  %v3158_v59 = vmov 11  }
 0x24e   :  { %5593 = vst [vmem:[#allocation27_spill] sm:$0xff] %v3519_v60 }
 0x250   :  { %443 = vperm.xlu1 %3030, %v3274_v4  }
 0x251   :  { %430 = vrot.lane.b32.xlu0 %v419_v55, %s3152_s19 }
 0x254   :  { %v3507_v1 = vpop.permute.xlu1 %395 }
 0x258   :  { %3033 = vset.pattern.permute.xlu1 %v3154_v22 }
 0x25c   :  { %v3509_v46 = vpop.permute.xlu1 %401 }
 0x25d   :  { %5592 = vst [vmem:[#allocation26_spill] sm:$0xff] %v3509_v46 }
 0x2ba   :  { %v3511_v51 = vpop.permute.xlu1 %426 }
 0x2bb   :  { %v3521_v46 = vpop.permute.xlu0 %424 }
 0x2c2   :  { %v444_v53 = vpop.permute.xlu1 %443 }
 0x2c3   :  { %v448_v50 = vmul.f32 %v444_v53, %v3317_v18  ;;  %v446_v54 = vmul.f32 %v444_v53, %v3327_v24  ;;  %v447_v55 = vmul.f32 %v444_v53, %v3307_v16  ;;  %v449_v29 = vmul.f32 %v444_v53, %v3334_v28  ;;  %v3523_v44 = vpop.permute.xlu0 %430 }
 0x2c4   :  { %5594 = vst [vmem:[#allocation28_spill] sm:$0xff] %v3523_v44 }
 0x2c5   :  { %458 = vrot.lane.b32.xlu1 %v448_v50, %s3152_s19  ;;  %454 = vrot.lane.b32.xlu2 %v446_v54, %s3152_s19 }
 0x2c6   :  { %456 = vrot.lane.b32.xlu0 %v447_v55, %s3152_s19 }
 0x2cd   :  { %460 = vrot.lane.b32.xlu2 %v449_v29, %s3152_s19  ;;  %s3200_s19 = smov 37  }
 0x2ce   :  { %472 = vperm.xlu0 %3031, %v3266_v2  }
 0x2d6   :  { %502 = vperm.xlu0 %3031, %v3274_v4  }
 0x2de   :  { %3034 = vset.pattern.permute.xlu0 %v3157_v31 }
 0x338   :  { %v3525_v19 = vpop.permute.xlu0 %456 }
 0x340   :  { %v473_v50 = vpop.permute.xlu0 %472 }
 0x341   :  { %v476_v54 = vmul.f32 %v473_v50, %v3297_v10  ;;  %v475_v29 = vmul.f32 %v473_v50, %v3292_v9  ;;  %v478_v55 = vmul.f32 %v473_v50, %v3287_v8  ;;  %v477_v61 = vmul.f32 %v473_v50, %v3312_v17 }
 0x343   :  { %485 = vrot.lane.b32.xlu2 %v476_v54, %s3155_s20  ;;  %483 = vrot.lane.b32.xlu1 %v475_v29, %s3155_s20  ;;  %v3536_v54 = vpop.permute.xlu2 %428 }
 0x344   :  { %5595 = vst [vmem:[#allocation29_spill] sm:$0xff] %v3536_v54 }
 0x348   :  { %v503_v53 = vpop.permute.xlu0 %502 }
 0x349   :  { %v507_v44 = vmul.f32 %v503_v53, %v3317_v18  ;;  %v506_v22 = vmul.f32 %v503_v53, %v3307_v16  ;;  %v505_v36 = vmul.f32 %v503_v53, %v3327_v24  ;;  %v508_v7 = vmul.f32 %v503_v53, %v3334_v28 }
 0x34b   :  { %489 = vrot.lane.b32.xlu2 %v478_v55, %s3155_s20  ;;  %487 = vrot.lane.b32.xlu1 %v477_v61, %s3155_s20  ;;  %v3538_v29 = vpop.permute.xlu2 %454 }
 0x34c   :  { %517 = vrot.lane.b32.xlu0 %v507_v44, %s3155_s20 }
 0x353   :  { %515 = vrot.lane.b32.xlu2 %v506_v22, %s3155_s20  ;;  %513 = vrot.lane.b32.xlu1 %v505_v36, %s3155_s20  ;;  %v3540_v50 = vpop.permute.xlu2 %460 }
 0x354   :  { %5596 = vst [vmem:[#allocation30_spill] sm:$0xff] %v3540_v50  ;;  %v3553_v50 = vpop.permute.xlu1 %458 }
 0x355   :  { %5598 = vst [vmem:[#allocation32_spill] sm:$0xff] %v3553_v50 }
 0x35b   :  { %531 = vperm.xlu2 %3032, %v3266_v2   ;;  %519 = vrot.lane.b32.xlu1 %v508_v7, %s3155_s20  ;;  %s3203_s20 = smov 36  }
 0x363   :  { %3035 = vset.pattern.permute.xlu2 %v3158_v59 }
 0x39d   :  { %v3542_v55 = vpop.permute.xlu2 %485 }
 0x3a5   :  { %v3544_v44 = vpop.permute.xlu2 %489 }
 0x3a6   :  { %5597 = vst [vmem:[#allocation31_spill] sm:$0xff] %v3544_v44 }
 0x3ad   :  { %v3546_v61 = vpop.permute.xlu2 %515 }
 0x3b5   :  { %v532_v45 = vpop.permute.xlu2 %531  ;;  %v3555_v44 = vpop.permute.xlu1 %483 }
 0x3b6   :  { %v536_v36 = vmul.f32 %v532_v45, %v3312_v17  ;;  %v534_v53 = vmul.f32 %v532_v45, %v3292_v9  ;;  %v535_v22 = vmul.f32 %v532_v45, %v3297_v10  ;;  %v537_v7 = vmul.f32 %v532_v45, %v3287_v8 }
 0x3b8   :  { %546 = vrot.lane.b32.xlu2 %v536_v36, %s3156_s21  ;;  %542 = vrot.lane.b32.xlu0 %v534_v53, %s3156_s21 }
 0x3b9   :  { %544 = vrot.lane.b32.xlu1 %v535_v22, %s3156_s21 }
 0x3bd   :  { %v3557_v41 = vpop.permute.xlu1 %487 }
 0x3be   :  { %5599 = vst [vmem:[#allocation33_spill] sm:$0xff] %v3557_v41  ;;  %v3571_v31 = vpop.permute.xlu0 %517 }
 0x3bf   :  { %5601 = vst [vmem:[#allocation35_spill] sm:$0xff] %v3571_v31 }
 0x3c0   :  { %548 = vrot.lane.b32.xlu0 %v537_v7, %s3156_s21 }
 0x3c1   :  { %561 = vperm.xlu1 %3033, %v3274_v4  }
 0x3c5   :  { %v3559_v54 = vpop.permute.xlu1 %513 }
 0x3c9   :  { %3036 = vset.pattern.permute.xlu1 %v3158_v59 }
 0x3cd   :  { %v3561_v60 = vpop.permute.xlu1 %519 }
 0x3ce   :  { %5600 = vst [vmem:[#allocation34_spill] sm:$0xff] %v3561_v60 }
 0x42a   :  { %v3573_v60 = vpop.permute.xlu0 %542 }
 0x42b   :  { %v3563_v36 = vpop.permute.xlu1 %544 }
 0x432   :  { %v3575_v50 = vpop.permute.xlu0 %548 }
 0x433   :  { %v562_v53 = vpop.permute.xlu1 %561  ;;  %5602 = vst [vmem:[#allocation36_spill] sm:$0xff] %v3575_v50 }
 0x434   :  { %v566_v45 = vmul.f32 %v562_v53, %v3317_v18  ;;  %v565_v22 = vmul.f32 %v562_v53, %v3307_v16  ;;  %v564_v7 = vmul.f32 %v562_v53, %v3327_v24  ;;  %v567_v41 = vmul.f32 %v562_v53, %v3334_v28 }
 0x436   :  { %576 = vrot.lane.b32.xlu1 %v566_v45, %s3156_s21  ;;  %574 = vrot.lane.b32.xlu0 %v565_v22, %s3156_s21 }
 0x437   :  { %572 = vrot.lane.b32.xlu2 %v564_v7, %s3156_s21 }
 0x43e   :  { %590 = vperm.xlu0 %3034, %v3266_v2  }
 0x43f   :  { %578 = vrot.lane.b32.xlu2 %v567_v41, %s3156_s21  ;;  %s3204_s21 = smov 35  }
 0x446   :  { %620 = vperm.xlu0 %3034, %v3274_v4  }
 0x44e   :  { %3037 = vset.pattern.permute.xlu0 %v3161_v13 }
 0x4a8   :  { %v3577_v56 = vpop.permute.xlu0 %574 }
 0x4b0   :  { %v591_v45 = vpop.permute.xlu0 %590 }
 0x4b1   :  { %v593_v22 = vmul.f32 %v591_v45, %v3292_v9  ;;  %v594_v53 = vmul.f32 %v591_v45, %v3297_v10  ;;  %v595_v7 = vmul.f32 %v591_v45, %v3312_v17  ;;  %v596_v50 = vmul.f32 %v591_v45, %v3287_v8 }
 0x4b3   :  { %601 = vrot.lane.b32.xlu1 %v593_v22, %s3159_s22  ;;  %603 = vrot.lane.b32.xlu2 %v594_v53, %s3159_s22  ;;  %v3588_v22 = vpop.permute.xlu2 %546 }
 0x4b4   :  { %5603 = vst [vmem:[#allocation37_spill] sm:$0xff] %v3588_v22 }
 0x4b8   :  { %v621_v41 = vpop.permute.xlu0 %620 }
 0x4b9   :  { %v625_v31 = vmul.f32 %v621_v41, %v3317_v18  ;;  %v623_v59 = vmul.f32 %v621_v41, %v3327_v24  ;;  %v624_v26 = vmul.f32 %v621_v41, %v3307_v16  ;;  %v626_v40 = vmul.f32 %v621_v41, %v3334_v28 }
 0x4bb   :  { %605 = vrot.lane.b32.xlu1 %v595_v7, %s3159_s22  ;;  %635 = vrot.lane.b32.xlu0 %v625_v31, %s3159_s22  ;;  %v3590_v53 = vpop.permute.xlu2 %572 }
 0x4bc   :  { %607 = vrot.lane.b32.xlu2 %v596_v50, %s3159_s22 }
 0x4c3   :  { %631 = vrot.lane.b32.xlu1 %v623_v59, %s3159_s22  ;;  %v3592_v15 = vpop.permute.xlu2 %578 }
 0x4c4   :  { %633 = vrot.lane.b32.xlu2 %v624_v26, %s3159_s22  ;;  %5604 = vst [vmem:[#allocation38_spill] sm:$0xff] %v3592_v15  ;;  %v3605_v15 = vpop.permute.xlu1 %576 }
 0x4c5   :  { %5606 = vst [vmem:[#allocation40_spill] sm:$0xff] %v3605_v15 }
 0x4cb   :  { %637 = vrot.lane.b32.xlu1 %v626_v40, %s3159_s22  ;;  %s3211_s22 = smov 17  }
 0x4cc   :  { %649 = vperm.xlu2 %3035, %v3266_v2  }
 0x4d4   :  { %3038 = vset.pattern.permute.xlu2 %v3162_v5 }
 0x50d   :  { %v3594_v45 = vpop.permute.xlu2 %603 }
 0x516   :  { %v3596_v50 = vpop.permute.xlu2 %607 }
 0x517   :  { %5605 = vst [vmem:[#allocation39_spill] sm:$0xff] %v3596_v50 }
 0x51e   :  { %v3598_v31 = vpop.permute.xlu2 %633 }
 0x525   :  { %v3607_v50 = vpop.permute.xlu1 %601 }
 0x526   :  { %v650_v7 = vpop.permute.xlu2 %649 }
 0x527   :  { %v654_v26 = vmul.f32 %v650_v7, %v3312_v17  ;;  %v653_v41 = vmul.f32 %v650_v7, %v3297_v10  ;;  %v652_v40 = vmul.f32 %v650_v7, %v3292_v9  ;;  %v655_v59 = vmul.f32 %v650_v7, %v3287_v8 }
 0x529   :  { %664 = vrot.lane.b32.xlu2 %v654_v26, %s3160_s23  ;;  %662 = vrot.lane.b32.xlu1 %v653_v41, %s3160_s23 }
 0x52a   :  { %660 = vrot.lane.b32.xlu0 %v652_v40, %s3160_s23 }
 0x52d   :  { %v3609_v22 = vpop.permute.xlu1 %605  ;;  %v3623_v13 = vpop.permute.xlu0 %635 }
 0x52e   :  { %5607 = vst [vmem:[#allocation41_spill] sm:$0xff] %v3609_v22 }
 0x52f   :  { %5609 = vst [vmem:[#allocation43_spill] sm:$0xff] %v3623_v13 }
 0x531   :  { %679 = vperm.xlu1 %3036, %v3274_v4  }
 0x532   :  { %666 = vrot.lane.b32.xlu0 %v655_v59, %s3160_s23 }
 0x535   :  { %v3611_v52 = vpop.permute.xlu1 %631 }
 0x539   :  { %3039 = vset.pattern.permute.xlu1 %v3162_v5 }
 0x53d   :  { %v3613_v33 = vpop.permute.xlu1 %637 }
 0x53e   :  { %5608 = vst [vmem:[#allocation42_spill] sm:$0xff] %v3613_v33 }
 0x59b   :  { %v3615_v26 = vpop.permute.xlu1 %662 }
 0x59c   :  { %v3625_v33 = vpop.permute.xlu0 %660 }
 0x59d   :  { %5610 = vst [vmem:[#allocation44_spill] sm:$0xff] %v3625_v33 }
 0x5a3   :  { %v680_v41 = vpop.permute.xlu1 %679 }
 0x5a4   :  { %v684_v7 = vmul.f32 %v680_v41, %v3317_v18  ;;  %v682_v40 = vmul.f32 %v680_v41, %v3327_v24  ;;  %v683_v59 = vmul.f32 %v680_v41, %v3307_v16  ;;  %v685_v22 = vmul.f32 %v680_v41, %v3334_v28  ;;  %v3627_v15 = vpop.permute.xlu0 %666 }
 0x5a5   :  { %5611 = vst [vmem:[#allocation45_spill] sm:$0xff] %v3627_v15 }
 0x5a6   :  { %694 = vrot.lane.b32.xlu1 %v684_v7, %s3160_s23  ;;  %690 = vrot.lane.b32.xlu2 %v682_v40, %s3160_s23 }
 0x5a7   :  { %692 = vrot.lane.b32.xlu0 %v683_v59, %s3160_s23 }
 0x5ae   :  { %696 = vrot.lane.b32.xlu2 %v685_v22, %s3160_s23  ;;  %s3212_s23 = smov 16  }
 0x5af   :  { %708 = vperm.xlu0 %3037, %v3266_v2  }
 0x5b7   :  { %738 = vperm.xlu0 %3037, %v3274_v4  }
 0x619   :  { %v3629_v0 = vpop.permute.xlu0 %692 }
 0x61a   :  { %5612 = vst [vmem:[#allocation46_spill] sm:$0xff] %v3629_v0 }
 0x621   :  { %v709_v7 = vpop.permute.xlu0 %708 }
 0x622   :  { %v712_v40 = vmul.f32 %v709_v7, %v3297_v10  ;;  %v711_v22 = vmul.f32 %v709_v7, %v3292_v9  ;;  %v714_v59 = vmul.f32 %v709_v7, %v3287_v8  ;;  %v713_v13 = vmul.f32 %v709_v7, %v3312_v17 }
 0x624   :  { %721 = vrot.lane.b32.xlu2 %v712_v40, %s3163_s24  ;;  %719 = vrot.lane.b32.xlu1 %v711_v22, %s3163_s24  ;;  %v3640_v40 = vpop.permute.xlu2 %664 }
 0x625   :  { %5613 = vst [vmem:[#allocation47_spill] sm:$0xff] %v3640_v40 }
 0x629   :  { %v739_v41 = vpop.permute.xlu0 %738 }
 0x62a   :  { %v743_v15 = vmul.f32 %v739_v41, %v3317_v18  ;;  %v742_v5 = vmul.f32 %v739_v41, %v3307_v16  ;;  %v741_v37 = vmul.f32 %v739_v41, %v3327_v24  ;;  %v744_v0 = vmul.f32 %v739_v41, %v3334_v28 }
 0x62c   :  { %725 = vrot.lane.b32.xlu2 %v714_v59, %s3163_s24  ;;  %723 = vrot.lane.b32.xlu1 %v713_v13, %s3163_s24  ;;  %v3642_v22 = vpop.permute.xlu2 %690 }
 0x62d   :  { %753 = vrot.lane.b32.xlu0 %v743_v15, %s3163_s24  ;;  %5614 = vst [vmem:[#allocation48_spill] sm:$0xff] %v3642_v22 }
 0x634   :  { %751 = vrot.lane.b32.xlu2 %v742_v5, %s3163_s24  ;;  %749 = vrot.lane.b32.xlu1 %v741_v37, %s3163_s24  ;;  %v3644_v7 = vpop.permute.xlu2 %696 }
 0x635   :  { %5615 = vst [vmem:[#allocation49_spill] sm:$0xff] %v3644_v7  ;;  %v3657_v7 = vpop.permute.xlu1 %694 }
 0x636   :  { %5619 = vst [vmem:[#allocation53_spill] sm:$0xff] %v3657_v7 }
 0x63c   :  { %767 = vperm.xlu2 %3038, %v3266_v2   ;;  %755 = vrot.lane.b32.xlu1 %v744_v0, %s3163_s24  ;;  %s3215_s24 = smov 15  }
 0x67e   :  { %v3646_v59 = vpop.permute.xlu2 %721 }
 0x67f   :  { %5616 = vst [vmem:[#allocation50_spill] sm:$0xff] %v3646_v59 }
 0x686   :  { %v3648_v15 = vpop.permute.xlu2 %725 }
 0x687   :  { %5617 = vst [vmem:[#allocation51_spill] sm:$0xff] %v3648_v15 }
 0x68e   :  { %v3650_v13 = vpop.permute.xlu2 %751 }
 0x68f   :  { %5618 = vst [vmem:[#allocation52_spill] sm:$0xff] %v3650_v13  ;;  %v3165_v13 = vmov 14  }
 0x690   :  { %3040 = vset.pattern.permute.xlu0 %v3165_v13 }
 0x696   :  { %v768_v33 = vpop.permute.xlu2 %767  ;;  %v3659_v15 = vpop.permute.xlu1 %719 }
 0x697   :  { %v772_v37 = vmul.f32 %v768_v33, %v3312_v17  ;;  %v770_v41 = vmul.f32 %v768_v33, %v3292_v9  ;;  %v771_v5 = vmul.f32 %v768_v33, %v3297_v10  ;;  %v773_v0 = vmul.f32 %v768_v33, %v3287_v8  ;;  %5620 = vst [vmem:[#allocation54_spill] sm:$0xff] %v3659_v15 }
 0x699   :  { %782 = vrot.lane.b32.xlu2 %v772_v37, %s3164_s25  ;;  %778 = vrot.lane.b32.xlu0 %v770_v41, %s3164_s25 }
 0x69a   :  { %780 = vrot.lane.b32.xlu1 %v771_v5, %s3164_s25 }
 0x69e   :  { %v3661_v40 = vpop.permute.xlu1 %723 }
 0x69f   :  { %5621 = vst [vmem:[#allocation55_spill] sm:$0xff] %v3661_v40  ;;  %v3675_v13 = vpop.permute.xlu0 %753 }
 0x6a0   :  { %5625 = vst [vmem:[#allocation59_spill] sm:$0xff] %v3675_v13 }
 0x6a1   :  { %784 = vrot.lane.b32.xlu0 %v773_v0, %s3164_s25 }
 0x6a2   :  { %797 = vperm.xlu1 %3039, %v3274_v4  }
 0x6a6   :  { %v3663_v59 = vpop.permute.xlu1 %749 }
 0x6a7   :  { %5622 = vst [vmem:[#allocation56_spill] sm:$0xff] %v3663_v59 }
 0x6ae   :  { %v3665_v22 = vpop.permute.xlu1 %755 }
 0x6af   :  { %5623 = vst [vmem:[#allocation57_spill] sm:$0xff] %v3665_v22 }
 0x70b   :  { %v3677_v22 = vpop.permute.xlu0 %778 }
 0x70c   :  { %v3667_v37 = vpop.permute.xlu1 %780  ;;  %5626 = vst [vmem:[#allocation60_spill] sm:$0xff] %v3677_v22 }
 0x70d   :  { %5624 = vst [vmem:[#allocation58_spill] sm:$0xff] %v3667_v37  ;;  %v3166_v37 = vmov 15  }
 0x70e   :  { %3041 = vset.pattern.permute.xlu2 %v3166_v37  ;;  %3042 = vset.pattern.permute.xlu1 %v3166_v37 }
 0x713   :  { %v3679_v7 = vpop.permute.xlu0 %784 }
 0x714   :  { %v798_v41 = vpop.permute.xlu1 %797  ;;  %5627 = vst [vmem:[#allocation61_spill] sm:$0xff] %v3679_v7 }
 0x715   :  { %v802_v33 = vmul.f32 %v798_v41, %v3317_v18  ;;  %v801_v5 = vmul.f32 %v798_v41, %v3307_v16  ;;  %v800_v0 = vmul.f32 %v798_v41, %v3327_v24  ;;  %v803_v40 = vmul.f32 %v798_v41, %v3334_v28 }
 0x717   :  { %812 = vrot.lane.b32.xlu1 %v802_v33, %s3164_s25  ;;  %810 = vrot.lane.b32.xlu0 %v801_v5, %s3164_s25 }
 0x718   :  { %808 = vrot.lane.b32.xlu2 %v800_v0, %s3164_s25 }
 0x71f   :  { %826 = vperm.xlu0 %3040, %v3266_v2  }
 0x720   :  { %814 = vrot.lane.b32.xlu2 %v803_v40, %s3164_s25 }
 0x727   :  { %856 = vperm.xlu0 %3040, %v3274_v4  }
 0x789   :  { %v3681_v59 = vpop.permute.xlu0 %810 }
 0x78a   :  { %5628 = vst [vmem:[#allocation62_spill] sm:$0xff] %v3681_v59 }
 0x791   :  { %v827_v33 = vpop.permute.xlu0 %826 }
 0x792   :  { %v829_v5 = vmul.f32 %v827_v33, %v3292_v9  ;;  %v830_v41 = vmul.f32 %v827_v33, %v3297_v10  ;;  %v831_v0 = vmul.f32 %v827_v33, %v3312_v17  ;;  %v832_v7 = vmul.f32 %v827_v33, %v3287_v8 }
 0x794   :  { %837 = vrot.lane.b32.xlu1 %v829_v5, %s3167_s26  ;;  %839 = vrot.lane.b32.xlu2 %v830_v41, %s3167_s26  ;;  %v3692_v5 = vpop.permute.xlu2 %782 }
 0x795   :  { %5629 = vst [vmem:[#allocation63_spill] sm:$0xff] %v3692_v5 }
 0x799   :  { %v857_v40 = vpop.permute.xlu0 %856 }
 0x79a   :  { %v861_v13 = vmul.f32 %v857_v40, %v3317_v18  ;;  %v859_v37 = vmul.f32 %v857_v40, %v3327_v24  ;;  %v860_v59 = vmul.f32 %v857_v40, %v3307_v16  ;;  %v862_v22 = vmul.f32 %v857_v40, %v3334_v28 }
 0x79c   :  { %841 = vrot.lane.b32.xlu1 %v831_v0, %s3167_s26  ;;  %871 = vrot.lane.b32.xlu0 %v861_v13, %s3167_s26  ;;  %v3694_v41 = vpop.permute.xlu2 %808 }
 0x79d   :  { %843 = vrot.lane.b32.xlu2 %v832_v7, %s3167_s26  ;;  %5630 = vst [vmem:[#allocation64_spill] sm:$0xff] %v3694_v41 }
 0x7a4   :  { %867 = vrot.lane.b32.xlu1 %v859_v37, %s3167_s26  ;;  %v3696_v15 = vpop.permute.xlu2 %814 }
 0x7a5   :  { %869 = vrot.lane.b32.xlu2 %v860_v59, %s3167_s26  ;;  %5631 = vst [vmem:[#allocation65_spill] sm:$0xff] %v3696_v15  ;;  %v3709_v15 = vpop.permute.xlu1 %812 }
 0x7a6   :  { %5635 = vst [vmem:[#allocation69_spill] sm:$0xff] %v3709_v15 }
 0x7ac   :  { %873 = vrot.lane.b32.xlu1 %v862_v22, %s3167_s26 }
 0x7ad   :  { %885 = vperm.xlu2 %3041, %v3266_v2  }
 0x7ee   :  { %v3698_v33 = vpop.permute.xlu2 %839 }
 0x7ef   :  { %5632 = vst [vmem:[#allocation66_spill] sm:$0xff] %v3698_v33 }
 0x7f7   :  { %v3700_v7 = vpop.permute.xlu2 %843 }
 0x7f8   :  { %5633 = vst [vmem:[#allocation67_spill] sm:$0xff] %v3700_v7 }
 0x7ff   :  { %v3702_v13 = vpop.permute.xlu2 %869 }
 0x800   :  { %5634 = vst [vmem:[#allocation68_spill] sm:$0xff] %v3702_v13  ;;  %v3169_v13 = vmov 16  }
 0x801   :  { %3043 = vset.pattern.permute.xlu0 %v3169_v13 }
 0x806   :  { %v3711_v7 = vpop.permute.xlu1 %837 }
 0x807   :  { %v886_v0 = vpop.permute.xlu2 %885  ;;  %5636 = vst [vmem:[#allocation70_spill] sm:$0xff] %v3711_v7 }
 0x808   :  { %v890_v59 = vmul.f32 %v886_v0, %v3312_v17  ;;  %v889_v40 = vmul.f32 %v886_v0, %v3297_v10  ;;  %v888_v22 = vmul.f32 %v886_v0, %v3292_v9  ;;  %v891_v37 = vmul.f32 %v886_v0, %v3287_v8 }
 0x80a   :  { %900 = vrot.lane.b32.xlu2 %v890_v59, %s3168_s27  ;;  %898 = vrot.lane.b32.xlu1 %v889_v40, %s3168_s27 }
 0x80b   :  { %896 = vrot.lane.b32.xlu0 %v888_v22, %s3168_s27 }
 0x80e   :  { %v3713_v5 = vpop.permute.xlu1 %841  ;;  %v3727_v13 = vpop.permute.xlu0 %871 }
 0x80f   :  { %5637 = vst [vmem:[#allocation71_spill] sm:$0xff] %v3713_v5 }
 0x810   :  { %5641 = vst [vmem:[#allocation75_spill] sm:$0xff] %v3727_v13 }
 0x812   :  { %915 = vperm.xlu1 %3042, %v3274_v4  }
 0x813   :  { %902 = vrot.lane.b32.xlu0 %v891_v37, %s3168_s27 }
 0x816   :  { %v3715_v33 = vpop.permute.xlu1 %867 }
 0x817   :  { %5638 = vst [vmem:[#allocation72_spill] sm:$0xff] %v3715_v33 }
 0x81e   :  { %v3717_v41 = vpop.permute.xlu1 %873 }
 0x81f   :  { %5639 = vst [vmem:[#allocation73_spill] sm:$0xff] %v3717_v41 }
 0x87c   :  { %v3719_v59 = vpop.permute.xlu1 %898 }
 0x87d   :  { %5640 = vst [vmem:[#allocation74_spill] sm:$0xff] %v3719_v59  ;;  %v3729_v41 = vpop.permute.xlu0 %896  ;;  %v3170_v59 = vmov 17  }
 0x87e   :  { %5642 = vst [vmem:[#allocation76_spill] sm:$0xff] %v3729_v41  ;;  %3044 = vset.pattern.permute.xlu2 %v3170_v59  ;;  %3045 = vset.pattern.permute.xlu1 %v3170_v59 }
 0x884   :  { %v916_v40 = vpop.permute.xlu1 %915 }
 0x885   :  { %v920_v0 = vmul.f32 %v916_v40, %v3317_v18  ;;  %v918_v22 = vmul.f32 %v916_v40, %v3327_v24  ;;  %v919_v37 = vmul.f32 %v916_v40, %v3307_v16  ;;  %v921_v5 = vmul.f32 %v916_v40, %v3334_v28  ;;  %v3731_v15 = vpop.permute.xlu0 %902 }
 0x886   :  { %5643 = vst [vmem:[#allocation77_spill] sm:$0xff] %v3731_v15 }
 0x887   :  { %930 = vrot.lane.b32.xlu1 %v920_v0, %s3168_s27  ;;  %926 = vrot.lane.b32.xlu2 %v918_v22, %s3168_s27 }
 0x888   :  { %928 = vrot.lane.b32.xlu0 %v919_v37, %s3168_s27 }
 0x88f   :  { %932 = vrot.lane.b32.xlu2 %v921_v5, %s3168_s27 }
 0x890   :  { %944 = vperm.xlu0 %3043, %v3266_v2  }
 0x898   :  { %974 = vperm.xlu0 %3043, %v3274_v4  }
 0x8fa   :  { %v3733_v33 = vpop.permute.xlu0 %928 }
 0x8fb   :  { %5644 = vst [vmem:[#allocation78_spill] sm:$0xff] %v3733_v33 }
 0x902   :  { %v945_v0 = vpop.permute.xlu0 %944 }
 0x903   :  { %v948_v22 = vmul.f32 %v945_v0, %v3297_v10  ;;  %v947_v5 = vmul.f32 %v945_v0, %v3292_v9  ;;  %v950_v40 = vmul.f32 %v945_v0, %v3287_v8  ;;  %v949_v37 = vmul.f32 %v945_v0, %v3312_v17 }
 0x905   :  { %957 = vrot.lane.b32.xlu2 %v948_v22, %s3171_s28  ;;  %955 = vrot.lane.b32.xlu1 %v947_v5, %s3171_s28  ;;  %v3744_v22 = vpop.permute.xlu2 %900 }
 0x906   :  { %5645 = vst [vmem:[#allocation79_spill] sm:$0xff] %v3744_v22 }
 0x90a   :  { %v975_v4 = vpop.permute.xlu0 %974 }
 0x90b   :  { %v979_v15 = vmul.f32 %v975_v4, %v3317_v18  ;;  %v978_v59 = vmul.f32 %v975_v4, %v3307_v16  ;;  %v977_v13 = vmul.f32 %v975_v4, %v3327_v24  ;;  %v980_v33 = vmul.f32 %v975_v4, %v3334_v28 }
 0x90d   :  { %961 = vrot.lane.b32.xlu2 %v950_v40, %s3171_s28  ;;  %959 = vrot.lane.b32.xlu1 %v949_v37, %s3171_s28  ;;  %v3746_v5 = vpop.permute.xlu2 %926 }
 0x90e   :  { %989 = vrot.lane.b32.xlu0 %v979_v15, %s3171_s28  ;;  %5646 = vst [vmem:[#allocation80_spill] sm:$0xff] %v3746_v5 }
 0x915   :  { %987 = vrot.lane.b32.xlu2 %v978_v59, %s3171_s28  ;;  %985 = vrot.lane.b32.xlu1 %v977_v13, %s3171_s28  ;;  %v3748_v0 = vpop.permute.xlu2 %932  ;;  %v3763_v59 = vld [vmem:[%s5416_s3] sm:$0xff] }
 0x916   :  { %5647 = vst [vmem:[#allocation81_spill] sm:$0xff] %v3748_v0 }
 0x91d   :  { %1003 = vperm.xlu2 %3044, %v3266_v2   ;;  %991 = vrot.lane.b32.xlu1 %v980_v33, %s3171_s28 }
 0x95f   :  { %v3750_v40 = vpop.permute.xlu2 %957 }
 0x960   :  { %5648 = vst [vmem:[#allocation82_spill] sm:$0xff] %v3750_v40 }
 0x967   :  { %v3752_v15 = vpop.permute.xlu2 %961 }
 0x968   :  { %5649 = vst [vmem:[#allocation83_spill] sm:$0xff] %v3752_v15  ;;  %v3766_v15 = vpop.permute.xlu1 %930 }
 0x969   :  { %5651 = vst [vmem:[#allocation85_spill] sm:$0xff] %v3766_v15  ;;  %v3818_v15 = vld [vmem:[%s5418_s1 + $0x10] sm:$0xff] }
 0x96f   :  { %v3754_v37 = vpop.permute.xlu2 %987 }
 0x970   :  { %5650 = vst [vmem:[#allocation84_spill] sm:$0xff] %v3754_v37 }
 0x977   :  { %v1004_v41 = vpop.permute.xlu2 %1003 }
 0x978   :  { %v1008_v13 = vmul.f32 %v1004_v41, %v3312_v17  ;;  %v1006_v4 = vmul.f32 %v1004_v41, %v3292_v9  ;;  %v1007_v2 = vmul.f32 %v1004_v41, %v3297_v10  ;;  %v1009_v33 = vmul.f32 %v1004_v41, %v3287_v8  ;;  %v3768_v17 = vpop.permute.xlu1 %955 }
 0x979   :  { %5652 = vst [vmem:[#allocation86_spill] sm:$0xff] %v3768_v17  ;;  %v3173_v10 = vmov 18  }
 0x97a   :  { %1018 = vrot.lane.b32.xlu2 %v1008_v13, %s3172_s29  ;;  %1014 = vrot.lane.b32.xlu0 %v1006_v4, %s3172_s29 }
 0x97b   :  { %1016 = vrot.lane.b32.xlu1 %v1007_v2, %s3172_s29  ;;  %3046 = vset.pattern.permute.xlu0 %v3173_v10  ;;  %v3785_v10 = vld [vmem:[%s5415_s2] sm:$0xff] }
 0x980   :  { %v3770_v9 = vpop.permute.xlu1 %959 }
 0x981   :  { %5653 = vst [vmem:[#allocation87_spill] sm:$0xff] %v3770_v9 }
 0x982   :  { %1020 = vrot.lane.b32.xlu0 %v1009_v33, %s3172_s29 }
 0x983   :  { %1033 = vperm.xlu1 %3045, %v3763_v59  }
 0x988   :  { %v3772_v13 = vpop.permute.xlu1 %985 }
 0x989   :  { %5654 = vst [vmem:[#allocation88_spill] sm:$0xff] %v3772_v13 }
 0x990   :  { %v3774_v4 = vpop.permute.xlu1 %991 }
 0x991   :  { %5655 = vst [vmem:[#allocation89_spill] sm:$0xff] %v3774_v4  ;;  %v3812_v4 = vld [vmem:[%s5417_s0 + $0x10] sm:$0xff] }
 0x9ed   :  { %v3776_v8 = vpop.permute.xlu1 %1016 }
 0x9ee   :  { %5656 = vst [vmem:[#allocation90_spill] sm:$0xff] %v3776_v8  ;;  %v3836_v8 = vld [vmem:[%s5418_s1 + $0x8] sm:$0xff] }
 0x9f5   :  { %v1034_v41 = vpop.permute.xlu1 %1033 }
 0x9f6   :  { %v1038_v2 = vmul.f32 %v1034_v41, %v3317_v18  ;;  %v1037_v33 = vmul.f32 %v1034_v41, %v3307_v16  ;;  %v1036_v0 = vmul.f32 %v1034_v41, %v3327_v24  ;;  %v1039_v9 = vmul.f32 %v1034_v41, %v3334_v28  ;;  %v3789_v18 = vpop.permute.xlu0 %989  ;;  %v3800_v41 = vld [vmem:[%s5417_s0] sm:$0xff] }
 0x9f7   :  { %5657 = vst [vmem:[#allocation91_spill] sm:$0xff] %v3789_v18 }
 0x9f8   :  { %1048 = vrot.lane.b32.xlu1 %v1038_v2, %s3172_s29  ;;  %1046 = vrot.lane.b32.xlu0 %v1037_v33, %s3172_s29  ;;  %v3174_v2 = vmov 19   ;;  %v3806_v33 = vld [vmem:[%s5417_s0 + $0x8] sm:$0xff] }
 0x9f9   :  { %1044 = vrot.lane.b32.xlu2 %v1036_v0, %s3172_s29  ;;  %3048 = vset.pattern.permute.xlu1 %v3174_v2 }
 0x9fa   :  { %3047 = vset.pattern.permute.xlu2 %v3174_v2 }
 0x9fe   :  { %v3791_v16 = vpop.permute.xlu0 %1014 }
 0x9ff   :  { %5658 = vst [vmem:[#allocation92_spill] sm:$0xff] %v3791_v16 }
 0xa00   :  { %1062 = vperm.xlu0 %3046, %v3785_v10  }
 0xa01   :  { %1050 = vrot.lane.b32.xlu2 %v1039_v9, %s3172_s29  ;;  %s3176_s29 = smov 79  }
 0xa06   :  { %v3793_v24 = vpop.permute.xlu0 %1020 }
 0xa07   :  { %5659 = vst [vmem:[#allocation93_spill] sm:$0xff] %v3793_v24 }
 0xa08   :  { %1092 = vperm.xlu0 %3046, %v3763_v59  }
 0xa6a   :  { %v3795_v28 = vpop.permute.xlu0 %1046 }
 0xa6b   :  { %5660 = vst [vmem:[#allocation94_spill] sm:$0xff] %v3795_v28  ;;  %v3830_v28 = vld [vmem:[%s5418_s1] sm:$0xff] }
 0xa72   :  { %v1063_v0 = vpop.permute.xlu0 %1062 }
 0xa73   :  { %v1065_v9 = vmul.f32 %v3800_v41, %v1063_v0  ;;  %v1066_v24 = vmul.f32 %v3806_v33, %v1063_v0  ;;  %v1067_v18 = vmul.f32 %v3812_v4, %v1063_v0 }
 0xa75   :  { %1073 = vrot.lane.b32.xlu1 %v1065_v9, %s3175_s13  ;;  %1075 = vrot.lane.b32.xlu2 %v1066_v24, %s3175_s13  ;;  %v3824_v9 = vld [vmem:[%s5417_s0 + $0x18] sm:$0xff] }
 0xa76   :  { %v1068_v24 = vmul.f32 %v3824_v9, %v1063_v0  ;;  %v3846_v0 = vpop.permute.xlu2 %1018 }
 0xa77   :  { %5661 = vst [vmem:[#allocation95_spill] sm:$0xff] %v3846_v0 }
 0xa7a   :  { %v1093_v2 = vpop.permute.xlu0 %1092 }
 0xa7b   :  { %v1097_v22 = vmul.f32 %v3818_v15, %v1093_v2  ;;  %v1095_v16 = vmul.f32 %v3830_v28, %v1093_v2  ;;  %v1096_v13 = vmul.f32 %v3836_v8, %v1093_v2 }
 0xa7d   :  { %1077 = vrot.lane.b32.xlu1 %v1067_v18, %s3175_s13  ;;  %1107 = vrot.lane.b32.xlu0 %v1097_v22, %s3175_s13  ;;  %v3842_v22 = vld [vmem:[%s5418_s1 + $0x18] sm:$0xff] }
 0xa7e   :  { %1079 = vrot.lane.b32.xlu2 %v1068_v24, %s3175_s13  ;;  %v1098_v18 = vmul.f32 %v3842_v22, %v1093_v2  ;;  %v3848_v24 = vpop.permute.xlu2 %1044 }
 0xa7f   :  { %5662 = vst [vmem:[#allocation96_spill] sm:$0xff] %v3848_v24 }
 0xa85   :  { %1103 = vrot.lane.b32.xlu1 %v1095_v16, %s3175_s13 }
 0xa86   :  { %1105 = vrot.lane.b32.xlu2 %v1096_v13, %s3175_s13  ;;  %v3850_v37 = vpop.permute.xlu2 %1050 }
 0xa87   :  { %5663 = vst [vmem:[#allocation97_spill] sm:$0xff] %v3850_v37  ;;  %v3863_v37 = vpop.permute.xlu1 %1048 }
 0xa88   :  { %5667 = vst [vmem:[#allocation101_spill] sm:$0xff] %v3863_v37 }
 0xa8d   :  { %1109 = vrot.lane.b32.xlu1 %v1098_v18, %s3175_s13  ;;  %s3195_s13 = smov 40  }
 0xa8e   :  { %1121 = vperm.xlu2 %3047, %v3785_v10  }
 0xacf   :  { %v3852_v17 = vpop.permute.xlu2 %1075 }
 0xad0   :  { %5664 = vst [vmem:[#allocation98_spill] sm:$0xff] %v3852_v17  ;;  %v3177_v17 = vmov 20  }
 0xad1   :  { %3049 = vset.pattern.permute.xlu0 %v3177_v17 }
 0xad8   :  { %v3854_v16 = vpop.permute.xlu2 %1079 }
 0xad9   :  { %5665 = vst [vmem:[#allocation99_spill] sm:$0xff] %v3854_v16 }
 0xae0   :  { %v3856_v13 = vpop.permute.xlu2 %1105 }
 0xae1   :  { %5666 = vst [vmem:[#allocation100_spill] sm:$0xff] %v3856_v13 }
 0xae7   :  { %v3865_v16 = vpop.permute.xlu1 %1073 }
 0xae8   :  { %v1122_v40 = vpop.permute.xlu2 %1121  ;;  %5668 = vst [vmem:[#allocation102_spill] sm:$0xff] %v3865_v16 }
 0xae9   :  { %v1126_v5 = vmul.f32 %v3812_v4, %v1122_v40  ;;  %v1125_v2 = vmul.f32 %v3806_v33, %v1122_v40  ;;  %v1124_v18 = vmul.f32 %v3800_v41, %v1122_v40  ;;  %v1127_v0 = vmul.f32 %v3824_v9, %v1122_v40 }
 0xaeb   :  { %1136 = vrot.lane.b32.xlu2 %v1126_v5, %s3176_s29  ;;  %1134 = vrot.lane.b32.xlu1 %v1125_v2, %s3176_s29 }
 0xaec   :  { %1132 = vrot.lane.b32.xlu0 %v1124_v18, %s3176_s29 }
 0xaef   :  { %v3867_v13 = vpop.permute.xlu1 %1077  ;;  %v3881_v17 = vpop.permute.xlu0 %1107 }
 0xaf0   :  { %5669 = vst [vmem:[#allocation103_spill] sm:$0xff] %v3867_v13 }
 0xaf1   :  { %5673 = vst [vmem:[#allocation107_spill] sm:$0xff] %v3881_v17 }
 0xaf3   :  { %1151 = vperm.xlu1 %3048, %v3763_v59  }
 0xaf4   :  { %1138 = vrot.lane.b32.xlu0 %v1127_v0, %s3176_s29 }
 0xaf7   :  { %v3869_v24 = vpop.permute.xlu1 %1103 }
 0xaf8   :  { %5670 = vst [vmem:[#allocation104_spill] sm:$0xff] %v3869_v24 }
 0xaff   :  { %v3871_v7 = vpop.permute.xlu1 %1109 }
 0xb00   :  { %5671 = vst [vmem:[#allocation105_spill] sm:$0xff] %v3871_v7 }
 0xb5d   :  { %v3873_v5 = vpop.permute.xlu1 %1134 }
 0xb5e   :  { %5672 = vst [vmem:[#allocation106_spill] sm:$0xff] %v3873_v5  ;;  %v3883_v7 = vpop.permute.xlu0 %1132  ;;  %v3178_v5 = vmov 21  }
 0xb5f   :  { %5674 = vst [vmem:[#allocation108_spill] sm:$0xff] %v3883_v7  ;;  %3050 = vset.pattern.permute.xlu2 %v3178_v5  ;;  %3051 = vset.pattern.permute.xlu1 %v3178_v5 }
 0xb65   :  { %v1152_v2 = vpop.permute.xlu1 %1151 }
 0xb66   :  { %v1156_v40 = vmul.f32 %v3818_v15, %v1152_v2  ;;  %v1154_v18 = vmul.f32 %v3830_v28, %v1152_v2  ;;  %v1155_v0 = vmul.f32 %v3836_v8, %v1152_v2  ;;  %v1157_v13 = vmul.f32 %v3842_v22, %v1152_v2  ;;  %v3885_v37 = vpop.permute.xlu0 %1138 }
 0xb67   :  { %5675 = vst [vmem:[#allocation109_spill] sm:$0xff] %v3885_v37 }
 0xb68   :  { %1166 = vrot.lane.b32.xlu1 %v1156_v40, %s3176_s29  ;;  %1162 = vrot.lane.b32.xlu2 %v1154_v18, %s3176_s29 }
 0xb69   :  { %1164 = vrot.lane.b32.xlu0 %v1155_v0, %s3176_s29 }
 0xb70   :  { %1168 = vrot.lane.b32.xlu2 %v1157_v13, %s3176_s29 }
 0xb71   :  { %1180 = vperm.xlu0 %3049, %v3785_v10  }
 0xb79   :  { %1210 = vperm.xlu0 %3049, %v3763_v59  }
 0xbdb   :  { %v3887_v24 = vpop.permute.xlu0 %1164 }
 0xbdc   :  { %5676 = vst [vmem:[#allocation110_spill] sm:$0xff] %v3887_v24 }
 0xbe3   :  { %v1181_v40 = vpop.permute.xlu0 %1180 }
 0xbe4   :  { %v1184_v18 = vmul.f32 %v3806_v33, %v1181_v40  ;;  %v1183_v13 = vmul.f32 %v3800_v41, %v1181_v40  ;;  %v1186_v0 = vmul.f32 %v3824_v9, %v1181_v40  ;;  %v1185_v17 = vmul.f32 %v3812_v4, %v1181_v40 }
 0xbe6   :  { %1193 = vrot.lane.b32.xlu2 %v1184_v18, %s3179_s30  ;;  %1191 = vrot.lane.b32.xlu1 %v1183_v13, %s3179_s30  ;;  %v3898_v18 = vpop.permute.xlu2 %1136 }
 0xbe7   :  { %5677 = vst [vmem:[#allocation111_spill] sm:$0xff] %v3898_v18 }
 0xbeb   :  { %v1211_v2 = vpop.permute.xlu0 %1210 }
 0xbec   :  { %v1215_v37 = vmul.f32 %v3818_v15, %v1211_v2  ;;  %v1214_v5 = vmul.f32 %v3836_v8, %v1211_v2  ;;  %v1213_v24 = vmul.f32 %v3830_v28, %v1211_v2  ;;  %v1216_v7 = vmul.f32 %v3842_v22, %v1211_v2 }
 0xbee   :  { %1197 = vrot.lane.b32.xlu2 %v1186_v0, %s3179_s30  ;;  %1195 = vrot.lane.b32.xlu1 %v1185_v17, %s3179_s30  ;;  %v3900_v13 = vpop.permute.xlu2 %1162 }
 0xbef   :  { %1225 = vrot.lane.b32.xlu0 %v1215_v37, %s3179_s30  ;;  %5678 = vst [vmem:[#allocation112_spill] sm:$0xff] %v3900_v13 }
 0xbf6   :  { %1223 = vrot.lane.b32.xlu2 %v1214_v5, %s3179_s30  ;;  %1221 = vrot.lane.b32.xlu1 %v1213_v24, %s3179_s30  ;;  %v3902_v40 = vpop.permute.xlu2 %1168 }
 0xbf7   :  { %5679 = vst [vmem:[#allocation113_spill] sm:$0xff] %v3902_v40  ;;  %v3915_v40 = vpop.permute.xlu1 %1166 }
 0xbf8   :  { %5683 = vst [vmem:[#allocation117_spill] sm:$0xff] %v3915_v40 }
 0xbfe   :  { %1239 = vperm.xlu2 %3050, %v3785_v10   ;;  %1227 = vrot.lane.b32.xlu1 %v1216_v7, %s3179_s30  ;;  %s3207_s30 = smov 34  }
 0xc40   :  { %v3904_v0 = vpop.permute.xlu2 %1193 }
 0xc41   :  { %5680 = vst [vmem:[#allocation114_spill] sm:$0xff] %v3904_v0 }
 0xc48   :  { %v3906_v37 = vpop.permute.xlu2 %1197 }
 0xc49   :  { %5681 = vst [vmem:[#allocation115_spill] sm:$0xff] %v3906_v37 }
 0xc50   :  { %v3908_v17 = vpop.permute.xlu2 %1223 }
 0xc51   :  { %5682 = vst [vmem:[#allocation116_spill] sm:$0xff] %v3908_v17  ;;  %v3181_v17 = vmov 22  }
 0xc52   :  { %3052 = vset.pattern.permute.xlu0 %v3181_v17 }
 0xc58   :  { %v1240_v16 = vpop.permute.xlu2 %1239  ;;  %v3917_v37 = vpop.permute.xlu1 %1191 }
 0xc59   :  { %v1244_v24 = vmul.f32 %v3812_v4, %v1240_v16  ;;  %v1242_v2 = vmul.f32 %v3800_v41, %v1240_v16  ;;  %v1243_v5 = vmul.f32 %v3806_v33, %v1240_v16  ;;  %v1245_v7 = vmul.f32 %v3824_v9, %v1240_v16  ;;  %5684 = vst [vmem:[#allocation118_spill] sm:$0xff] %v3917_v37 }
 0xc5b   :  { %1254 = vrot.lane.b32.xlu2 %v1244_v24, %s3180_s6  ;;  %1250 = vrot.lane.b32.xlu0 %v1242_v2, %s3180_s6 }
 0xc5c   :  { %1252 = vrot.lane.b32.xlu1 %v1243_v5, %s3180_s6 }
 0xc60   :  { %v3919_v18 = vpop.permute.xlu1 %1195 }
 0xc61   :  { %5685 = vst [vmem:[#allocation119_spill] sm:$0xff] %v3919_v18  ;;  %v3933_v17 = vpop.permute.xlu0 %1225 }
 0xc62   :  { %5689 = vst [vmem:[#allocation123_spill] sm:$0xff] %v3933_v17 }
 0xc63   :  { %1256 = vrot.lane.b32.xlu0 %v1245_v7, %s3180_s6 }
 0xc64   :  { %1269 = vperm.xlu1 %3051, %v3763_v59  }
 0xc68   :  { %v3921_v0 = vpop.permute.xlu1 %1221 }
 0xc69   :  { %5686 = vst [vmem:[#allocation120_spill] sm:$0xff] %v3921_v0 }
 0xc70   :  { %v3923_v13 = vpop.permute.xlu1 %1227 }
 0xc71   :  { %5687 = vst [vmem:[#allocation121_spill] sm:$0xff] %v3923_v13 }
 0xccd   :  { %v3935_v13 = vpop.permute.xlu0 %1250 }
 0xcce   :  { %v3925_v24 = vpop.permute.xlu1 %1252  ;;  %5690 = vst [vmem:[#allocation124_spill] sm:$0xff] %v3935_v13 }
 0xccf   :  { %5688 = vst [vmem:[#allocation122_spill] sm:$0xff] %v3925_v24  ;;  %v3182_v24 = vmov 23  }
 0xcd0   :  { %3053 = vset.pattern.permute.xlu2 %v3182_v24  ;;  %3054 = vset.pattern.permute.xlu1 %v3182_v24 }
 0xcd5   :  { %v3937_v40 = vpop.permute.xlu0 %1256 }
 0xcd6   :  { %v1270_v2 = vpop.permute.xlu1 %1269  ;;  %5691 = vst [vmem:[#allocation125_spill] sm:$0xff] %v3937_v40 }
 0xcd7   :  { %v1274_v16 = vmul.f32 %v3818_v15, %v1270_v2  ;;  %v1273_v5 = vmul.f32 %v3836_v8, %v1270_v2  ;;  %v1272_v7 = vmul.f32 %v3830_v28, %v1270_v2  ;;  %v1275_v18 = vmul.f32 %v3842_v22, %v1270_v2 }
 0xcd9   :  { %1284 = vrot.lane.b32.xlu1 %v1274_v16, %s3180_s6  ;;  %1282 = vrot.lane.b32.xlu0 %v1273_v5, %s3180_s6 }
 0xcda   :  { %1280 = vrot.lane.b32.xlu2 %v1272_v7, %s3180_s6 }
 0xce1   :  { %1298 = vperm.xlu0 %3052, %v3785_v10  }
 0xce2   :  { %1286 = vrot.lane.b32.xlu2 %v1275_v18, %s3180_s6 }
 0xce9   :  { %1328 = vperm.xlu0 %3052, %v3763_v59  }
 0xd4b   :  { %v3939_v0 = vpop.permute.xlu0 %1282 }
 0xd4c   :  { %5692 = vst [vmem:[#allocation126_spill] sm:$0xff] %v3939_v0 }
 0xd53   :  { %v1299_v16 = vpop.permute.xlu0 %1298 }
 0xd54   :  { %v1301_v5 = vmul.f32 %v3800_v41, %v1299_v16  ;;  %v1302_v2 = vmul.f32 %v3806_v33, %v1299_v16  ;;  %v1303_v7 = vmul.f32 %v3812_v4, %v1299_v16  ;;  %v1304_v40 = vmul.f32 %v3824_v9, %v1299_v16 }
 0xd56   :  { %1309 = vrot.lane.b32.xlu1 %v1301_v5, %s3183_s7  ;;  %1311 = vrot.lane.b32.xlu2 %v1302_v2, %s3183_s7  ;;  %v3950_v5 = vpop.permute.xlu2 %1254 }
 0xd57   :  { %5693 = vst [vmem:[#allocation127_spill] sm:$0xff] %v3950_v5 }
 0xd5b   :  { %v1329_v18 = vpop.permute.xlu0 %1328 }
 0xd5c   :  { %v1333_v17 = vmul.f32 %v3818_v15, %v1329_v18  ;;  %v1331_v24 = vmul.f32 %v3830_v28, %v1329_v18  ;;  %v1332_v0 = vmul.f32 %v3836_v8, %v1329_v18  ;;  %v1334_v13 = vmul.f32 %v3842_v22, %v1329_v18 }
 0xd5e   :  { %1313 = vrot.lane.b32.xlu1 %v1303_v7, %s3183_s7  ;;  %1343 = vrot.lane.b32.xlu0 %v1333_v17, %s3183_s7  ;;  %v3952_v2 = vpop.permute.xlu2 %1280 }
 0xd5f   :  { %1315 = vrot.lane.b32.xlu2 %v1304_v40, %s3183_s7  ;;  %5694 = vst [vmem:[#allocation128_spill] sm:$0xff] %v3952_v2 }
 0xd66   :  { %1339 = vrot.lane.b32.xlu1 %v1331_v24, %s3183_s7  ;;  %v3954_v37 = vpop.permute.xlu2 %1286 }
 0xd67   :  { %1341 = vrot.lane.b32.xlu2 %v1332_v0, %s3183_s7  ;;  %5695 = vst [vmem:[#allocation129_spill] sm:$0xff] %v3954_v37  ;;  %v3967_v37 = vpop.permute.xlu1 %1284 }
 0xd68   :  { %5699 = vst [vmem:[#allocation133_spill] sm:$0xff] %v3967_v37 }
 0xd6e   :  { %1345 = vrot.lane.b32.xlu1 %v1334_v13, %s3183_s7  ;;  %s3219_s7 = smov 13  }
 0xd6f   :  { %1357 = vperm.xlu2 %3053, %v3785_v10  }
 0xdb0   :  { %v3956_v16 = vpop.permute.xlu2 %1311 }
 0xdb1   :  { %5696 = vst [vmem:[#allocation130_spill] sm:$0xff] %v3956_v16 }
 0xdb9   :  { %v3958_v40 = vpop.permute.xlu2 %1315 }
 0xdba   :  { %5697 = vst [vmem:[#allocation131_spill] sm:$0xff] %v3958_v40 }
 0xdc1   :  { %v3960_v17 = vpop.permute.xlu2 %1341 }
 0xdc2   :  { %5698 = vst [vmem:[#allocation132_spill] sm:$0xff] %v3960_v17  ;;  %v3185_v17 = vmov 24  }
 0xdc3   :  { %3055 = vset.pattern.permute.xlu0 %v3185_v17 }
 0xdc8   :  { %v3969_v40 = vpop.permute.xlu1 %1309 }
 0xdc9   :  { %v1358_v7 = vpop.permute.xlu2 %1357  ;;  %5700 = vst [vmem:[#allocation134_spill] sm:$0xff] %v3969_v40 }
 0xdca   :  { %v1362_v0 = vmul.f32 %v3812_v4, %v1358_v7  ;;  %v1361_v18 = vmul.f32 %v3806_v33, %v1358_v7  ;;  %v1360_v13 = vmul.f32 %v3800_v41, %v1358_v7  ;;  %v1363_v24 = vmul.f32 %v3824_v9, %v1358_v7 }
 0xdcc   :  { %1372 = vrot.lane.b32.xlu2 %v1362_v0, %s3184_s8  ;;  %1370 = vrot.lane.b32.xlu1 %v1361_v18, %s3184_s8 }
 0xdcd   :  { %1368 = vrot.lane.b32.xlu0 %v1360_v13, %s3184_s8 }
 0xdd0   :  { %v3971_v5 = vpop.permute.xlu1 %1313  ;;  %v3985_v17 = vpop.permute.xlu0 %1343 }
 0xdd1   :  { %5701 = vst [vmem:[#allocation135_spill] sm:$0xff] %v3971_v5 }
 0xdd2   :  { %5705 = vst [vmem:[#allocation139_spill] sm:$0xff] %v3985_v17 }
 0xdd4   :  { %1387 = vperm.xlu1 %3054, %v3763_v59  }
 0xdd5   :  { %1374 = vrot.lane.b32.xlu0 %v1363_v24, %s3184_s8 }
 0xdd8   :  { %v3973_v16 = vpop.permute.xlu1 %1339 }
 0xdd9   :  { %5702 = vst [vmem:[#allocation136_spill] sm:$0xff] %v3973_v16 }
 0xde0   :  { %v3975_v2 = vpop.permute.xlu1 %1345 }
 0xde1   :  { %5703 = vst [vmem:[#allocation137_spill] sm:$0xff] %v3975_v2 }
 0xe3e   :  { %v3977_v0 = vpop.permute.xlu1 %1370 }
 0xe3f   :  { %5704 = vst [vmem:[#allocation138_spill] sm:$0xff] %v3977_v0  ;;  %v3987_v2 = vpop.permute.xlu0 %1368  ;;  %v3186_v0 = vmov 25  }
 0xe40   :  { %5706 = vst [vmem:[#allocation140_spill] sm:$0xff] %v3987_v2  ;;  %3056 = vset.pattern.permute.xlu2 %v3186_v0  ;;  %3057 = vset.pattern.permute.xlu1 %v3186_v0 }
 0xe46   :  { %v1388_v18 = vpop.permute.xlu1 %1387 }
 0xe47   :  { %v1392_v7 = vmul.f32 %v3818_v15, %v1388_v18  ;;  %v1390_v13 = vmul.f32 %v3830_v28, %v1388_v18  ;;  %v1391_v24 = vmul.f32 %v3836_v8, %v1388_v18  ;;  %v1393_v5 = vmul.f32 %v3842_v22, %v1388_v18  ;;  %v3989_v37 = vpop.permute.xlu0 %1374 }
 0xe48   :  { %5707 = vst [vmem:[#allocation141_spill] sm:$0xff] %v3989_v37 }
 0xe49   :  { %1402 = vrot.lane.b32.xlu1 %v1392_v7, %s3184_s8  ;;  %1398 = vrot.lane.b32.xlu2 %v1390_v13, %s3184_s8 }
 0xe4a   :  { %1400 = vrot.lane.b32.xlu0 %v1391_v24, %s3184_s8 }
 0xe51   :  { %1404 = vrot.lane.b32.xlu2 %v1393_v5, %s3184_s8 }
 0xe52   :  { %1416 = vperm.xlu0 %3055, %v3785_v10  }
 0xe5a   :  { %1446 = vperm.xlu0 %3055, %v3763_v59  }
 0xebc   :  { %v3991_v16 = vpop.permute.xlu0 %1400 }
 0xebd   :  { %5708 = vst [vmem:[#allocation142_spill] sm:$0xff] %v3991_v16 }
 0xec4   :  { %v1417_v7 = vpop.permute.xlu0 %1416 }
 0xec5   :  { %v1420_v13 = vmul.f32 %v3806_v33, %v1417_v7  ;;  %v1419_v5 = vmul.f32 %v3800_v41, %v1417_v7  ;;  %v1422_v24 = vmul.f32 %v3824_v9, %v1417_v7  ;;  %v1421_v17 = vmul.f32 %v3812_v4, %v1417_v7 }
 0xec7   :  { %1429 = vrot.lane.b32.xlu2 %v1420_v13, %s3187_s9  ;;  %1427 = vrot.lane.b32.xlu1 %v1419_v5, %s3187_s9  ;;  %v4002_v13 = vpop.permute.xlu2 %1372 }
 0xec8   :  { %5709 = vst [vmem:[#allocation143_spill] sm:$0xff] %v4002_v13 }
 0xecc   :  { %v1447_v18 = vpop.permute.xlu0 %1446 }
 0xecd   :  { %v1451_v37 = vmul.f32 %v3818_v15, %v1447_v18  ;;  %v1450_v0 = vmul.f32 %v3836_v8, %v1447_v18  ;;  %v1449_v16 = vmul.f32 %v3830_v28, %v1447_v18  ;;  %v1452_v2 = vmul.f32 %v3842_v22, %v1447_v18 }
 0xecf   :  { %1433 = vrot.lane.b32.xlu2 %v1422_v24, %s3187_s9  ;;  %1431 = vrot.lane.b32.xlu1 %v1421_v17, %s3187_s9  ;;  %v4004_v5 = vpop.permute.xlu2 %1398 }
 0xed0   :  { %1461 = vrot.lane.b32.xlu0 %v1451_v37, %s3187_s9  ;;  %5710 = vst [vmem:[#allocation144_spill] sm:$0xff] %v4004_v5 }
 0xed7   :  { %1459 = vrot.lane.b32.xlu2 %v1450_v0, %s3187_s9  ;;  %1457 = vrot.lane.b32.xlu1 %v1449_v16, %s3187_s9  ;;  %v4006_v7 = vpop.permute.xlu2 %1404 }
 0xed8   :  { %5711 = vst [vmem:[#allocation145_spill] sm:$0xff] %v4006_v7  ;;  %v4019_v7 = vpop.permute.xlu1 %1402 }
 0xed9   :  { %5715 = vst [vmem:[#allocation149_spill] sm:$0xff] %v4019_v7 }
 0xedf   :  { %1475 = vperm.xlu2 %3056, %v3785_v10   ;;  %1463 = vrot.lane.b32.xlu1 %v1452_v2, %s3187_s9 }
 0xf21   :  { %v4008_v24 = vpop.permute.xlu2 %1429 }
 0xf22   :  { %5712 = vst [vmem:[#allocation146_spill] sm:$0xff] %v4008_v24 }
 0xf29   :  { %v4010_v37 = vpop.permute.xlu2 %1433 }
 0xf2a   :  { %5713 = vst [vmem:[#allocation147_spill] sm:$0xff] %v4010_v37 }
 0xf31   :  { %v4012_v17 = vpop.permute.xlu2 %1459 }
 0xf32   :  { %5714 = vst [vmem:[#allocation148_spill] sm:$0xff] %v4012_v17  ;;  %v3189_v17 = vmov 26  }
 0xf33   :  { %3058 = vset.pattern.permute.xlu0 %v3189_v17 }
 0xf39   :  { %v1476_v40 = vpop.permute.xlu2 %1475  ;;  %v4021_v37 = vpop.permute.xlu1 %1427 }
 0xf3a   :  { %v1480_v16 = vmul.f32 %v3812_v4, %v1476_v40  ;;  %v1478_v18 = vmul.f32 %v3800_v41, %v1476_v40  ;;  %v1479_v0 = vmul.f32 %v3806_v33, %v1476_v40  ;;  %v1481_v2 = vmul.f32 %v3824_v9, %v1476_v40  ;;  %5716 = vst [vmem:[#allocation150_spill] sm:$0xff] %v4021_v37 }
 0xf3c   :  { %1490 = vrot.lane.b32.xlu2 %v1480_v16, %s3188_s10  ;;  %1486 = vrot.lane.b32.xlu0 %v1478_v18, %s3188_s10 }
 0xf3d   :  { %1488 = vrot.lane.b32.xlu1 %v1479_v0, %s3188_s10 }
 0xf41   :  { %v4023_v13 = vpop.permute.xlu1 %1431 }
 0xf42   :  { %5717 = vst [vmem:[#allocation151_spill] sm:$0xff] %v4023_v13  ;;  %v4037_v17 = vpop.permute.xlu0 %1461 }
 0xf43   :  { %5721 = vst [vmem:[#allocation155_spill] sm:$0xff] %v4037_v17 }
 0xf44   :  { %1492 = vrot.lane.b32.xlu0 %v1481_v2, %s3188_s10 }
 0xf45   :  { %1505 = vperm.xlu1 %3057, %v3763_v59  }
 0xf49   :  { %v4025_v24 = vpop.permute.xlu1 %1457 }
 0xf4a   :  { %5718 = vst [vmem:[#allocation152_spill] sm:$0xff] %v4025_v24 }
 0xf51   :  { %v4027_v5 = vpop.permute.xlu1 %1463 }
 0xf52   :  { %5719 = vst [vmem:[#allocation153_spill] sm:$0xff] %v4027_v5 }
 0xfae   :  { %v4039_v5 = vpop.permute.xlu0 %1486 }
 0xfaf   :  { %v4029_v16 = vpop.permute.xlu1 %1488  ;;  %5722 = vst [vmem:[#allocation156_spill] sm:$0xff] %v4039_v5 }
 0xfb0   :  { %5720 = vst [vmem:[#allocation154_spill] sm:$0xff] %v4029_v16  ;;  %v3190_v16 = vmov 27  }
 0xfb1   :  { %3059 = vset.pattern.permute.xlu2 %v3190_v16  ;;  %3060 = vset.pattern.permute.xlu1 %v3190_v16 }
 0xfb6   :  { %v4041_v7 = vpop.permute.xlu0 %1492 }
 0xfb7   :  { %v1506_v18 = vpop.permute.xlu1 %1505  ;;  %5723 = vst [vmem:[#allocation157_spill] sm:$0xff] %v4041_v7 }
 0xfb8   :  { %v1510_v40 = vmul.f32 %v3818_v15, %v1506_v18  ;;  %v1509_v0 = vmul.f32 %v3836_v8, %v1506_v18  ;;  %v1508_v2 = vmul.f32 %v3830_v28, %v1506_v18  ;;  %v1511_v13 = vmul.f32 %v3842_v22, %v1506_v18 }
 0xfba   :  { %1520 = vrot.lane.b32.xlu1 %v1510_v40, %s3188_s10  ;;  %1518 = vrot.lane.b32.xlu0 %v1509_v0, %s3188_s10 }
 0xfbb   :  { %1516 = vrot.lane.b32.xlu2 %v1508_v2, %s3188_s10 }
 0xfc2   :  { %1534 = vperm.xlu0 %3058, %v3785_v10  }
 0xfc3   :  { %1522 = vrot.lane.b32.xlu2 %v1511_v13, %s3188_s10 }
 0xfca   :  { %1564 = vperm.xlu0 %3058, %v3763_v59  }
0x102c   :  { %v4043_v24 = vpop.permute.xlu0 %1518 }
0x102d   :  { %5724 = vst [vmem:[#allocation158_spill] sm:$0xff] %v4043_v24 }
0x1034   :  { %v1535_v40 = vpop.permute.xlu0 %1534 }
0x1035   :  { %v1537_v0 = vmul.f32 %v3800_v41, %v1535_v40  ;;  %v1538_v18 = vmul.f32 %v3806_v33, %v1535_v40  ;;  %v1539_v2 = vmul.f32 %v3812_v4, %v1535_v40  ;;  %v1540_v7 = vmul.f32 %v3824_v9, %v1535_v40 }
0x1037   :  { %1545 = vrot.lane.b32.xlu1 %v1537_v0, %s3191_s11  ;;  %1547 = vrot.lane.b32.xlu2 %v1538_v18, %s3191_s11  ;;  %v4054_v0 = vpop.permute.xlu2 %1490 }
0x1038   :  { %5725 = vst [vmem:[#allocation159_spill] sm:$0xff] %v4054_v0 }
0x103c   :  { %v1565_v13 = vpop.permute.xlu0 %1564 }
0x103d   :  { %v1569_v17 = vmul.f32 %v3818_v15, %v1565_v13  ;;  %v1567_v16 = vmul.f32 %v3830_v28, %v1565_v13  ;;  %v1568_v24 = vmul.f32 %v3836_v8, %v1565_v13  ;;  %v1570_v5 = vmul.f32 %v3842_v22, %v1565_v13 }
0x103f   :  { %1549 = vrot.lane.b32.xlu1 %v1539_v2, %s3191_s11  ;;  %1579 = vrot.lane.b32.xlu0 %v1569_v17, %s3191_s11  ;;  %v4056_v18 = vpop.permute.xlu2 %1516 }
0x1040   :  { %1551 = vrot.lane.b32.xlu2 %v1540_v7, %s3191_s11  ;;  %5726 = vst [vmem:[#allocation160_spill] sm:$0xff] %v4056_v18 }
0x1047   :  { %1575 = vrot.lane.b32.xlu1 %v1567_v16, %s3191_s11  ;;  %v4058_v37 = vpop.permute.xlu2 %1522 }
0x1048   :  { %1577 = vrot.lane.b32.xlu2 %v1568_v24, %s3191_s11  ;;  %5727 = vst [vmem:[#allocation161_spill] sm:$0xff] %v4058_v37  ;;  %v4071_v37 = vpop.permute.xlu1 %1520 }
0x1049   :  { %5731 = vst [vmem:[#allocation165_spill] sm:$0xff] %v4071_v37 }
0x104f   :  { %1581 = vrot.lane.b32.xlu1 %v1570_v5, %s3191_s11 }
0x1050   :  { %1593 = vperm.xlu2 %3059, %v3785_v10  }
0x1091   :  { %v4060_v40 = vpop.permute.xlu2 %1547 }
0x1092   :  { %5728 = vst [vmem:[#allocation162_spill] sm:$0xff] %v4060_v40 }
0x109a   :  { %v4062_v7 = vpop.permute.xlu2 %1551 }
0x109b   :  { %5729 = vst [vmem:[#allocation163_spill] sm:$0xff] %v4062_v7 }
0x10a2   :  { %v4064_v17 = vpop.permute.xlu2 %1577 }
0x10a3   :  { %5730 = vst [vmem:[#allocation164_spill] sm:$0xff] %v4064_v17  ;;  %v3193_v17 = vmov 28  }
0x10a4   :  { %3061 = vset.pattern.permute.xlu0 %v3193_v17 }
0x10a9   :  { %v4073_v7 = vpop.permute.xlu1 %1545 }
0x10aa   :  { %v1594_v2 = vpop.permute.xlu2 %1593  ;;  %5732 = vst [vmem:[#allocation166_spill] sm:$0xff] %v4073_v7 }
0x10ab   :  { %v1598_v24 = vmul.f32 %v3812_v4, %v1594_v2  ;;  %v1597_v13 = vmul.f32 %v3806_v33, %v1594_v2  ;;  %v1596_v5 = vmul.f32 %v3800_v41, %v1594_v2  ;;  %v1599_v16 = vmul.f32 %v3824_v9, %v1594_v2 }
0x10ad   :  { %1608 = vrot.lane.b32.xlu2 %v1598_v24, %s3192_s12  ;;  %1606 = vrot.lane.b32.xlu1 %v1597_v13, %s3192_s12 }
0x10ae   :  { %1604 = vrot.lane.b32.xlu0 %v1596_v5, %s3192_s12 }
0x10b1   :  { %v4075_v0 = vpop.permute.xlu1 %1549  ;;  %v4089_v17 = vpop.permute.xlu0 %1579 }
0x10b2   :  { %5733 = vst [vmem:[#allocation167_spill] sm:$0xff] %v4075_v0 }
0x10b3   :  { %5737 = vst [vmem:[#allocation171_spill] sm:$0xff] %v4089_v17 }
0x10b5   :  { %1623 = vperm.xlu1 %3060, %v3763_v59  }
0x10b6   :  { %1610 = vrot.lane.b32.xlu0 %v1599_v16, %s3192_s12 }
0x10b9   :  { %v4077_v40 = vpop.permute.xlu1 %1575 }
0x10ba   :  { %5734 = vst [vmem:[#allocation168_spill] sm:$0xff] %v4077_v40 }
0x10c1   :  { %v4079_v18 = vpop.permute.xlu1 %1581 }
0x10c2   :  { %5735 = vst [vmem:[#allocation169_spill] sm:$0xff] %v4079_v18 }
0x111f   :  { %v4081_v24 = vpop.permute.xlu1 %1606 }
0x1120   :  { %5736 = vst [vmem:[#allocation170_spill] sm:$0xff] %v4081_v24  ;;  %v4091_v18 = vpop.permute.xlu0 %1604  ;;  %v3194_v24 = vmov 29  }
0x1121   :  { %5738 = vst [vmem:[#allocation172_spill] sm:$0xff] %v4091_v18  ;;  %3062 = vset.pattern.permute.xlu2 %v3194_v24  ;;  %3063 = vset.pattern.permute.xlu1 %v3194_v24 }
0x1127   :  { %v1624_v13 = vpop.permute.xlu1 %1623 }
0x1128   :  { %v1628_v2 = vmul.f32 %v3818_v15, %v1624_v13  ;;  %v1626_v5 = vmul.f32 %v3830_v28, %v1624_v13  ;;  %v1627_v16 = vmul.f32 %v3836_v8, %v1624_v13  ;;  %v1629_v0 = vmul.f32 %v3842_v22, %v1624_v13  ;;  %v4093_v37 = vpop.permute.xlu0 %1610 }
0x1129   :  { %5739 = vst [vmem:[#allocation173_spill] sm:$0xff] %v4093_v37 }
0x112a   :  { %1638 = vrot.lane.b32.xlu1 %v1628_v2, %s3192_s12  ;;  %1634 = vrot.lane.b32.xlu2 %v1626_v5, %s3192_s12 }
0x112b   :  { %1636 = vrot.lane.b32.xlu0 %v1627_v16, %s3192_s12 }
0x1132   :  { %1640 = vrot.lane.b32.xlu2 %v1629_v0, %s3192_s12 }
0x1133   :  { %1652 = vperm.xlu0 %3061, %v3785_v10  }
0x113b   :  { %1682 = vperm.xlu0 %3061, %v3763_v59  }
0x119d   :  { %v4095_v40 = vpop.permute.xlu0 %1636 }
0x119e   :  { %5740 = vst [vmem:[#allocation174_spill] sm:$0xff] %v4095_v40 }
0x11a5   :  { %v1653_v2 = vpop.permute.xlu0 %1652 }
0x11a6   :  { %v1656_v5 = vmul.f32 %v3806_v33, %v1653_v2  ;;  %v1655_v0 = vmul.f32 %v3800_v41, %v1653_v2  ;;  %v1658_v16 = vmul.f32 %v3824_v9, %v1653_v2  ;;  %v1657_v17 = vmul.f32 %v3812_v4, %v1653_v2 }
0x11a8   :  { %1665 = vrot.lane.b32.xlu2 %v1656_v5, %s3195_s13  ;;  %1663 = vrot.lane.b32.xlu1 %v1655_v0, %s3195_s13  ;;  %v4106_v5 = vpop.permute.xlu2 %1608 }
0x11a9   :  { %5741 = vst [vmem:[#allocation175_spill] sm:$0xff] %v4106_v5 }
0x11ad   :  { %v1683_v13 = vpop.permute.xlu0 %1682 }
0x11ae   :  { %v1687_v37 = vmul.f32 %v3818_v15, %v1683_v13  ;;  %v1686_v24 = vmul.f32 %v3836_v8, %v1683_v13  ;;  %v1685_v40 = vmul.f32 %v3830_v28, %v1683_v13  ;;  %v1688_v18 = vmul.f32 %v3842_v22, %v1683_v13 }
0x11b0   :  { %1669 = vrot.lane.b32.xlu2 %v1658_v16, %s3195_s13  ;;  %1667 = vrot.lane.b32.xlu1 %v1657_v17, %s3195_s13  ;;  %v4108_v0 = vpop.permute.xlu2 %1634 }
0x11b1   :  { %1697 = vrot.lane.b32.xlu0 %v1687_v37, %s3195_s13  ;;  %5742 = vst [vmem:[#allocation176_spill] sm:$0xff] %v4108_v0 }
0x11b8   :  { %1695 = vrot.lane.b32.xlu2 %v1686_v24, %s3195_s13  ;;  %1693 = vrot.lane.b32.xlu1 %v1685_v40, %s3195_s13  ;;  %v4110_v2 = vpop.permute.xlu2 %1640 }
0x11b9   :  { %5743 = vst [vmem:[#allocation177_spill] sm:$0xff] %v4110_v2  ;;  %v4123_v2 = vpop.permute.xlu1 %1638 }
0x11ba   :  { %5747 = vst [vmem:[#allocation181_spill] sm:$0xff] %v4123_v2 }
0x11c0   :  { %1711 = vperm.xlu2 %3062, %v3785_v10   ;;  %1699 = vrot.lane.b32.xlu1 %v1688_v18, %s3195_s13 }
0x1202   :  { %v4112_v16 = vpop.permute.xlu2 %1665 }
0x1203   :  { %5744 = vst [vmem:[#allocation178_spill] sm:$0xff] %v4112_v16 }
0x120a   :  { %v4114_v37 = vpop.permute.xlu2 %1669 }
0x120b   :  { %5745 = vst [vmem:[#allocation179_spill] sm:$0xff] %v4114_v37 }
0x1212   :  { %v4116_v17 = vpop.permute.xlu2 %1695 }
0x1213   :  { %5746 = vst [vmem:[#allocation180_spill] sm:$0xff] %v4116_v17  ;;  %v3197_v17 = vmov 30  }
0x1214   :  { %3064 = vset.pattern.permute.xlu0 %v3197_v17 }
0x121a   :  { %v1712_v7 = vpop.permute.xlu2 %1711  ;;  %v4125_v37 = vpop.permute.xlu1 %1663 }
0x121b   :  { %v1716_v40 = vmul.f32 %v3812_v4, %v1712_v7  ;;  %v1714_v13 = vmul.f32 %v3800_v41, %v1712_v7  ;;  %v1715_v24 = vmul.f32 %v3806_v33, %v1712_v7  ;;  %v1717_v18 = vmul.f32 %v3824_v9, %v1712_v7  ;;  %5748 = vst [vmem:[#allocation182_spill] sm:$0xff] %v4125_v37 }
0x121d   :  { %1726 = vrot.lane.b32.xlu2 %v1716_v40, %s3196_s14  ;;  %1722 = vrot.lane.b32.xlu0 %v1714_v13, %s3196_s14 }
0x121e   :  { %1724 = vrot.lane.b32.xlu1 %v1715_v24, %s3196_s14 }
0x1222   :  { %v4127_v5 = vpop.permute.xlu1 %1667 }
0x1223   :  { %5749 = vst [vmem:[#allocation183_spill] sm:$0xff] %v4127_v5  ;;  %v4141_v17 = vpop.permute.xlu0 %1697 }
0x1224   :  { %5753 = vst [vmem:[#allocation187_spill] sm:$0xff] %v4141_v17 }
0x1225   :  { %1728 = vrot.lane.b32.xlu0 %v1717_v18, %s3196_s14 }
0x1226   :  { %1741 = vperm.xlu1 %3063, %v3763_v59  }
0x122a   :  { %v4129_v16 = vpop.permute.xlu1 %1693 }
0x122b   :  { %5750 = vst [vmem:[#allocation184_spill] sm:$0xff] %v4129_v16 }
0x1232   :  { %v4131_v0 = vpop.permute.xlu1 %1699 }
0x1233   :  { %5751 = vst [vmem:[#allocation185_spill] sm:$0xff] %v4131_v0 }
0x128f   :  { %v4143_v0 = vpop.permute.xlu0 %1722 }
0x1290   :  { %v4133_v40 = vpop.permute.xlu1 %1724  ;;  %5754 = vst [vmem:[#allocation188_spill] sm:$0xff] %v4143_v0 }
0x1291   :  { %5752 = vst [vmem:[#allocation186_spill] sm:$0xff] %v4133_v40  ;;  %v3198_v40 = vmov 31  }
0x1292   :  { %3065 = vset.pattern.permute.xlu2 %v3198_v40  ;;  %3066 = vset.pattern.permute.xlu1 %v3198_v40 }
0x1297   :  { %v4145_v2 = vpop.permute.xlu0 %1728 }
0x1298   :  { %v1742_v13 = vpop.permute.xlu1 %1741  ;;  %5755 = vst [vmem:[#allocation189_spill] sm:$0xff] %v4145_v2 }
0x1299   :  { %v1746_v7 = vmul.f32 %v3818_v15, %v1742_v13  ;;  %v1745_v24 = vmul.f32 %v3836_v8, %v1742_v13  ;;  %v1744_v18 = vmul.f32 %v3830_v28, %v1742_v13  ;;  %v1747_v5 = vmul.f32 %v3842_v22, %v1742_v13 }
0x129b   :  { %1756 = vrot.lane.b32.xlu1 %v1746_v7, %s3196_s14  ;;  %1754 = vrot.lane.b32.xlu0 %v1745_v24, %s3196_s14 }
0x129c   :  { %1752 = vrot.lane.b32.xlu2 %v1744_v18, %s3196_s14 }
0x12a3   :  { %1770 = vperm.xlu0 %3064, %v3785_v10  }
0x12a4   :  { %1758 = vrot.lane.b32.xlu2 %v1747_v5, %s3196_s14 }
0x12ab   :  { %1800 = vperm.xlu0 %3064, %v3763_v59  }
0x130d   :  { %v4147_v16 = vpop.permute.xlu0 %1754 }
0x130e   :  { %5756 = vst [vmem:[#allocation190_spill] sm:$0xff] %v4147_v16 }
0x1315   :  { %v1771_v7 = vpop.permute.xlu0 %1770 }
0x1316   :  { %v1773_v24 = vmul.f32 %v3800_v41, %v1771_v7  ;;  %v1774_v13 = vmul.f32 %v3806_v33, %v1771_v7  ;;  %v1775_v18 = vmul.f32 %v3812_v4, %v1771_v7  ;;  %v1776_v2 = vmul.f32 %v3824_v9, %v1771_v7 }
0x1318   :  { %1781 = vrot.lane.b32.xlu1 %v1773_v24, %s3199_s15  ;;  %1783 = vrot.lane.b32.xlu2 %v1774_v13, %s3199_s15  ;;  %v4158_v24 = vpop.permute.xlu2 %1726 }
0x1319   :  { %5757 = vst [vmem:[#allocation191_spill] sm:$0xff] %v4158_v24 }
0x131d   :  { %v1801_v5 = vpop.permute.xlu0 %1800 }
0x131e   :  { %v1805_v17 = vmul.f32 %v3818_v15, %v1801_v5  ;;  %v1803_v40 = vmul.f32 %v3830_v28, %v1801_v5  ;;  %v1804_v16 = vmul.f32 %v3836_v8, %v1801_v5  ;;  %v1806_v0 = vmul.f32 %v3842_v22, %v1801_v5 }
0x1320   :  { %1785 = vrot.lane.b32.xlu1 %v1775_v18, %s3199_s15  ;;  %1815 = vrot.lane.b32.xlu0 %v1805_v17, %s3199_s15  ;;  %v4160_v13 = vpop.permute.xlu2 %1752 }
0x1321   :  { %1787 = vrot.lane.b32.xlu2 %v1776_v2, %s3199_s15  ;;  %5758 = vst [vmem:[#allocation192_spill] sm:$0xff] %v4160_v13 }
0x1328   :  { %1811 = vrot.lane.b32.xlu1 %v1803_v40, %s3199_s15  ;;  %v4162_v37 = vpop.permute.xlu2 %1758 }
0x1329   :  { %1813 = vrot.lane.b32.xlu2 %v1804_v16, %s3199_s15  ;;  %5759 = vst [vmem:[#allocation193_spill] sm:$0xff] %v4162_v37  ;;  %v4175_v37 = vpop.permute.xlu1 %1756 }
0x132a   :  { %5763 = vst [vmem:[#allocation197_spill] sm:$0xff] %v4175_v37 }
0x1330   :  { %1817 = vrot.lane.b32.xlu1 %v1806_v0, %s3199_s15 }
0x1331   :  { %1829 = vperm.xlu2 %3065, %v3785_v10  }
0x1372   :  { %v4164_v7 = vpop.permute.xlu2 %1783 }
0x1373   :  { %5760 = vst [vmem:[#allocation194_spill] sm:$0xff] %v4164_v7 }
0x137b   :  { %v4166_v2 = vpop.permute.xlu2 %1787 }
0x137c   :  { %5761 = vst [vmem:[#allocation195_spill] sm:$0xff] %v4166_v2 }
0x1383   :  { %v4168_v17 = vpop.permute.xlu2 %1813 }
0x1384   :  { %5762 = vst [vmem:[#allocation196_spill] sm:$0xff] %v4168_v17  ;;  %v3201_v17 = vmov 32  }
0x1385   :  { %3067 = vset.pattern.permute.xlu0 %v3201_v17 }
0x138a   :  { %v4177_v2 = vpop.permute.xlu1 %1781 }
0x138b   :  { %v1830_v18 = vpop.permute.xlu2 %1829  ;;  %5764 = vst [vmem:[#allocation198_spill] sm:$0xff] %v4177_v2 }
0x138c   :  { %v1834_v16 = vmul.f32 %v3812_v4, %v1830_v18  ;;  %v1833_v5 = vmul.f32 %v3806_v33, %v1830_v18  ;;  %v1832_v0 = vmul.f32 %v3800_v41, %v1830_v18  ;;  %v1835_v40 = vmul.f32 %v3824_v9, %v1830_v18 }
0x138e   :  { %1844 = vrot.lane.b32.xlu2 %v1834_v16, %s3200_s19  ;;  %1842 = vrot.lane.b32.xlu1 %v1833_v5, %s3200_s19 }
0x138f   :  { %1840 = vrot.lane.b32.xlu0 %v1832_v0, %s3200_s19 }
0x1392   :  { %v4179_v24 = vpop.permute.xlu1 %1785  ;;  %v4193_v17 = vpop.permute.xlu0 %1815 }
0x1393   :  { %5765 = vst [vmem:[#allocation199_spill] sm:$0xff] %v4179_v24 }
0x1394   :  { %5769 = vst [vmem:[#allocation203_spill] sm:$0xff] %v4193_v17 }
0x1396   :  { %1859 = vperm.xlu1 %3066, %v3763_v59  }
0x1397   :  { %1846 = vrot.lane.b32.xlu0 %v1835_v40, %s3200_s19 }
0x139a   :  { %v4181_v7 = vpop.permute.xlu1 %1811 }
0x139b   :  { %5766 = vst [vmem:[#allocation200_spill] sm:$0xff] %v4181_v7 }
0x13a2   :  { %v4183_v13 = vpop.permute.xlu1 %1817 }
0x13a3   :  { %5767 = vst [vmem:[#allocation201_spill] sm:$0xff] %v4183_v13 }
0x1400   :  { %v4185_v16 = vpop.permute.xlu1 %1842 }
0x1401   :  { %5768 = vst [vmem:[#allocation202_spill] sm:$0xff] %v4185_v16  ;;  %v4195_v13 = vpop.permute.xlu0 %1840  ;;  %v3202_v16 = vmov 33  }
0x1402   :  { %5770 = vst [vmem:[#allocation204_spill] sm:$0xff] %v4195_v13  ;;  %3068 = vset.pattern.permute.xlu2 %v3202_v16  ;;  %3069 = vset.pattern.permute.xlu1 %v3202_v16 }
0x1408   :  { %v1860_v5 = vpop.permute.xlu1 %1859 }
0x1409   :  { %v1864_v18 = vmul.f32 %v3818_v15, %v1860_v5  ;;  %v1862_v0 = vmul.f32 %v3830_v28, %v1860_v5  ;;  %v1863_v40 = vmul.f32 %v3836_v8, %v1860_v5  ;;  %v1865_v24 = vmul.f32 %v3842_v22, %v1860_v5  ;;  %v4197_v37 = vpop.permute.xlu0 %1846 }
0x140a   :  { %5771 = vst [vmem:[#allocation205_spill] sm:$0xff] %v4197_v37 }
0x140b   :  { %1874 = vrot.lane.b32.xlu1 %v1864_v18, %s3200_s19  ;;  %1870 = vrot.lane.b32.xlu2 %v1862_v0, %s3200_s19 }
0x140c   :  { %1872 = vrot.lane.b32.xlu0 %v1863_v40, %s3200_s19 }
0x1413   :  { %1876 = vrot.lane.b32.xlu2 %v1865_v24, %s3200_s19 }
0x1414   :  { %1888 = vperm.xlu0 %3067, %v3785_v10  }
0x141c   :  { %1918 = vperm.xlu0 %3067, %v3763_v59  }
0x147e   :  { %v4199_v7 = vpop.permute.xlu0 %1872 }
0x147f   :  { %5772 = vst [vmem:[#allocation206_spill] sm:$0xff] %v4199_v7 }
0x1486   :  { %v1889_v18 = vpop.permute.xlu0 %1888 }
0x1487   :  { %v1892_v0 = vmul.f32 %v3806_v33, %v1889_v18  ;;  %v1891_v24 = vmul.f32 %v3800_v41, %v1889_v18  ;;  %v1894_v40 = vmul.f32 %v3824_v9, %v1889_v18  ;;  %v1893_v17 = vmul.f32 %v3812_v4, %v1889_v18 }
0x1489   :  { %1901 = vrot.lane.b32.xlu2 %v1892_v0, %s3203_s20  ;;  %1899 = vrot.lane.b32.xlu1 %v1891_v24, %s3203_s20  ;;  %v4210_v0 = vpop.permute.xlu2 %1844 }
0x148a   :  { %5773 = vst [vmem:[#allocation207_spill] sm:$0xff] %v4210_v0  ;;  %v5817_v0 = vld [vmem:[#allocation116_spill] sm:$0xff] }
0x148e   :  { %v1919_v5 = vpop.permute.xlu0 %1918 }
0x148f   :  { %v1923_v37 = vmul.f32 %v3818_v15, %v1919_v5  ;;  %v1922_v16 = vmul.f32 %v3836_v8, %v1919_v5  ;;  %v1921_v7 = vmul.f32 %v3830_v28, %v1919_v5  ;;  %v1924_v13 = vmul.f32 %v3842_v22, %v1919_v5 }
0x1491   :  { %1905 = vrot.lane.b32.xlu2 %v1894_v40, %s3203_s20  ;;  %1903 = vrot.lane.b32.xlu1 %v1893_v17, %s3203_s20  ;;  %v4212_v24 = vpop.permute.xlu2 %1870 }
0x1492   :  { %1933 = vrot.lane.b32.xlu0 %v1923_v37, %s3203_s20 }
0x1499   :  { %1931 = vrot.lane.b32.xlu2 %v1922_v16, %s3203_s20  ;;  %1929 = vrot.lane.b32.xlu1 %v1921_v7, %s3203_s20  ;;  %v4214_v18 = vpop.permute.xlu2 %1876  ;;  %v4231_v16 = vpop.permute.xlu1 %1874 }
0x149a   :  { %5774 = vst [vmem:[#allocation208_spill] sm:$0xff] %v4214_v18 }
0x149b   :  { %5776 = vst [vmem:[#allocation210_spill] sm:$0xff] %v4231_v16 }
0x14a1   :  { %1947 = vperm.xlu2 %3068, %v3785_v10   ;;  %1935 = vrot.lane.b32.xlu1 %v1924_v13, %s3203_s20 }
0x14e3   :  { %v4216_v40 = vpop.permute.xlu2 %1901 }
0x14eb   :  { %v4218_v37 = vpop.permute.xlu2 %1905 }
0x14ec   :  { %5775 = vst [vmem:[#allocation209_spill] sm:$0xff] %v4218_v37 }
0x14f3   :  { %v4220_v17 = vpop.permute.xlu2 %1931 }
0x14fb   :  { %v1948_v2 = vpop.permute.xlu2 %1947 }
0x14fc   :  { %v1952_v7 = vmul.f32 %v3812_v4, %v1948_v2  ;;  %v1950_v5 = vmul.f32 %v3800_v41, %v1948_v2  ;;  %v1951_v10 = vmul.f32 %v3806_v33, %v1948_v2  ;;  %v1953_v13 = vmul.f32 %v3824_v9, %v1948_v2  ;;  %v4233_v4 = vpop.permute.xlu1 %1899 }
0x14fd   :  { %v3205_v33 = vmov 34   ;;  %v29_v9 = vmul.f32 %v3800_v41, %v3299_v12  ;;  %v167_v41 = vsel %vm137_vm1, %v3393_v6, %v3453_v48 }
0x14fe   :  { %1962 = vrot.lane.b32.xlu2 %v1952_v7, %s3204_s21  ;;  %1958 = vrot.lane.b32.xlu0 %v1950_v5, %s3204_s21  ;;  %v44_v7 = vmul.f32 %v3830_v28, %v3319_v20 }
0x14ff   :  { %1960 = vrot.lane.b32.xlu1 %v1951_v10, %s3204_s21  ;;  %3070 = vset.pattern.permute.xlu0 %v3205_v33  ;;  %v108_v10 = vsel %vm74_vm0, %v3437_v39, %v3423_v32  ;;  %v138_v33 = vsel %vm137_vm1, %v3389_v3, %v3445_v43  ;;  %v226_v3 = vsel %vm196_vm2, %v3467_v57, %v3435_v38 }
0x1500   :  { %v47_v5 = vadd.f32 %v44_v7, %v29_v9  ;;  %v315_v57 = vsel %vm314_vm4, %v3443_v42, %v3409_v23  ;;  %v403_v42 = vsel %vm373_vm5, %v3507_v1, %v3494_v49  ;;  %v462_v1 = vsel %vm432_vm6, %v3538_v29, %v3525_v19  ;;  %v4315_v29 = vld [vmem:[%s5416_s3] sm:$0xff] }
0x1504   :  { %v4235_v37 = vpop.permute.xlu1 %1903 }
0x1505   :  { %5777 = vst [vmem:[#allocation211_spill] sm:$0xff] %v4235_v37 }
0x1506   :  { %1964 = vrot.lane.b32.xlu0 %v1953_v13, %s3204_s21 }
0x1507   :  { %1977 = vperm.xlu1 %3069, %v3763_v59   ;;  %v75_v59 = vsel %vm74_vm0, %v3385_v63, %v3429_v35  ;;  %v197_v63 = vsel %vm196_vm2, %v3427_v34, %v3397_v11 }
0x1508   :  { %v81_v13 = vadd.f32 %v75_v59, %v47_v5  ;;  %v256_v59 = vsel %vm255_vm3, %v3401_v14, %v3478_v62  ;;  %v344_v14 = vsel %vm314_vm4, %v3486_v27, %v3451_v47 }
0x150a   :  { %v114_v37 = vadd.f32 %v108_v10, %v81_v13 }
0x150c   :  { %v4237_v18 = vpop.permute.xlu1 %1929  ;;  %v144_v16 = vadd.f32 %v138_v33, %v114_v37  ;;  %v285_v37 = vsel %vm255_vm3, %v3405_v21, %v3482_v25 }
0x150e   :  { %v173_v9 = vadd.f32 %v167_v41, %v144_v16  ;;  %v433_v41 = vsel %vm432_vm6, %v3521_v46, %v3511_v51  ;;  %v492_v46 = vsel %vm5561_vm7, %v3555_v44, %v3542_v55  ;;  %v580_v44 = vsel %vm5559_vm8, %v3590_v53, %v3577_v56  ;;  %v5782_v53 = vld [vmem:[#allocation48_spill] sm:$0xff] }
0x1510   :  { %v203_v39 = vadd.f32 %v197_v63, %v173_v9  ;;  %v4296_v9 = vld [vmem:[%s5415_s2] sm:$0xff] }
0x1511   :  { %5779 = vst [vmem:[#allocation213_spill] sm:$0xff] %v4296_v9 }
0x1512   :  { %v232_v6 = vadd.f32 %v226_v3, %v203_v39  ;;  %v521_v39 = vsel %vm5561_vm7, %v3559_v54, %v3546_v61  ;;  %v610_v54 = vsel %vm5558_vm9, %v3607_v50, %v3594_v45  ;;  %v5784_v50 = vld [vmem:[#allocation54_spill] sm:$0xff] }
0x1514   :  { %v4246_v2 = vpop.permute.xlu1 %1935  ;;  %v262_v5 = vadd.f32 %v256_v59, %v232_v6  ;;  %v551_v59 = vsel %vm5559_vm8, %v3573_v60, %v3563_v36  ;;  %v639_v60 = vsel %vm5558_vm9, %v3611_v52, %v3598_v31  ;;  %v5786_v52 = vld [vmem:[#allocation56_spill] sm:$0xff] }
0x1515   :  { %5778 = vst [vmem:[#allocation212_spill] sm:$0xff] %v4246_v2  ;;  %v5815_v2 = vld [vmem:[#allocation114_spill] sm:$0xff] }
0x1516   :  { %v291_v33 = vadd.f32 %v285_v37, %v262_v5 }
0x1518   :  { %v321_v21 = vadd.f32 %v315_v57, %v291_v33  ;;  %v5781_v57 = vld [vmem:[#allocation46_spill] sm:$0xff] }
0x1519   :  { %v698_v33 = vsel %vm5557_vm10, %v5782_v53, %v5781_v57 }
0x1571   :  { %v4260_v7 = vpop.permute.xlu1 %1960 }
0x1579   :  { %v1978_v34 = vpop.permute.xlu1 %1977 }
0x157a   :  { %v1982_v16 = vmul.f32 %v3818_v15, %v1978_v34  ;;  %v1981_v10 = vmul.f32 %v3836_v8, %v1978_v34  ;;  %v1980_v13 = vmul.f32 %v3830_v28, %v1978_v34  ;;  %v374_v15 = vsel %vm373_vm5, %v3503_v58, %v3490_v30 }
0x157b   :  { %v350_v8 = vadd.f32 %v344_v14, %v321_v21  ;;  %v1983_v27 = vmul.f32 %v3842_v22, %v1978_v34  ;;  %v5783_v21 = vld [vmem:[#allocation50_spill] sm:$0xff] }
0x157c   :  { %1992 = vrot.lane.b32.xlu1 %v1982_v16, %s3204_s21  ;;  %1990 = vrot.lane.b32.xlu0 %v1981_v10, %s3204_s21  ;;  %v5780_v16 = vld [vmem:[#allocation44_spill] sm:$0xff] }
0x157d   :  { %1988 = vrot.lane.b32.xlu2 %v1980_v13, %s3204_s21  ;;  %v380_v28 = vadd.f32 %v374_v15, %v350_v8  ;;  %v669_v10 = vsel %vm5557_vm10, %v5780_v16, %v3615_v26  ;;  %v728_v15 = vsel %vm5560_vm11, %v5784_v50, %v5783_v21  ;;  %v5795_v16 = vld [vmem:[#allocation74_spill] sm:$0xff] }
0x157f   :  { %v409_v63 = vadd.f32 %v403_v42, %v380_v28  ;;  %v5785_v42 = vld [vmem:[#allocation52_spill] sm:$0xff] }
0x1580   :  { %v757_v28 = vsel %vm5560_vm11, %v5786_v52, %v5785_v42  ;;  %v5800_v52 = vld [vmem:[#allocation86_spill] sm:$0xff] }
0x1581   :  { %v439_v58 = vadd.f32 %v433_v41, %v409_v63  ;;  %v5788_v63 = vld [vmem:[#allocation60_spill] sm:$0xff] }
0x1583   :  { %v468_v22 = vadd.f32 %v462_v1, %v439_v58 }
0x1584   :  { %2006 = vperm.xlu0 %3070, %v4296_v9  }
0x1585   :  { %1994 = vrot.lane.b32.xlu2 %v1983_v27, %s3204_s21  ;;  %v498_v3 = vadd.f32 %v492_v46, %v468_v22  ;;  %v5787_v27 = vld [vmem:[#allocation58_spill] sm:$0xff]  ;;  %v5790_v22 = vld [vmem:[#allocation64_spill] sm:$0xff]  ;;  %s3208_s21 = smov 18  }
0x1586   :  { %v787_v1 = vsel %vm5526_vm12, %v5788_v63, %v5787_v27  ;;  %v5789_v46 = vld [vmem:[#allocation62_spill] sm:$0xff]  ;;  %v5801_v63 = vld [vmem:[#allocation84_spill] sm:$0xff] }
0x1587   :  { %v527_v6 = vadd.f32 %v521_v39, %v498_v3  ;;  %v816_v39 = vsel %vm5526_vm12, %v5790_v22, %v5789_v46  ;;  %vm5530_vm12 = vcmask 662528  }
0x1589   :  { %v557_v37 = vadd.f32 %v551_v59, %v527_v6  ;;  %v5791_v59 = vld [vmem:[#allocation66_spill] sm:$0xff] }
0x158a   :  { %v5792_v6 = vld [vmem:[#allocation70_spill] sm:$0xff] }
0x158b   :  { %v586_v34 = vadd.f32 %v580_v44, %v557_v37  ;;  %v846_v44 = vsel %vm5527_vm13, %v5792_v6, %v5791_v59 }
0x158c   :  { %2036 = vperm.xlu0 %3070, %v4315_v29  }
0x158d   :  { %v616_v5 = vadd.f32 %v610_v54, %v586_v34  ;;  %v5793_v54 = vld [vmem:[#allocation68_spill] sm:$0xff] }
0x158e   :  { %v5794_v34 = vld [vmem:[#allocation72_spill] sm:$0xff] }
0x158f   :  { %v645_v13 = vadd.f32 %v639_v60, %v616_v5  ;;  %v875_v60 = vsel %vm5527_vm13, %v5794_v34, %v5793_v54  ;;  %vm5532_vm13 = vcmask 654336   ;;  %v5806_v34 = vld [vmem:[#allocation96_spill] sm:$0xff] }
0x1591   :  { %v675_v14 = vadd.f32 %v669_v10, %v645_v13  ;;  %v5796_v10 = vld [vmem:[#allocation76_spill] sm:$0xff] }
0x1592   :  { %v905_v13 = vsel %vm5528_vm14, %v5796_v10, %v5795_v16  ;;  %v5807_v10 = vld [vmem:[#allocation98_spill] sm:$0xff] }
0x1593   :  { %v704_v8 = vadd.f32 %v698_v33, %v675_v14  ;;  %v5797_v33 = vld [vmem:[#allocation78_spill] sm:$0xff]  ;;  %v5798_v14 = vld [vmem:[#allocation80_spill] sm:$0xff] }
0x1594   :  { %v934_v50 = vsel %vm5528_vm14, %v5798_v14, %v5797_v33  ;;  %vm5533_vm14 = vcmask 646144  }
0x1595   :  { %v734_v41 = vadd.f32 %v728_v15, %v704_v8  ;;  %v5799_v8 = vld [vmem:[#allocation82_spill] sm:$0xff] }
0x1597   :  { %v763_v58 = vadd.f32 %v757_v28, %v734_v41  ;;  %v964_v28 = vsel %vm5529_vm15, %v5800_v52, %v5799_v8 }
0x1599   :  { %v793_v3 = vadd.f32 %v787_v1, %v763_v58  ;;  %v5802_v1 = vld [vmem:[#allocation88_spill] sm:$0xff] }
0x159a   :  { %v993_v58 = vsel %vm5529_vm15, %v5802_v1, %v5801_v63  ;;  %v5812_v1 = vld [vmem:[#allocation108_spill] sm:$0xff]  ;;  %vm5534_vm15 = vcmask 637952  }
0x159b   :  { %v822_v37 = vadd.f32 %v816_v39, %v793_v3  ;;  %v5803_v39 = vld [vmem:[#allocation90_spill] sm:$0xff]  ;;  %v5804_v3 = vld [vmem:[#allocation92_spill] sm:$0xff] }
0x159c   :  { %v1023_v6 = vsel %vm5530_vm12, %v5804_v3, %v5803_v39  ;;  %v5813_v3 = vld [vmem:[#allocation110_spill] sm:$0xff] }
0x159d   :  { %v852_v5 = vadd.f32 %v846_v44, %v822_v37  ;;  %v5805_v37 = vld [vmem:[#allocation94_spill] sm:$0xff] }
0x159f   :  { %v881_v53 = vadd.f32 %v875_v60, %v852_v5  ;;  %v1052_v60 = vsel %vm5530_vm12, %v5806_v34, %v5805_v37  ;;  %v5814_v34 = vld [vmem:[#allocation112_spill] sm:$0xff]  ;;  %vm5535_vm12 = vcmask 506880  }
0x15a1   :  { %v911_v15 = vadd.f32 %v905_v13, %v881_v53  ;;  %v5808_v13 = vld [vmem:[#allocation102_spill] sm:$0xff] }
0x15a2   :  { %v1082_v53 = vsel %vm5532_vm13, %v5808_v13, %v5807_v10  ;;  %v5816_v13 = vld [vmem:[#allocation118_spill] sm:$0xff] }
0x15a3   :  { %v940_v41 = vadd.f32 %v934_v50, %v911_v15  ;;  %v5809_v50 = vld [vmem:[#allocation100_spill] sm:$0xff]  ;;  %v5862_v10 = vld [vmem:[#allocation206_spill] sm:$0xff] }
0x15a4   :  { %v5810_v15 = vld [vmem:[#allocation104_spill] sm:$0xff] }
0x15a5   :  { %v970_v22 = vadd.f32 %v964_v28, %v940_v41  ;;  %v1111_v52 = vsel %vm5532_vm13, %v5810_v15, %v5809_v50  ;;  %v5811_v41 = vld [vmem:[#allocation106_spill] sm:$0xff]  ;;  %v5818_v15 = vld [vmem:[#allocation120_spill] sm:$0xff]  ;;  %vm5536_vm13 = vcmask 498688  }
0x15a6   :  { %v5819_v50 = vld [vmem:[#allocation122_spill] sm:$0xff] }
0x15a7   :  { %v999_v44 = vadd.f32 %v993_v58, %v970_v22  ;;  %v1141_v58 = vsel %vm5533_vm14, %v5812_v1, %v5811_v41  ;;  %v5820_v1 = vld [vmem:[#allocation124_spill] sm:$0xff]  ;;  %v5821_v41 = vld [vmem:[#allocation126_spill] sm:$0xff] }
0x15a9   :  { %v1029_v5 = vadd.f32 %v1023_v6, %v999_v44  ;;  %v1170_v6 = vsel %vm5533_vm14, %v5814_v34, %v5813_v3  ;;  %v5822_v34 = vld [vmem:[#allocation128_spill] sm:$0xff]  ;;  %v5823_v3 = vld [vmem:[#allocation130_spill] sm:$0xff]  ;;  %vm5537_vm14 = vcmask 490496  }
0x15ab   :  { %v1058_v14 = vadd.f32 %v1052_v60, %v1029_v5  ;;  %v1200_v60 = vsel %vm5534_vm15, %v5816_v13, %v5815_v2  ;;  %v5824_v13 = vld [vmem:[#allocation134_spill] sm:$0xff]  ;;  %v5825_v2 = vld [vmem:[#allocation132_spill] sm:$0xff] }
0x15ad   :  { %v1088_v28 = vadd.f32 %v1082_v53, %v1058_v14  ;;  %v1229_v53 = vsel %vm5534_vm15, %v5818_v15, %v5817_v0  ;;  %v5826_v15 = vld [vmem:[#allocation136_spill] sm:$0xff]  ;;  %v5827_v0 = vld [vmem:[#allocation138_spill] sm:$0xff]  ;;  %vm5538_vm15 = vcmask 482304  }
0x15af   :  { %v1117_v22 = vadd.f32 %v1111_v52, %v1088_v28  ;;  %v1259_v52 = vsel %vm5535_vm12, %v5820_v1, %v5819_v50  ;;  %v5828_v1 = vld [vmem:[#allocation140_spill] sm:$0xff]  ;;  %v5829_v50 = vld [vmem:[#allocation142_spill] sm:$0xff] }
0x15b1   :  { %v1147_v44 = vadd.f32 %v1141_v58, %v1117_v22  ;;  %v1288_v58 = vsel %vm5535_vm12, %v5822_v34, %v5821_v41  ;;  %v5830_v34 = vld [vmem:[#allocation144_spill] sm:$0xff]  ;;  %v5831_v41 = vld [vmem:[#allocation146_spill] sm:$0xff]  ;;  %vm5541_vm12 = vcmask 474112  }
0x15b3   :  { %v1176_v5 = vadd.f32 %v1170_v6, %v1147_v44  ;;  %v1318_v6 = vsel %vm5536_vm13, %v5824_v13, %v5823_v3  ;;  %v5832_v13 = vld [vmem:[#allocation150_spill] sm:$0xff]  ;;  %v5833_v3 = vld [vmem:[#allocation148_spill] sm:$0xff] }
0x15b5   :  { %v1206_v14 = vadd.f32 %v1200_v60, %v1176_v5  ;;  %v1347_v60 = vsel %vm5536_vm13, %v5826_v15, %v5825_v2  ;;  %v5834_v15 = vld [vmem:[#allocation152_spill] sm:$0xff]  ;;  %v5835_v2 = vld [vmem:[#allocation154_spill] sm:$0xff]  ;;  %vm5539_vm13 = vcmask 465920  }
0x15b7   :  { %v1235_v28 = vadd.f32 %v1229_v53, %v1206_v14  ;;  %v1377_v53 = vsel %vm5537_vm14, %v5828_v1, %v5827_v0  ;;  %v5836_v1 = vld [vmem:[#allocation156_spill] sm:$0xff]  ;;  %v5837_v0 = vld [vmem:[#allocation158_spill] sm:$0xff] }
0x15b9   :  { %v1265_v22 = vadd.f32 %v1259_v52, %v1235_v28  ;;  %v1406_v52 = vsel %vm5537_vm14, %v5830_v34, %v5829_v50  ;;  %v5838_v34 = vld [vmem:[#allocation160_spill] sm:$0xff]  ;;  %v5839_v50 = vld [vmem:[#allocation162_spill] sm:$0xff]  ;;  %vm5542_vm14 = vcmask 457728  }
0x15bb   :  { %v1294_v44 = vadd.f32 %v1288_v58, %v1265_v22  ;;  %v1436_v58 = vsel %vm5538_vm15, %v5832_v13, %v5831_v41  ;;  %v5840_v13 = vld [vmem:[#allocation166_spill] sm:$0xff]  ;;  %v5841_v41 = vld [vmem:[#allocation164_spill] sm:$0xff] }
0x15bd   :  { %v1324_v5 = vadd.f32 %v1318_v6, %v1294_v44  ;;  %v1465_v6 = vsel %vm5538_vm15, %v5834_v15, %v5833_v3  ;;  %v5842_v15 = vld [vmem:[#allocation168_spill] sm:$0xff]  ;;  %v5843_v3 = vld [vmem:[#allocation170_spill] sm:$0xff]  ;;  %vm5543_vm15 = vcmask 326656  }
0x15bf   :  { %v1353_v14 = vadd.f32 %v1347_v60, %v1324_v5  ;;  %v1495_v60 = vsel %vm5541_vm12, %v5836_v1, %v5835_v2  ;;  %v5844_v1 = vld [vmem:[#allocation172_spill] sm:$0xff]  ;;  %v4426_v2 = vpop.permute.xlu0 %1933 }
0x15c0   :  { %5845 = vst [vmem:[#allocation44_spill] sm:$0xff] %v4426_v2 }
0x15c1   :  { %v1383_v28 = vadd.f32 %v1377_v53, %v1353_v14  ;;  %v1524_v53 = vsel %vm5541_vm12, %v5838_v34, %v5837_v0  ;;  %vm5544_vm12 = vcmask 310272  }
0x15c3   :  { %v1412_v22 = vadd.f32 %v1406_v52, %v1383_v28  ;;  %v1554_v52 = vsel %vm5539_vm13, %v5840_v13, %v5839_v50 }
0x15c5   :  { %v1442_v44 = vadd.f32 %v1436_v58, %v1412_v22  ;;  %v1583_v58 = vsel %vm5539_vm13, %v5842_v15, %v5841_v41  ;;  %vm1730_vm13 = vcmask 318464  }
0x15c7   :  { %v1471_v5 = vadd.f32 %v1465_v6, %v1442_v44  ;;  %v1613_v6 = vsel %vm5542_vm14, %v5844_v1, %v5843_v3  ;;  %v1959_v41 = vpop.permute.xlu0 %1958 }
0x15c9   :  { %v1501_v14 = vadd.f32 %v1495_v60, %v1471_v5  ;;  %v5846_v60 = vld [vmem:[#allocation174_spill] sm:$0xff]  ;;  %v5847_v5 = vld [vmem:[#allocation176_spill] sm:$0xff] }
0x15ca   :  { %v1642_v34 = vsel %vm5542_vm14, %v5847_v5, %v5846_v60  ;;  %v5854_v5 = vld [vmem:[#allocation190_spill] sm:$0xff]  ;;  %vm1848_vm14 = vcmask 302080  }
0x15cb   :  { %v1530_v28 = vadd.f32 %v1524_v53, %v1501_v14  ;;  %v5848_v53 = vld [vmem:[#allocation178_spill] sm:$0xff] }
0x15cc   :  { %v5849_v14 = vld [vmem:[#allocation182_spill] sm:$0xff] }
0x15cd   :  { %v1560_v22 = vadd.f32 %v1554_v52, %v1530_v28  ;;  %v1672_v50 = vsel %vm5543_vm15, %v5849_v14, %v5848_v53  ;;  %v5850_v52 = vld [vmem:[#allocation180_spill] sm:$0xff]  ;;  %v5856_v14 = vld [vmem:[#allocation194_spill] sm:$0xff] }
0x15ce   :  { %v5851_v28 = vld [vmem:[#allocation184_spill] sm:$0xff] }
0x15cf   :  { %v1589_v44 = vadd.f32 %v1583_v58, %v1560_v22  ;;  %v1701_v15 = vsel %vm5543_vm15, %v5851_v28, %v5850_v52  ;;  %v5852_v58 = vld [vmem:[#allocation186_spill] sm:$0xff]  ;;  %v5853_v22 = vld [vmem:[#allocation188_spill] sm:$0xff]  ;;  %vm1907_vm15 = vcmask 293888  }
0x15d0   :  { %v1731_v2 = vsel %vm1730_vm13, %v5853_v22, %v5852_v58  ;;  %v5858_v28 = vld [vmem:[#allocation196_spill] sm:$0xff]  ;;  %v5860_v22 = vld [vmem:[#allocation202_spill] sm:$0xff] }
0x15d1   :  { %v1619_v13 = vadd.f32 %v1613_v6, %v1589_v44  ;;  %v5855_v6 = vld [vmem:[#allocation192_spill] sm:$0xff] }
0x15d2   :  { %v1760_v44 = vsel %vm1730_vm13, %v5855_v6, %v5854_v5  ;;  %v4455_v6 = vpop.permute.xlu2 %1962 }
0x15d3   :  { %v1648_v0 = vadd.f32 %v1642_v34, %v1619_v13  ;;  %v5857_v34 = vld [vmem:[#allocation198_spill] sm:$0xff] }
0x15d4   :  { %v1790_v13 = vsel %vm5544_vm12, %v5857_v34, %v5856_v14 }
0x15d5   :  { %v1678_v1 = vadd.f32 %v1672_v50, %v1648_v0  ;;  %v5859_v0 = vld [vmem:[#allocation200_spill] sm:$0xff] }
0x15d6   :  { %v1819_v50 = vsel %vm5544_vm12, %v5859_v0, %v5858_v28  ;;  %vm1966_vm12 = vcmask 285696  }
0x15d7   :  { %v1707_v3 = vadd.f32 %v1701_v15, %v1678_v1  ;;  %v5861_v15 = vld [vmem:[#allocation204_spill] sm:$0xff] }
0x15d8   :  { %v1849_v1 = vsel %vm1848_vm14, %v5861_v15, %v5860_v22 }
0x15d9   :  { %v1737_v60 = vadd.f32 %v1731_v2, %v1707_v3  ;;  %v1878_v2 = vsel %vm1848_vm14, %v4212_v24, %v5862_v10  ;;  %v3206_v24 = vmov 35  }
0x15da   :  { %3071 = vset.pattern.permute.xlu2 %v3206_v24  ;;  %3072 = vset.pattern.permute.xlu1 %v3206_v24 }
0x15db   :  { %v1766_v53 = vadd.f32 %v1760_v44, %v1737_v60  ;;  %v4457_v60 = vpop.permute.xlu0 %1964  ;;  %v1908_v44 = vsel %vm1907_vm15, %v4233_v4, %v4216_v40 }
0x15dc   :  { %5863 = vst [vmem:[#allocation46_spill] sm:$0xff] %v4457_v60  ;;  %v5869_v60 = vld [vmem:[#allocation13_spill] sm:$0xff] }
0x15dd   :  { %v1796_v52 = vadd.f32 %v1790_v13, %v1766_v53  ;;  %v1967_v13 = vsel %vm1966_vm12, %v1959_v41, %v4260_v7 }
0x15df   :  { %v1825_v58 = vadd.f32 %v1819_v50, %v1796_v52  ;;  %v1937_v52 = vsel %vm1907_vm15, %v4237_v18, %v4220_v17  ;;  %v1989_v50 = vpop.permute.xlu2 %1988  ;;  %v4476_v18 = vld [vmem:[%s5417_s0] sm:$0xff] }
0x15e1   :  { %v1855_v3 = vadd.f32 %v1849_v1, %v1825_v58 }
0x15e3   :  { %v1884_v53 = vadd.f32 %v1878_v2, %v1855_v3  ;;  %v4482_v3 = vld [vmem:[%s5417_s0 + $0x8] sm:$0xff] }
0x15e5   :  { %v1914_v34 = vadd.f32 %v1908_v44, %v1884_v53 }
0x15e7   :  { %v1943_v58 = vadd.f32 %v1937_v52, %v1914_v34  ;;  %v4488_v52 = vld [vmem:[%s5417_s0 + $0x10] sm:$0xff] }
0x15e9   :  { %v1973_v0 = vadd.f32 %v1967_v13, %v1943_v58  ;;  %v4494_v13 = vld [vmem:[%s5418_s1 + $0x10] sm:$0xff]  ;;  %v4500_v58 = vld [vmem:[%s5417_s0 + $0x18] sm:$0xff] }
0x15ea   :  { %5865 = vst [vmem:[#allocation50_spill] sm:$0xff] %v4494_v13 }
0x15ee   :  { %v4467_v15 = vpop.permute.xlu0 %1990 }
0x15ef   :  { %v1996_v4 = vsel %vm1966_vm12, %v1989_v50, %v4467_v15  ;;  %v4506_v50 = vld [vmem:[%s5418_s1] sm:$0xff] }
0x15f0   :  { %v4471_v1 = vadd.f32 %v1996_v4, %v1973_v0  ;;  %5866 = vst [vmem:[#allocation54_spill] sm:$0xff] %v4506_v50 }
0x15f2   :  { %5864 = vst [vmem:[#allocation48_spill] sm:$0xff] %v4471_v1 }
0x15f6   :  { %v2007_v2 = vpop.permute.xlu0 %2006 }
0x15f7   :  { %v2009_v41 = vmul.f32 %v4476_v18, %v2007_v2  ;;  %v2010_v44 = vmul.f32 %v4482_v3, %v2007_v2  ;;  %v2011_v34 = vmul.f32 %v4488_v52, %v2007_v2  ;;  %v2012_v0 = vmul.f32 %v4500_v58, %v2007_v2  ;;  %v4518_v2 = vld [vmem:[%s5418_s1 + $0x18] sm:$0xff] }
0x15f8   :  { %5868 = vst [vmem:[#allocation56_spill] sm:$0xff] %v4518_v2 }
0x15f9   :  { %2017 = vrot.lane.b32.xlu1 %v2009_v41, %s3207_s30  ;;  %2019 = vrot.lane.b32.xlu2 %v2010_v44, %s3207_s30  ;;  %v4512_v41 = vld [vmem:[%s5418_s1 + $0x8] sm:$0xff] }
0x15fa   :  { %5867 = vst [vmem:[#allocation52_spill] sm:$0xff] %v4512_v41 }
0x15fe   :  { %v2037_v53 = vpop.permute.xlu0 %2036 }
0x15ff   :  { %v2041_v24 = vmul.f32 %v4494_v13, %v2037_v53  ;;  %v2039_v4 = vmul.f32 %v4506_v50, %v2037_v53  ;;  %v2040_v44 = vmul.f32 %v4512_v41, %v2037_v53  ;;  %v5870_v13 = vld [vmem:[#allocation4_spill] sm:$0xff] }
0x1600   :  { %v109_v50 = vsel %vm74_vm0, %v3423_v32, %v5870_v13 }
0x1601   :  { %2021 = vrot.lane.b32.xlu1 %v2011_v34, %s3207_s30  ;;  %2051 = vrot.lane.b32.xlu0 %v2041_v24, %s3207_s30  ;;  %v2042_v34 = vmul.f32 %v4518_v2, %v2037_v53  ;;  %v45_v24 = vmul.f32 %v4512_v41, %v3319_v20  ;;  %v5871_v53 = vld [vmem:[#allocation5_spill] sm:$0xff]  ;;  %v5872_v20 = vld [vmem:[#allocation11_spill] sm:$0xff]  ;;  %v5873_v41 = vld [vmem:[#allocation18_spill] sm:$0xff] }
0x1602   :  { %2023 = vrot.lane.b32.xlu2 %v2012_v0, %s3207_s30  ;;  %v30_v0 = vmul.f32 %v4482_v3, %v3299_v12  ;;  %v168_v12 = vsel %vm137_vm1, %v3453_v48, %v5872_v20 }
0x1609   :  { %2047 = vrot.lane.b32.xlu1 %v2039_v4, %s3207_s30  ;;  %v76_v4 = vsel %vm74_vm0, %v3429_v35, %v5869_v60  ;;  %v198_v35 = vsel %vm196_vm2, %v3397_v11, %v5873_v41  ;;  %v5879_v41 = vld [vmem:[#allocation24_spill] sm:$0xff] }
0x160a   :  { %2049 = vrot.lane.b32.xlu2 %v2040_v44, %s3207_s30  ;;  %v48_v44 = vadd.f32 %v45_v24, %v30_v0  ;;  %v5874_v0 = vld [vmem:[#allocation7_spill] sm:$0xff] }
0x160b   :  { %v227_v32 = vsel %vm196_vm2, %v3435_v38, %v5874_v0  ;;  %v345_v38 = vsel %vm314_vm4, %v3451_v47, %v5879_v41 }
0x160c   :  { %v82_v1 = vadd.f32 %v76_v4, %v48_v44  ;;  %v5875_v44 = vld [vmem:[#allocation8_spill] sm:$0xff] }
0x1611   :  { %2053 = vrot.lane.b32.xlu1 %v2042_v34, %s3207_s30  ;;  %v139_v34 = vsel %vm137_vm1, %v3445_v43, %v5871_v53  ;;  %v257_v43 = vsel %vm255_vm3, %v3478_v62, %v5875_v44 }
0x1612   :  { %2065 = vperm.xlu2 %3071, %v4296_v9   ;;  %v115_v9 = vadd.f32 %v109_v50, %v82_v1  ;;  %v5876_v50 = vld [vmem:[#allocation14_spill] sm:$0xff] }
0x1613   :  { %v286_v48 = vsel %vm255_vm3, %v3482_v25, %v5876_v50  ;;  %v5881_v25 = vld [vmem:[#allocation27_spill] sm:$0xff] }
0x1614   :  { %v145_v2 = vadd.f32 %v139_v34, %v115_v9  ;;  %v5877_v34 = vld [vmem:[#allocation21_spill] sm:$0xff] }
0x1615   :  { %v316_v11 = vsel %vm314_vm4, %v3409_v23, %v5877_v34  ;;  %v404_v23 = vsel %vm373_vm5, %v3494_v49, %v5881_v25  ;;  %v5887_v25 = vld [vmem:[#allocation37_spill] sm:$0xff] }
0x1616   :  { %v174_v24 = vadd.f32 %v168_v12, %v145_v2  ;;  %v4553_v2 = vpop.permute.xlu2 %1994 }
0x1617   :  { %5878 = vst [vmem:[#allocation58_spill] sm:$0xff] %v4553_v2  ;;  %v5883_v2 = vld [vmem:[#allocation32_spill] sm:$0xff] }
0x1618   :  { %v204_v4 = vadd.f32 %v198_v35, %v174_v24  ;;  %v5880_v24 = vld [vmem:[#allocation25_spill] sm:$0xff]  ;;  %v463_v47 = vsel %vm432_vm6, %v3525_v19, %v5883_v2 }
0x1619   :  { %v375_v62 = vsel %vm373_vm5, %v3490_v30, %v5880_v24 }
0x161a   :  { %v233_v1 = vadd.f32 %v227_v32, %v204_v4 }
0x161c   :  { %v263_v9 = vadd.f32 %v257_v43, %v233_v1  ;;  %v5882_v1 = vld [vmem:[#allocation29_spill] sm:$0xff] }
0x161e   :  { %v292_v12 = vadd.f32 %v286_v48, %v263_v9  ;;  %v434_v9 = vsel %vm432_vm6, %v3511_v51, %v5882_v1  ;;  %v552_v51 = vsel %vm5559_vm8, %v3563_v36, %v5887_v25 }
0x1620   :  { %v322_v35 = vadd.f32 %v316_v11, %v292_v12  ;;  %v5884_v12 = vld [vmem:[#allocation33_spill] sm:$0xff] }
0x1621   :  { %v493_v30 = vsel %vm5561_vm7, %v3542_v55, %v5884_v12 }
0x1622   :  { %v351_v32 = vadd.f32 %v345_v38, %v322_v35 }
0x1624   :  { %v381_v4 = vadd.f32 %v375_v62, %v351_v32  ;;  %v5886_v32 = vld [vmem:[#allocation35_spill] sm:$0xff] }
0x1625   :  { %v522_v49 = vsel %vm5561_vm7, %v3546_v61, %v5886_v32 }
0x1626   :  { %v410_v48 = vadd.f32 %v404_v23, %v381_v4  ;;  %v5888_v23 = vld [vmem:[#allocation40_spill] sm:$0xff] }
0x1627   :  { %v581_v19 = vsel %vm5559_vm8, %v3577_v56, %v5888_v23  ;;  %vm5900_vm8 = vcmask 687104  }
0x1628   :  { %v440_v11 = vadd.f32 %v434_v9, %v410_v48  ;;  %v5889_v48 = vld [vmem:[#allocation41_spill] sm:$0xff] }
0x1629   :  { %v611_v55 = vsel %vm5558_vm9, %v3594_v45, %v5889_v48 }
0x162a   :  { %v469_v38 = vadd.f32 %v463_v47, %v440_v11 }
0x162c   :  { %v499_v35 = vadd.f32 %v493_v30, %v469_v38  ;;  %v5890_v38 = vld [vmem:[#allocation43_spill] sm:$0xff] }
0x162d   :  { %v640_v61 = vsel %vm5558_vm9, %v3598_v31, %v5890_v38 }
0x162e   :  { %v528_v4 = vadd.f32 %v522_v49, %v499_v35  ;;  %v5892_v49 = vld [vmem:[#allocation53_spill] sm:$0xff] }
0x162f   :  { %v699_v56 = vsel %vm5557_vm10, %v5781_v57, %v5892_v49 }
0x1630   :  { %v558_v9 = vadd.f32 %v552_v51, %v528_v4  ;;  %v5893_v4 = vld [vmem:[#allocation55_spill] sm:$0xff] }
0x1631   :  { %v729_v45 = vsel %vm5560_vm11, %v5783_v21, %v5893_v4  ;;  %v5895_v21 = vld [vmem:[#allocation63_spill] sm:$0xff] }
0x1632   :  { %v587_v47 = vadd.f32 %v581_v19, %v558_v9 }
0x1634   :  { %v617_v30 = vadd.f32 %v611_v55, %v587_v47 }
0x1636   :  { %v646_v35 = vadd.f32 %v640_v61, %v617_v30 }
0x1653   :  { %v4561_v43 = vpop.permute.xlu2 %2019 }
0x165c   :  { %v4575_v62 = vpop.permute.xlu2 %2023 }
0x165d   :  { %5885 = vst [vmem:[#allocation60_spill] sm:$0xff] %v4575_v62  ;;  %v5891_v62 = vld [vmem:[#allocation47_spill] sm:$0xff] }
0x165e   :  { %v670_v36 = vsel %vm5557_vm10, %v3615_v26, %v5891_v62  ;;  %v5894_v26 = vld [vmem:[#allocation59_spill] sm:$0xff]  ;;  %vm5896_vm10 = vcmask 818176  }
0x165f   :  { %v676_v51 = vadd.f32 %v670_v36, %v646_v35  ;;  %v758_v57 = vsel %vm5560_vm11, %v5785_v42, %v5894_v26  ;;  %v788_v30 = vsel %vm5896_vm10, %v5787_v27, %v5895_v21  ;;  %v5897_v36 = vld [vmem:[#allocation69_spill] sm:$0xff]  ;;  %vm5898_vm9 = vmmov %vm5896_vm10  ;;  %vm5908_vm11 = vcmask 670720  }
0x1660   :  { %v817_v35 = vsel %vm5898_vm9, %v5789_v46, %v5897_v36  ;;  %vm5902_vm10 = vmmov %vm5900_vm8  ;;  %vm5904_vm9 = vcmask 678912  }
0x1661   :  { %v705_v9 = vadd.f32 %v699_v56, %v676_v51  ;;  %v5899_v51 = vld [vmem:[#allocation71_spill] sm:$0xff]  ;;  %vm5910_vm7 = vmmov %vm5908_vm11 }
0x1663   :  { %v735_v38 = vadd.f32 %v729_v45, %v705_v9  ;;  %v847_v45 = vsel %vm5900_vm8, %v5791_v59, %v5899_v51  ;;  %vm5906_vm8 = vmmov %vm5904_vm9 }
0x1664   :  { %v4589_v11 = vpop.permute.xlu2 %2049 }
0x1665   :  { %v764_v61 = vadd.f32 %v758_v57, %v735_v38  ;;  %v5903_v38 = vld [vmem:[#allocation79_spill] sm:$0xff]  ;;  %v5905_v57 = vld [vmem:[#allocation85_spill] sm:$0xff] }
0x1666   :  { %v906_v46 = vsel %vm5904_vm9, %v5795_v16, %v5903_v38  ;;  %v935_v59 = vsel %vm5906_vm8, %v5797_v33, %v5905_v57  ;;  %vm5917_vm8 = vcmask 654336   ;;  %v5979_v57 = vld [vmem:[#allocation180_spill] sm:$0xff]  ;;  %v5982_v38 = vld [vmem:[#allocation186_spill] sm:$0xff] }
0x1667   :  { %v794_v56 = vadd.f32 %v788_v30, %v764_v61  ;;  %v5907_v30 = vld [vmem:[#allocation87_spill] sm:$0xff] }
0x1668   :  { %v965_v61 = vsel %vm5908_vm11, %v5799_v8, %v5907_v30  ;;  %vm5920_vm11 = vmmov %vm5917_vm8  ;;  %v5922_v30 = vld [vmem:[#allocation106_spill] sm:$0xff] }
0x166c   :  { %v2066_v19 = vpop.permute.xlu2 %2065 }
0x166d   :  { %v2070_v55 = vmul.f32 %v4488_v52, %v2066_v19  ;;  %v2069_v31 = vmul.f32 %v4482_v3, %v2066_v19  ;;  %v2068_v47 = vmul.f32 %v4476_v18, %v2066_v19  ;;  %v2071_v9 = vmul.f32 %v4500_v58, %v2066_v19 }
0x166f   :  { %2080 = vrot.lane.b32.xlu2 %v2070_v55, %s3208_s21  ;;  %2078 = vrot.lane.b32.xlu1 %v2069_v31, %s3208_s21  ;;  %v823_v55 = vadd.f32 %v817_v35, %v794_v56  ;;  %v5901_v31 = vld [vmem:[#allocation75_spill] sm:$0xff] }
0x1670   :  { %2076 = vrot.lane.b32.xlu0 %v2068_v47, %s3208_s21  ;;  %v876_v27 = vsel %vm5902_vm10, %v5793_v54, %v5901_v31  ;;  %vm5912_vm10 = vcmask 662528  }
0x1671   :  { %v853_v42 = vadd.f32 %v847_v45, %v823_v55  ;;  %v5909_v45 = vld [vmem:[#allocation91_spill] sm:$0xff]  ;;  %vm5914_vm9 = vmmov %vm5912_vm10 }
0x1672   :  { %v994_v54 = vsel %vm5910_vm7, %v5801_v63, %v5909_v45  ;;  %v5921_v45 = vld [vmem:[#allocation111_spill] sm:$0xff]  ;;  %vm5923_vm7 = vcmask 646144  }
0x1673   :  { %v882_v47 = vadd.f32 %v876_v27, %v853_v42  ;;  %v5913_v42 = vld [vmem:[#allocation101_spill] sm:$0xff] }
0x1674   :  { %v1053_v33 = vsel %vm5914_vm9, %v5805_v37, %v5913_v42  ;;  %v5928_v42 = vld [vmem:[#allocation114_spill] sm:$0xff]  ;;  %vm5929_vm9 = vcmask 637952  }
0x1675   :  { %v912_v19 = vadd.f32 %v906_v46, %v882_v47  ;;  %v5915_v46 = vld [vmem:[#allocation103_spill] sm:$0xff]  ;;  %v5916_v47 = vld [vmem:[#allocation98_spill] sm:$0xff] }
0x1676   :  { %v1083_v8 = vsel %vm5917_vm8, %v5916_v47, %v5915_v46  ;;  %vm5932_vm8 = vmmov %vm5929_vm9  ;;  %v5934_v46 = vld [vmem:[#allocation122_spill] sm:$0xff] }
0x1677   :  { %2095 = vperm.xlu1 %3072, %v4315_v29   ;;  %v941_v35 = vadd.f32 %v935_v59, %v912_v19 }
0x1678   :  { %2082 = vrot.lane.b32.xlu0 %v2071_v9, %s3208_s21  ;;  %v5911_v9 = vld [vmem:[#allocation95_spill] sm:$0xff] }
0x1679   :  { %v971_v56 = vadd.f32 %v965_v61, %v941_v35  ;;  %v1024_v16 = vsel %vm5912_vm10, %v5803_v39, %v5911_v9  ;;  %v5918_v61 = vld [vmem:[#allocation107_spill] sm:$0xff]  ;;  %v5919_v35 = vld [vmem:[#allocation100_spill] sm:$0xff]  ;;  %v1142_v39 = vsel %vm5923_vm7, %v5922_v30, %v5921_v45  ;;  %v5925_v9 = vld [vmem:[#allocation110_spill] sm:$0xff] }
0x167a   :  { %v1112_v63 = vsel %vm5920_vm11, %v5919_v35, %v5918_v61  ;;  %vm5926_vm10 = vmmov %vm5923_vm7  ;;  %v5933_v61 = vld [vmem:[#allocation127_spill] sm:$0xff]  ;;  %vm5935_vm11 = vcmask 506880   ;;  %v5937_v45 = vld [vmem:[#allocation126_spill] sm:$0xff] }
0x167b   :  { %v1000_v55 = vadd.f32 %v994_v54, %v971_v56  ;;  %v5924_v54 = vld [vmem:[#allocation117_spill] sm:$0xff]  ;;  %v1260_v30 = vsel %vm5935_vm11, %v5934_v46, %v5933_v61  ;;  %vm5938_vm7 = vmmov %vm5935_vm11  ;;  %v5949_v61 = vld [vmem:[#allocation142_spill] sm:$0xff] }
0x167c   :  { %v1171_v37 = vsel %vm5926_vm10, %v5925_v9, %v5924_v54  ;;  %v5940_v54 = vld [vmem:[#allocation130_spill] sm:$0xff]  ;;  %vm5941_vm10 = vcmask 498688  }
0x167d   :  { %v1030_v27 = vadd.f32 %v1024_v16, %v1000_v55  ;;  %v5927_v55 = vld [vmem:[#allocation119_spill] sm:$0xff] }
0x167e   :  { %v1201_v47 = vsel %vm5929_vm9, %v5928_v42, %v5927_v55  ;;  %vm5944_vm9 = vmmov %vm5941_vm10  ;;  %v5946_v55 = vld [vmem:[#allocation138_spill] sm:$0xff] }
0x167f   :  { %v1059_v59 = vadd.f32 %v1053_v33, %v1030_v27 }
0x1681   :  { %v1089_v19 = vadd.f32 %v1083_v8, %v1059_v59  ;;  %v5930_v8 = vld [vmem:[#allocation123_spill] sm:$0xff]  ;;  %v5931_v59 = vld [vmem:[#allocation116_spill] sm:$0xff] }
0x1682   :  { %v1230_v35 = vsel %vm5932_vm8, %v5931_v59, %v5930_v8  ;;  %v5945_v8 = vld [vmem:[#allocation143_spill] sm:$0xff]  ;;  %vm5947_vm8 = vcmask 490496  }
0x1683   :  { %v1118_v56 = vadd.f32 %v1112_v63, %v1089_v19  ;;  %v5936_v63 = vld [vmem:[#allocation133_spill] sm:$0xff]  ;;  %v1378_v46 = vsel %vm5947_vm8, %v5946_v55, %v5945_v8  ;;  %vm5950_vm11 = vmmov %vm5947_vm8  ;;  %v5961_v8 = vld [vmem:[#allocation158_spill] sm:$0xff] }
0x1684   :  { %v1289_v9 = vsel %vm5938_vm7, %v5937_v45, %v5936_v63  ;;  %v5952_v63 = vld [vmem:[#allocation146_spill] sm:$0xff]  ;;  %vm5953_vm7 = vcmask 482304  }
0x1685   :  { %v1148_v16 = vadd.f32 %v1142_v39, %v1118_v56  ;;  %v5939_v56 = vld [vmem:[#allocation135_spill] sm:$0xff] }
0x1686   :  { %v1319_v42 = vsel %vm5941_vm10, %v5940_v54, %v5939_v56  ;;  %vm5956_vm10 = vmmov %vm5953_vm7  ;;  %v5958_v56 = vld [vmem:[#allocation154_spill] sm:$0xff] }
0x1687   :  { %v1177_v33 = vadd.f32 %v1171_v37, %v1148_v16 }
0x1689   :  { %v1207_v27 = vadd.f32 %v1201_v47, %v1177_v33  ;;  %v5942_v47 = vld [vmem:[#allocation139_spill] sm:$0xff]  ;;  %v5943_v33 = vld [vmem:[#allocation132_spill] sm:$0xff] }
0x168a   :  { %v1348_v59 = vsel %vm5944_vm9, %v5943_v33, %v5942_v47  ;;  %v5957_v47 = vld [vmem:[#allocation159_spill] sm:$0xff]  ;;  %vm5959_vm9 = vcmask 474112  }
0x168b   :  { %v1236_v19 = vadd.f32 %v1230_v35, %v1207_v27  ;;  %v5948_v35 = vld [vmem:[#allocation149_spill] sm:$0xff]  ;;  %v1496_v55 = vsel %vm5959_vm9, %v5958_v56, %v5957_v47  ;;  %vm5962_vm8 = vmmov %vm5959_vm9  ;;  %v5970_v56 = vld [vmem:[#allocation170_spill] sm:$0xff] }
0x168c   :  { %v1407_v45 = vsel %vm5950_vm11, %v5949_v61, %v5948_v35  ;;  %v5964_v35 = vld [vmem:[#allocation162_spill] sm:$0xff]  ;;  %vm5965_vm11 = vcmask 465920   ;;  %v5972_v47 = vld [vmem:[#allocation181_spill] sm:$0xff] }
0x168d   :  { %v1266_v39 = vadd.f32 %v1260_v30, %v1236_v19  ;;  %v5951_v19 = vld [vmem:[#allocation151_spill] sm:$0xff] }
0x168e   :  { %v1437_v54 = vsel %vm5953_vm7, %v5952_v63, %v5951_v19  ;;  %vm5968_vm7 = vmmov %vm5965_vm11  ;;  %v5969_v19 = vld [vmem:[#allocation175_spill] sm:$0xff] }
0x168f   :  { %v1295_v37 = vadd.f32 %v1289_v9, %v1266_v39 }
0x1691   :  { %v1325_v16 = vadd.f32 %v1319_v42, %v1295_v37  ;;  %v5954_v42 = vld [vmem:[#allocation155_spill] sm:$0xff]  ;;  %v5955_v37 = vld [vmem:[#allocation148_spill] sm:$0xff] }
0x1692   :  { %v1466_v33 = vsel %vm5956_vm10, %v5955_v37, %v5954_v42  ;;  %v5967_v37 = vld [vmem:[#allocation164_spill] sm:$0xff]  ;;  %vm5971_vm10 = vcmask 457728  }
0x1693   :  { %v1354_v27 = vadd.f32 %v1348_v59, %v1325_v16  ;;  %v5960_v59 = vld [vmem:[#allocation165_spill] sm:$0xff]  ;;  %vm5974_vm9 = vmmov %vm5971_vm10 }
0x1694   :  { %v1525_v61 = vsel %vm5962_vm8, %v5961_v8, %v5960_v59  ;;  %v5973_v8 = vld [vmem:[#allocation174_spill] sm:$0xff]  ;;  %vm5977_vm8 = vcmask 326656  }
0x1695   :  { %v1384_v30 = vadd.f32 %v1378_v46, %v1354_v27  ;;  %v5963_v27 = vld [vmem:[#allocation167_spill] sm:$0xff] }
0x1696   :  { %v1555_v63 = vsel %vm5965_vm11, %v5964_v35, %v5963_v27  ;;  %v5975_v35 = vld [vmem:[#allocation183_spill] sm:$0xff]  ;;  %vm5980_vm11 = vmmov %vm5977_vm8 }
0x1697   :  { %v1413_v9 = vadd.f32 %v1407_v45, %v1384_v30  ;;  %v4696_v30 = vpop.permute.xlu1 %1992  ;;  %v5978_v27 = vld [vmem:[#allocation187_spill] sm:$0xff] }
0x1699   :  { %v1443_v39 = vadd.f32 %v1437_v54, %v1413_v9  ;;  %v5966_v9 = vld [vmem:[#allocation171_spill] sm:$0xff] }
0x169a   :  { %v1584_v42 = vsel %vm5968_vm7, %v5967_v37, %v5966_v9  ;;  %v1702_v37 = vsel %vm5980_vm11, %v5979_v57, %v5978_v27  ;;  %v5981_v9 = vld [vmem:[#allocation191_spill] sm:$0xff]  ;;  %vm5986_vm7 = vcmask 310272   ;;  %vm2143_vm11 = vcmask 138240  }
0x169b   :  { %v1472_v16 = vadd.f32 %v1466_v33, %v1443_v39  ;;  %v1614_v39 = vsel %vm5971_vm10, %v5970_v56, %v5969_v19  ;;  %v5983_v56 = vld [vmem:[#allocation197_spill] sm:$0xff]  ;;  %vm5988_vm10 = vmmov %vm5986_vm7 }
0x169d   :  { %v1502_v46 = vadd.f32 %v1496_v55, %v1472_v16  ;;  %v1643_v55 = vsel %vm5974_vm9, %v5973_v8, %v5972_v47  ;;  %v5985_v47 = vld [vmem:[#allocation199_spill] sm:$0xff]  ;;  %vm2025_vm9 = vcmask 277504  }
0x169f   :  { %v1531_v45 = vadd.f32 %v1525_v61, %v1502_v46  ;;  %v2018_v59 = vpop.permute.xlu1 %2017  ;;  %v5976_v61 = vld [vmem:[#allocation178_spill] sm:$0xff] }
0x16a0   :  { %v1673_v46 = vsel %vm5977_vm8, %v5976_v61, %v5975_v35  ;;  %vm2084_vm8 = vcmask 146432  }
0x16a1   :  { %v1561_v54 = vadd.f32 %v1555_v63, %v1531_v45 }
0x16a3   :  { %v1590_v33 = vadd.f32 %v1584_v42, %v1561_v54  ;;  %v1732_v42 = vsel %vm1730_vm13, %v5982_v38, %v5981_v9 }
0x16a5   :  { %v1620_v16 = vadd.f32 %v1614_v39, %v1590_v33  ;;  %v1761_v39 = vsel %vm1730_vm13, %v5854_v5, %v5983_v56 }
0x16a7   :  { %v1649_v63 = vadd.f32 %v1643_v55, %v1620_v16  ;;  %v4719_v8 = vpop.permute.xlu1 %2021  ;;  %v1791_v55 = vsel %vm5986_vm7, %v5856_v14, %v5985_v47  ;;  %v5991_v14 = vld [vmem:[#allocation211_spill] sm:$0xff]  ;;  %vm2202_vm7 = vcmask 130048  }
0x16a8   :  { %5984 = vst [vmem:[#allocation62_spill] sm:$0xff] %v4719_v8 }
0x16a9   :  { %v1679_v45 = vadd.f32 %v1673_v46, %v1649_v63  ;;  %v5987_v46 = vld [vmem:[#allocation203_spill] sm:$0xff] }
0x16aa   :  { %v1820_v57 = vsel %vm5988_vm10, %v5858_v28, %v5987_v46  ;;  %v5989_v63 = vld [vmem:[#allocation207_spill] sm:$0xff]  ;;  %v5992_v28 = vld [vmem:[#allocation44_spill] sm:$0xff]  ;;  %vm6036_vm10 = vcmask 842752  }
0x16ab   :  { %v1708_v54 = vadd.f32 %v1702_v37, %v1679_v45  ;;  %v1850_v38 = vsel %vm1848_vm14, %v5860_v22, %v5989_v63  ;;  %v5990_v37 = vld [vmem:[#allocation210_spill] sm:$0xff]  ;;  %v1968_v22 = vsel %vm1966_vm12, %v4260_v7, %v4455_v6 }
0x16ac   :  { %v1879_v5 = vsel %vm1848_vm14, %v5862_v10, %v5990_v37  ;;  %v1997_v10 = vsel %vm1966_vm12, %v4467_v15, %v4696_v30  ;;  %v5995_v15 = vld [vmem:[#allocation48_spill] sm:$0xff] }
0x16ad   :  { %v1738_v33 = vadd.f32 %v1732_v42, %v1708_v54  ;;  %v3209_v42 = vmov 36  }
0x16ae   :  { %3073 = vset.pattern.permute.xlu0 %v3209_v42 }
0x16af   :  { %v1767_v16 = vadd.f32 %v1761_v39, %v1738_v33  ;;  %v2048_v56 = vpop.permute.xlu1 %2047  ;;  %v1909_v39 = vsel %vm1907_vm15, %v4216_v40, %v5991_v14  ;;  %v2027_v40 = vsel %vm2025_vm9, %v4561_v43, %v4719_v8 }
0x16b0   :  { %v2055_v42 = vsel %vm2025_vm9, %v2048_v56, %v4589_v11 }
0x16b1   :  { %v1797_v61 = vadd.f32 %v1791_v55, %v1767_v16  ;;  %v1938_v16 = vsel %vm1907_vm15, %v4220_v17, %v5992_v28 }
0x16b3   :  { %v1826_v45 = vadd.f32 %v1820_v57, %v1797_v61 }
0x16b5   :  { %v1856_v54 = vadd.f32 %v1850_v38, %v1826_v45  ;;  %v4750_v45 = vpop.permute.xlu0 %2051 }
0x16b6   :  { %5994 = vst [vmem:[#allocation66_spill] sm:$0xff] %v4750_v45 }
0x16b7   :  { %v1885_v33 = vadd.f32 %v1879_v5, %v1856_v54  ;;  %v4745_v38 = vpop.permute.xlu1 %2053  ;;  %v2026_v5 = vsel %vm2025_vm9, %v2018_v59, %v4561_v43 }
0x16b8   :  { %5993 = vst [vmem:[#allocation64_spill] sm:$0xff] %v4745_v38  ;;  %v2032_v54 = vadd.f32 %v2026_v5, %v5995_v15  ;;  %v5998_v5 = vld [vmem:[#allocation52_spill] sm:$0xff]  ;;  %v5999_v38 = vld [vmem:[#allocation50_spill] sm:$0xff] }
0x16b9   :  { %v1915_v55 = vadd.f32 %v1909_v39, %v1885_v33  ;;  %v2056_v39 = vsel %vm2025_vm9, %v4589_v11, %v4750_v45 }
0x16bb   :  { %v1944_v61 = vadd.f32 %v1938_v16, %v1915_v55 }
0x16bd   :  { %v1974_v57 = vadd.f32 %v1968_v22, %v1944_v61  ;;  %v2061_v22 = vadd.f32 %v2055_v42, %v2032_v54  ;;  %v6001_v54 = vld [vmem:[#allocation213_spill] sm:$0xff] }
0x16bf   :  { %v2003_v17 = vadd.f32 %v1997_v10, %v1974_v57 }
0x16c1   :  { %v2033_v7 = vadd.f32 %v2027_v40, %v2003_v17  ;;  %v5997_v40 = vld [vmem:[#allocation54_spill] sm:$0xff] }
0x16c3   :  { %v2062_v33 = vadd.f32 %v2056_v39, %v2033_v7  ;;  %v6000_v7 = vld [vmem:[#allocation56_spill] sm:$0xff] }
0x16c9   :  { %v4760_v55 = vpop.permute.xlu2 %2080 }
0x16ca   :  { %5996 = vst [vmem:[#allocation70_spill] sm:$0xff] %v4760_v55 }
0x16e1   :  { %v2079_v16 = vpop.permute.xlu1 %2078 }
0x16e2   :  { %v2086_v61 = vsel %vm2084_vm8, %v2079_v16, %v4760_v55  ;;  %v2077_v43 = vpop.permute.xlu0 %2076 }
0x16e3   :  { %v2092_v59 = vadd.f32 %v2086_v61, %v2062_v33  ;;  %v2085_v10 = vsel %vm2084_vm8, %v2077_v43, %v2079_v16  ;;  %v3210_v33 = vmov 37  }
0x16e4   :  { %v2091_v56 = vadd.f32 %v2085_v10, %v2061_v22  ;;  %3074 = vset.pattern.permute.xlu2 %v3210_v33  ;;  %3075 = vset.pattern.permute.xlu1 %v3210_v33 }
0x16e9   :  { %v2096_v57 = vpop.permute.xlu1 %2095 }
0x16ea   :  { %v2098_v17 = vmul.f32 %v5997_v40, %v2096_v57  ;;  %v2099_v15 = vmul.f32 %v5998_v5, %v2096_v57  ;;  %v2100_v11 = vmul.f32 %v5999_v38, %v2096_v57  ;;  %v2101_v42 = vmul.f32 %v6000_v7, %v2096_v57  ;;  %v4775_v39 = vpop.permute.xlu0 %2082 }
0x16eb   :  { %6002 = vst [vmem:[#allocation68_spill] sm:$0xff] %v4775_v39 }
0x16ec   :  { %2110 = vrot.lane.b32.xlu1 %v2100_v11, %s3208_s21  ;;  %2106 = vrot.lane.b32.xlu2 %v2098_v17, %s3208_s21 }
0x16ed   :  { %2108 = vrot.lane.b32.xlu0 %v2099_v15, %s3208_s21 }
0x16f4   :  { %2112 = vrot.lane.b32.xlu2 %v2101_v42, %s3208_s21 }
0x16f5   :  { %2124 = vperm.xlu0 %3073, %v6001_v54  }
0x16fd   :  { %2154 = vperm.xlu0 %3073, %v4315_v29  }
0x1746   :  { %v2107_v22 = vpop.permute.xlu2 %2106 }
0x175e   :  { %v4777_v16 = vpop.permute.xlu1 %2110 }
0x175f   :  { %6003 = vst [vmem:[#allocation72_spill] sm:$0xff] %v4777_v16  ;;  %v2109_v61 = vpop.permute.xlu0 %2108 }
0x1760   :  { %v2114_v43 = vsel %vm2084_vm8, %v2107_v22, %v2109_v61  ;;  %v2115_v10 = vsel %vm2084_vm8, %v2109_v61, %v4777_v16 }
0x1761   :  { %v2120_v57 = vadd.f32 %v2114_v43, %v2091_v56  ;;  %v2121_v17 = vadd.f32 %v2115_v10, %v2092_v59  ;;  %v4791_v43 = vpop.permute.xlu2 %2112 }
0x1762   :  { %6004 = vst [vmem:[#allocation74_spill] sm:$0xff] %v4791_v43 }
0x1767   :  { %v2125_v15 = vpop.permute.xlu0 %2124 }
0x1768   :  { %v2127_v11 = vmul.f32 %v4476_v18, %v2125_v15  ;;  %v2128_v42 = vmul.f32 %v4482_v3, %v2125_v15  ;;  %v2129_v55 = vmul.f32 %v4488_v52, %v2125_v15  ;;  %v2130_v39 = vmul.f32 %v4500_v58, %v2125_v15 }
0x176a   :  { %2137 = vrot.lane.b32.xlu2 %v2128_v42, %s3211_s22  ;;  %2135 = vrot.lane.b32.xlu1 %v2127_v11, %s3211_s22 }
0x176f   :  { %v2155_v33 = vpop.permute.xlu0 %2154 }
0x1770   :  { %v2159_v22 = vmul.f32 %v5999_v38, %v2155_v33  ;;  %v2157_v59 = vmul.f32 %v5997_v40, %v2155_v33  ;;  %v2158_v56 = vmul.f32 %v5998_v5, %v2155_v33  ;;  %v2160_v61 = vmul.f32 %v6000_v7, %v2155_v33 }
0x1772   :  { %2141 = vrot.lane.b32.xlu2 %v2130_v39, %s3211_s22  ;;  %2139 = vrot.lane.b32.xlu1 %v2129_v55, %s3211_s22 }
0x1773   :  { %2169 = vrot.lane.b32.xlu0 %v2159_v22, %s3211_s22 }
0x177a   :  { %2167 = vrot.lane.b32.xlu2 %v2158_v56, %s3211_s22  ;;  %2165 = vrot.lane.b32.xlu1 %v2157_v59, %s3211_s22 }
0x1782   :  { %2183 = vperm.xlu2 %3074, %v6001_v54   ;;  %2171 = vrot.lane.b32.xlu1 %v2160_v61, %s3211_s22 }
0x17c4   :  { %v2138_v10 = vpop.permute.xlu2 %2137 }
0x17cc   :  { %v2142_v15 = vpop.permute.xlu2 %2141 }
0x17d4   :  { %v2168_v11 = vpop.permute.xlu2 %2167 }
0x17dc   :  { %v2136_v39 = vpop.permute.xlu1 %2135  ;;  %v2184_v55 = vpop.permute.xlu2 %2183 }
0x17dd   :  { %v2144_v42 = vsel %vm2143_vm11, %v2136_v39, %v2138_v10  ;;  %v2186_v22 = vmul.f32 %v4476_v18, %v2184_v55  ;;  %v2187_v56 = vmul.f32 %v4482_v3, %v2184_v55  ;;  %v2188_v59 = vmul.f32 %v4488_v52, %v2184_v55 }
0x17de   :  { %v2150_v33 = vadd.f32 %v2144_v42, %v2120_v57  ;;  %v2189_v16 = vmul.f32 %v4500_v58, %v2184_v55 }
0x17df   :  { %2198 = vrot.lane.b32.xlu2 %v2188_v59, %s3212_s23  ;;  %2194 = vrot.lane.b32.xlu0 %v2186_v22, %s3212_s23  ;;  %v3213_v59 = vmov 38  }
0x17e0   :  { %2196 = vrot.lane.b32.xlu1 %v2187_v56, %s3212_s23  ;;  %3076 = vset.pattern.permute.xlu0 %v3213_v59  ;;  %v6010_v59 = vld [vmem:[#allocation2_spill] sm:$0xff] }
0x17e4   :  { %v2140_v61 = vpop.permute.xlu1 %2139 }
0x17e5   :  { %v2145_v43 = vsel %vm2143_vm11, %v2138_v10, %v2140_v61  ;;  %v4803_v39 = vsel %vm2143_vm11, %v2140_v61, %v2142_v15  ;;  %v4805_v45 = vpop.permute.xlu0 %2169 }
0x17e6   :  { %6005 = vst [vmem:[#allocation76_spill] sm:$0xff] %v4803_v39  ;;  %v2151_v8 = vadd.f32 %v2145_v43, %v2121_v17  ;;  %v2174_v57 = vsel %vm2143_vm11, %v2168_v11, %v4805_v45  ;;  %v6016_v39 = vld [vmem:[#allocation18_spill] sm:$0xff] }
0x17e7   :  { %6006 = vst [vmem:[#allocation78_spill] sm:$0xff] %v4805_v45  ;;  %2200 = vrot.lane.b32.xlu0 %v2189_v16, %s3212_s23 }
0x17e8   :  { %v2180_v42 = vadd.f32 %v2174_v57, %v2151_v8  ;;  %2213 = vperm.xlu1 %3075, %v4315_v29  }
0x17ec   :  { %v2166_v22 = vpop.permute.xlu1 %2165 }
0x17ed   :  { %v2173_v56 = vsel %vm2143_vm11, %v2166_v22, %v2168_v11 }
0x17ee   :  { %v2179_v55 = vadd.f32 %v2173_v56, %v2150_v33 }
0x17f4   :  { %v4812_v10 = vpop.permute.xlu1 %2171 }
0x17f5   :  { %6007 = vst [vmem:[#allocation80_spill] sm:$0xff] %v4812_v10  ;;  %v6015_v10 = vld [vmem:[#allocation12_spill] sm:$0xff] }
0x1839   :  { %v4814_v61 = vpop.permute.xlu2 %2198 }
0x183a   :  { %6008 = vst [vmem:[#allocation82_spill] sm:$0xff] %v4814_v61 }
0x1851   :  { %v2195_v15 = vpop.permute.xlu0 %2194 }
0x1852   :  { %v2197_v17 = vpop.permute.xlu1 %2196 }
0x1853   :  { %v2203_v43 = vsel %vm2202_vm7, %v2195_v15, %v2197_v17  ;;  %v2204_v8 = vsel %vm2202_vm7, %v2197_v17, %v4814_v61  ;;  %v31_v15 = vmul.f32 %v4488_v52, %v6010_v59  ;;  %v6011_v17 = vld [vmem:[#allocation10_spill] sm:$0xff] }
0x1854   :  { %v2209_v16 = vadd.f32 %v2203_v43, %v2179_v55  ;;  %v2210_v57 = vadd.f32 %v2204_v8, %v2180_v42  ;;  %v6009_v42 = vld [vmem:[#allocation3_spill] sm:$0xff]  ;;  %v77_v43 = vsel %vm74_vm0, %v5869_v60, %v6011_v17  ;;  %v199_v60 = vsel %vm196_vm2, %v6016_v39, %v6015_v10 }
0x1855   :  { %v46_v55 = vmul.f32 %v5999_v38, %v6009_v42 }
0x1857   :  { %v49_v8 = vadd.f32 %v46_v55, %v31_v15  ;;  %v6017_v55 = vld [vmem:[#allocation19_spill] sm:$0xff] }
0x1859   :  { %v4851_v17 = vpop.permute.xlu0 %2200 }
0x185a   :  { %v2214_v45 = vpop.permute.xlu1 %2213 }
0x185b   :  { %v2216_v11 = vmul.f32 %v5997_v40, %v2214_v45  ;;  %v2217_v33 = vmul.f32 %v5998_v5, %v2214_v45  ;;  %v2218_v22 = vmul.f32 %v5999_v38, %v2214_v45  ;;  %v2219_v56 = vmul.f32 %v6000_v7, %v2214_v45 }
0x185d   :  { %2228 = vrot.lane.b32.xlu1 %v2218_v22, %s3212_s23  ;;  %2226 = vrot.lane.b32.xlu0 %v2217_v33, %s3212_s23  ;;  %v6013_v33 = vld [vmem:[#allocation17_spill] sm:$0xff] }
0x185e   :  { %2224 = vrot.lane.b32.xlu2 %v2216_v11, %s3212_s23  ;;  %v6012_v11 = vld [vmem:[#allocation15_spill] sm:$0xff] }
0x185f   :  { %v110_v45 = vsel %vm74_vm0, %v5870_v13, %v6012_v11  ;;  %v228_v13 = vsel %vm196_vm2, %v5874_v0, %v6017_v55  ;;  %v6019_v11 = vld [vmem:[#allocation9_spill] sm:$0xff]  ;;  %v6022_v55 = vld [vmem:[#allocation23_spill] sm:$0xff]  ;;  %vm6028_vm0 = vcmask 859136   ;;  %vm6032_vm2 = vcmask 850944  }
0x1865   :  { %2242 = vperm.xlu0 %3076, %v6001_v54   ;;  %v83_v54 = vadd.f32 %v77_v43, %v49_v8  ;;  %v6018_v43 = vld [vmem:[#allocation20_spill] sm:$0xff] }
0x1866   :  { %2230 = vrot.lane.b32.xlu2 %v2219_v56, %s3212_s23  ;;  %v6014_v56 = vld [vmem:[#allocation6_spill] sm:$0xff]  ;;  %s3220_s23 = smov 12  }
0x1867   :  { %v116_v22 = vadd.f32 %v110_v45, %v83_v54  ;;  %v169_v42 = vsel %vm137_vm1, %v5872_v20, %v6014_v56  ;;  %v287_v20 = vsel %vm255_vm3, %v5876_v50, %v6019_v11  ;;  %v3214_v54 = vmov 39  }
0x1868   :  { %3077 = vset.pattern.permute.xlu2 %v3214_v54  ;;  %3078 = vset.pattern.permute.xlu1 %v3214_v54 }
0x186d   :  { %2272 = vperm.xlu0 %3076, %v4315_v29   ;;  %v140_v29 = vsel %vm137_vm1, %v5871_v53, %v6013_v33  ;;  %v258_v53 = vsel %vm255_vm3, %v5875_v44, %v6018_v43  ;;  %v6024_v43 = vld [vmem:[#allocation27_spill] sm:$0xff]  ;;  %vm6030_vm1 = vmmov %vm6028_vm0 }
0x186e   :  { %v146_v59 = vadd.f32 %v140_v29, %v116_v22  ;;  %v6021_v22 = vld [vmem:[#allocation22_spill] sm:$0xff] }
0x186f   :  { %v346_v44 = vsel %vm314_vm4, %v5879_v41, %v6021_v22  ;;  %v6031_v22 = vld [vmem:[#allocation36_spill] sm:$0xff] }
0x1870   :  { %v175_v61 = vadd.f32 %v169_v42, %v146_v59 }
0x1872   :  { %v205_v15 = vadd.f32 %v199_v60, %v175_v61  ;;  %v6020_v61 = vld [vmem:[#allocation16_spill] sm:$0xff] }
0x1873   :  { %v317_v29 = vsel %vm314_vm4, %v5877_v34, %v6020_v61  ;;  %v6023_v34 = vld [vmem:[#allocation26_spill] sm:$0xff] }
0x1874   :  { %v234_v8 = vadd.f32 %v228_v13, %v205_v15  ;;  %v376_v13 = vsel %vm373_vm5, %v5880_v24, %v6022_v55  ;;  %v6029_v61 = vld [vmem:[#allocation34_spill] sm:$0xff] }
0x1876   :  { %v264_v45 = vadd.f32 %v258_v53, %v234_v8  ;;  %v405_v53 = vsel %vm373_vm5, %v6024_v43, %v6023_v34  ;;  %v6025_v8 = vld [vmem:[#allocation28_spill] sm:$0xff]  ;;  %v6035_v43 = vld [vmem:[#allocation39_spill] sm:$0xff] }
0x1877   :  { %v435_v11 = vsel %vm432_vm6, %v5882_v1, %v6025_v8 }
0x1878   :  { %v293_v39 = vadd.f32 %v287_v20, %v264_v45 }
0x187a   :  { %v323_v42 = vadd.f32 %v317_v29, %v293_v39  ;;  %v523_v29 = vsel %vm6030_vm1, %v5886_v32, %v6029_v61  ;;  %v612_v32 = vsel %vm6036_vm10, %v5889_v48, %v6035_v43  ;;  %vm6041_vm1 = vcmask 834560   ;;  %v6059_v43 = vld [vmem:[#allocation81_spill] sm:$0xff] }
0x187c   :  { %v352_v15 = vadd.f32 %v346_v44, %v323_v42  ;;  %v553_v44 = vsel %vm6032_vm2, %v5887_v25, %v6031_v22  ;;  %v6033_v42 = vld [vmem:[#allocation38_spill] sm:$0xff]  ;;  %v6050_v22 = vld [vmem:[#allocation65_spill] sm:$0xff] }
0x187e   :  { %v382_v41 = vadd.f32 %v376_v13, %v352_v15 }
0x1880   :  { %v411_v20 = vadd.f32 %v405_v53, %v382_v41  ;;  %v6037_v53 = vld [vmem:[#allocation42_spill] sm:$0xff] }
0x1882   :  { %v441_v39 = vadd.f32 %v435_v11, %v411_v20  ;;  %v6040_v11 = vld [vmem:[#allocation45_spill] sm:$0xff] }
0x1883   :  { %v671_v20 = vsel %vm6041_vm1, %v5891_v62, %v6040_v11  ;;  %v6046_v62 = vld [vmem:[#allocation57_spill] sm:$0xff] }
0x18b8   :  { %v2225_v10 = vpop.permute.xlu2 %2224 }
0x18cf   :  { %v4859_v33 = vpop.permute.xlu1 %2228  ;;  %v2227_v0 = vpop.permute.xlu0 %2226 }
0x18d0   :  { %v2232_v56 = vsel %vm2202_vm7, %v2225_v10, %v2227_v0  ;;  %v2233_v50 = vsel %vm2202_vm7, %v2227_v0, %v4859_v33  ;;  %v6027_v10 = vld [vmem:[#allocation31_spill] sm:$0xff] }
0x18d1   :  { %v4870_v59 = vadd.f32 %v2232_v56, %v2209_v16  ;;  %v4872_v60 = vadd.f32 %v2233_v50, %v2210_v57  ;;  %v6026_v16 = vld [vmem:[#allocation30_spill] sm:$0xff]  ;;  %v494_v0 = vsel %vm6028_vm0, %v5884_v12, %v6027_v10  ;;  %vm6039_vm0 = vmmov %vm6036_vm10 }
0x18d2   :  { %v464_v57 = vsel %vm432_vm6, %v5883_v2, %v6026_v16  ;;  %vm6034_vm6 = vmmov %vm6032_vm2  ;;  %v6042_v16 = vld [vmem:[#allocation49_spill] sm:$0xff] }
0x18d3   :  { %v470_v1 = vadd.f32 %v464_v57, %v441_v39  ;;  %v582_v12 = vsel %vm6034_vm6, %v5888_v23, %v6033_v42  ;;  %v6038_v23 = vld [vmem:[#allocation43_spill] sm:$0xff]  ;;  %vm6043_vm2 = vmmov %vm6041_vm1  ;;  %vm6045_vm6 = vcmask 826368  }
0x18d4   :  { %v641_v41 = vsel %vm6039_vm0, %v6038_v23, %v6037_v53  ;;  %v700_v48 = vsel %vm6043_vm2, %v5892_v49, %v6042_v16  ;;  %v6044_v39 = vld [vmem:[#allocation51_spill] sm:$0xff]  ;;  %vm6047_vm10 = vmmov %vm6045_vm6  ;;  %v6048_v49 = vld [vmem:[#allocation61_spill] sm:$0xff]  ;;  %vm6049_vm0 = vcmask 818176   ;;  %vm6053_vm2 = vcmask 687104  }
0x18d5   :  { %v500_v2 = vadd.f32 %v494_v0, %v470_v1  ;;  %v730_v10 = vsel %vm6045_vm6, %v5893_v4, %v6044_v39  ;;  %v759_v1 = vsel %vm6047_vm10, %v5894_v26, %v6046_v62  ;;  %vm6051_vm1 = vmmov %vm6049_vm0  ;;  %v6052_v42 = vld [vmem:[#allocation67_spill] sm:$0xff]  ;;  %vm6058_vm10 = vcmask 678912   ;;  %v6071_v39 = vld [vmem:[#allocation97_spill] sm:$0xff] }
0x18d6   :  { %vm6055_vm6 = vmmov %vm6053_vm2  ;;  %v6062_v23 = vld [vmem:[#allocation83_spill] sm:$0xff] }
0x18d7   :  { %v2243_v45 = vpop.permute.xlu0 %2242  ;;  %v529_v56 = vadd.f32 %v523_v29, %v500_v2  ;;  %v789_v29 = vsel %vm6049_vm0, %v5895_v21, %v6048_v49  ;;  %v6054_v21 = vld [vmem:[#allocation73_spill] sm:$0xff]  ;;  %vm6061_vm0 = vmmov %vm6058_vm10 }
0x18d8   :  { %v2245_v54 = vmul.f32 %v4476_v18, %v2243_v45  ;;  %v2246_v24 = vmul.f32 %v4482_v3, %v2243_v45  ;;  %v2247_v55 = vmul.f32 %v4488_v52, %v2243_v45  ;;  %v2248_v34 = vmul.f32 %v4500_v58, %v2243_v45 }
0x18d9   :  { %v559_v15 = vadd.f32 %v553_v44, %v529_v56  ;;  %v818_v44 = vsel %vm6051_vm1, %v5897_v36, %v6050_v22  ;;  %v877_v36 = vsel %vm6055_vm6, %v5901_v31, %v6054_v21  ;;  %vm6064_vm1 = vcmask 670720   ;;  %v6078_v22 = vld [vmem:[#allocation107_spill] sm:$0xff]  ;;  %v6083_v21 = vld [vmem:[#allocation113_spill] sm:$0xff] }
0x18da   :  { %2253 = vrot.lane.b32.xlu1 %v2245_v54, %s3215_s24  ;;  %2255 = vrot.lane.b32.xlu2 %v2246_v24, %s3215_s24  ;;  %vm6070_vm6 = vcmask 662528  }
0x18db   :  { %v588_v25 = vadd.f32 %v582_v12, %v559_v15  ;;  %v848_v12 = vsel %vm6053_vm2, %v5899_v51, %v6052_v42  ;;  %v6057_v15 = vld [vmem:[#allocation79_spill] sm:$0xff]  ;;  %vm6067_vm2 = vmmov %vm6064_vm1 }
0x18dc   :  { %v6081_v42 = vld [vmem:[#allocation111_spill] sm:$0xff] }
0x18dd   :  { %v618_v8 = vadd.f32 %v612_v32, %v588_v25  ;;  %v6060_v32 = vld [vmem:[#allocation85_spill] sm:$0xff] }
0x18de   :  { %v936_v25 = vsel %vm6061_vm0, %v6060_v32, %v6059_v43  ;;  %vm6076_vm0 = vcmask 654336   ;;  %v6089_v32 = vld [vmem:[#allocation121_spill] sm:$0xff] }
0x18df   :  { %v2273_v50 = vpop.permute.xlu0 %2272  ;;  %v647_v45 = vadd.f32 %v641_v41, %v618_v8  ;;  %v6063_v41 = vld [vmem:[#allocation87_spill] sm:$0xff] }
0x18e0   :  { %v2277_v13 = vmul.f32 %v5999_v38, %v2273_v50  ;;  %v2275_v57 = vmul.f32 %v5997_v40, %v2273_v50  ;;  %v2276_v24 = vmul.f32 %v5998_v5, %v2273_v50  ;;  %v2278_v4 = vmul.f32 %v6000_v7, %v2273_v50 }
0x18e1   :  { %v677_v54 = vadd.f32 %v671_v20, %v647_v45  ;;  %v966_v8 = vsel %vm6064_vm1, %v6063_v41, %v6062_v23  ;;  %v6065_v20 = vld [vmem:[#allocation89_spill] sm:$0xff]  ;;  %v6066_v45 = vld [vmem:[#allocation91_spill] sm:$0xff]  ;;  %vm6079_vm1 = vmmov %vm6076_vm0 }
0x18e2   :  { %2257 = vrot.lane.b32.xlu1 %v2247_v55, %s3215_s24  ;;  %2287 = vrot.lane.b32.xlu0 %v2277_v13, %s3215_s24  ;;  %v4944_v55 = vld [vmem:[%s5415_s2] sm:$0xff]  ;;  %v6056_v13 = vld [vmem:[#allocation77_spill] sm:$0xff]  ;;  %v995_v31 = vsel %vm6067_vm2, %v6066_v45, %v6065_v20  ;;  %vm6082_vm2 = vcmask 646144   ;;  %s3216_s2 = smov 14  }
0x18e3   :  { %2259 = vrot.lane.b32.xlu2 %v2248_v34, %s3215_s24  ;;  %v706_v0 = vadd.f32 %v700_v48, %v677_v54  ;;  %v907_v34 = vsel %vm6058_vm10, %v6057_v15, %v6056_v13  ;;  %v6068_v48 = vld [vmem:[#allocation93_spill] sm:$0xff]  ;;  %vm6073_vm10 = vmmov %vm6070_vm6  ;;  %v6086_v15 = vld [vmem:[#allocation115_spill] sm:$0xff] }
0x18e4   :  { %v6092_v41 = vld [vmem:[#allocation125_spill] sm:$0xff] }
0x18e5   :  { %v736_v61 = vadd.f32 %v730_v10, %v706_v0  ;;  %v6072_v10 = vld [vmem:[#allocation101_spill] sm:$0xff] }
0x18e6   :  { %v1054_v0 = vsel %vm6073_vm10, %v6072_v10, %v6071_v39  ;;  %vm6088_vm10 = vcmask 637952   ;;  %v6095_v45 = vld [vmem:[#allocation129_spill] sm:$0xff] }
0x18e7   :  { %v765_v2 = vadd.f32 %v759_v1, %v736_v61  ;;  %v6074_v1 = vld [vmem:[#allocation99_spill] sm:$0xff]  ;;  %v6101_v10 = vld [vmem:[#allocation137_spill] sm:$0xff] }
0x18e8   :  { %v6075_v61 = vld [vmem:[#allocation103_spill] sm:$0xff] }
0x18e9   :  { %v795_v56 = vadd.f32 %v789_v29, %v765_v2  ;;  %v1084_v49 = vsel %vm6076_vm0, %v6075_v61, %v6074_v1  ;;  %v6077_v2 = vld [vmem:[#allocation105_spill] sm:$0xff]  ;;  %vm6091_vm0 = vmmov %vm6088_vm10 }
0x18ea   :  { %2283 = vrot.lane.b32.xlu1 %v2275_v57, %s3215_s24  ;;  %v6069_v57 = vld [vmem:[#allocation95_spill] sm:$0xff]  ;;  %v6104_v61 = vld [vmem:[#allocation141_spill] sm:$0xff] }
0x18eb   :  { %2285 = vrot.lane.b32.xlu2 %v2276_v24, %s3215_s24  ;;  %v824_v26 = vadd.f32 %v818_v44, %v795_v56  ;;  %v1025_v54 = vsel %vm6070_vm6, %v6069_v57, %v6068_v48  ;;  %v1113_v44 = vsel %vm6079_vm1, %v6078_v22, %v6077_v2  ;;  %v6080_v56 = vld [vmem:[#allocation109_spill] sm:$0xff]  ;;  %vm6085_vm6 = vmmov %vm6082_vm2  ;;  %vm6094_vm1 = vcmask 506880   ;;  %v6098_v57 = vld [vmem:[#allocation131_spill] sm:$0xff] }
0x18ec   :  { %v6107_v22 = vld [vmem:[#allocation145_spill] sm:$0xff] }
0x18ed   :  { %v854_v50 = vadd.f32 %v848_v12, %v824_v26  ;;  %v1143_v12 = vsel %vm6082_vm2, %v6081_v42, %v6080_v56  ;;  %vm6097_vm2 = vmmov %vm6094_vm1  ;;  %v6110_v42 = vld [vmem:[#allocation147_spill] sm:$0xff] }
0x18ef   :  { %v883_v51 = vadd.f32 %v877_v36, %v854_v50  ;;  %v6084_v36 = vld [vmem:[#allocation117_spill] sm:$0xff] }
0x18f0   :  { %v1172_v50 = vsel %vm6085_vm6, %v6084_v36, %v6083_v21  ;;  %vm6100_vm6 = vcmask 498688   ;;  %v6113_v36 = vld [vmem:[#allocation153_spill] sm:$0xff] }
0x18f1   :  { %v913_v53 = vadd.f32 %v907_v34, %v883_v51  ;;  %v6087_v34 = vld [vmem:[#allocation119_spill] sm:$0xff] }
0x18f2   :  { %2289 = vrot.lane.b32.xlu1 %v2278_v4, %s3215_s24  ;;  %v1202_v51 = vsel %vm6088_vm10, %v6087_v34, %v6086_v15  ;;  %vm6103_vm10 = vmmov %vm6100_vm6  ;;  %v6116_v34 = vld [vmem:[#allocation157_spill] sm:$0xff] }
0x18f3   :  { %2301 = vperm.xlu2 %3077, %v4944_v55   ;;  %v942_v11 = vadd.f32 %v936_v25, %v913_v53  ;;  %v6090_v25 = vld [vmem:[#allocation123_spill] sm:$0xff] }
0x18f4   :  { %v1231_v53 = vsel %vm6091_vm0, %v6090_v25, %v6089_v32  ;;  %vm6106_vm0 = vcmask 490496   ;;  %v6119_v25 = vld [vmem:[#allocation161_spill] sm:$0xff] }
0x18f5   :  { %v972_v16 = vadd.f32 %v966_v8, %v942_v11  ;;  %v6093_v8 = vld [vmem:[#allocation127_spill] sm:$0xff] }
0x18f6   :  { %v1261_v11 = vsel %vm6094_vm1, %v6093_v8, %v6092_v41  ;;  %vm6109_vm1 = vmmov %vm6106_vm0  ;;  %v6122_v8 = vld [vmem:[#allocation163_spill] sm:$0xff] }
0x18f7   :  { %v1001_v24 = vadd.f32 %v995_v31, %v972_v16  ;;  %v6096_v31 = vld [vmem:[#allocation133_spill] sm:$0xff] }
0x18f8   :  { %v1290_v16 = vsel %vm6097_vm2, %v6096_v31, %v6095_v45  ;;  %vm6112_vm2 = vcmask 482304   ;;  %v6125_v31 = vld [vmem:[#allocation169_spill] sm:$0xff] }
0x18f9   :  { %v1031_v62 = vadd.f32 %v1025_v54, %v1001_v24  ;;  %v6099_v54 = vld [vmem:[#allocation135_spill] sm:$0xff] }
0x18fa   :  { %v1320_v24 = vsel %vm6100_vm6, %v6099_v54, %v6098_v57  ;;  %vm6115_vm6 = vmmov %vm6112_vm2  ;;  %v6128_v54 = vld [vmem:[#allocation173_spill] sm:$0xff] }
0x18fb   :  { %v1060_v29 = vadd.f32 %v1054_v0, %v1031_v62  ;;  %v6102_v0 = vld [vmem:[#allocation139_spill] sm:$0xff] }
0x18fc   :  { %v1349_v62 = vsel %vm6103_vm10, %v6102_v0, %v6101_v10  ;;  %vm6118_vm10 = vcmask 474112   ;;  %v6130_v10 = vld [vmem:[#allocation177_spill] sm:$0xff] }
0x18fd   :  { %v1090_v4 = vadd.f32 %v1084_v49, %v1060_v29  ;;  %v6105_v49 = vld [vmem:[#allocation143_spill] sm:$0xff]  ;;  %v6131_v0 = vld [vmem:[#allocation181_spill] sm:$0xff] }
0x18fe   :  { %v1379_v29 = vsel %vm6106_vm0, %v6105_v49, %v6104_v61  ;;  %vm6121_vm0 = vmmov %vm6118_vm10  ;;  %v6133_v61 = vld [vmem:[#allocation179_spill] sm:$0xff] }
0x18ff   :  { %v1119_v26 = vadd.f32 %v1113_v44, %v1090_v4  ;;  %v6108_v44 = vld [vmem:[#allocation149_spill] sm:$0xff] }
0x1900   :  { %v1408_v4 = vsel %vm6109_vm1, %v6108_v44, %v6107_v22  ;;  %vm6124_vm1 = vcmask 465920   ;;  %v2231_v44 = vpop.permute.xlu2 %2230 }
0x1901   :  { %v1149_v13 = vadd.f32 %v1143_v12, %v1119_v26  ;;  %v6111_v12 = vld [vmem:[#allocation151_spill] sm:$0xff] }
0x1902   :  { %v1438_v26 = vsel %vm6112_vm2, %v6111_v12, %v6110_v42  ;;  %vm6127_vm2 = vmmov %vm6124_vm1  ;;  %v6138_v12 = vld [vmem:[#allocation193_spill] sm:$0xff] }
0x1903   :  { %v1178_v43 = vadd.f32 %v1172_v50, %v1149_v13  ;;  %v6114_v50 = vld [vmem:[#allocation155_spill] sm:$0xff] }
0x1904   :  { %v1467_v13 = vsel %vm6115_vm6, %v6114_v50, %v6113_v36  ;;  %vm6129_vm6 = vcmask 457728   ;;  %v6140_v50 = vld [vmem:[#allocation195_spill] sm:$0xff] }
0x1905   :  { %v1208_v23 = vadd.f32 %v1202_v51, %v1178_v43  ;;  %v6117_v51 = vld [vmem:[#allocation159_spill] sm:$0xff] }
0x1906   :  { %v1497_v43 = vsel %vm6118_vm10, %v6117_v51, %v6116_v34  ;;  %vm6132_vm10 = vmmov %vm6129_vm6 }
0x1907   :  { %v1237_v20 = vadd.f32 %v1231_v53, %v1208_v23  ;;  %v6120_v53 = vld [vmem:[#allocation165_spill] sm:$0xff] }
0x1908   :  { %v1526_v23 = vsel %vm6121_vm0, %v6120_v53, %v6119_v25  ;;  %vm6134_vm0 = vcmask 326656   ;;  %v6145_v25 = vld [vmem:[#allocation208_spill] sm:$0xff] }
0x1909   :  { %v1267_v48 = vadd.f32 %v1261_v11, %v1237_v20  ;;  %v6123_v11 = vld [vmem:[#allocation167_spill] sm:$0xff]  ;;  %v1674_v49 = vsel %vm6134_vm0, %v5975_v35, %v6133_v61  ;;  %v1880_v53 = vsel %vm1848_vm14, %v5990_v37, %v6145_v25  ;;  %v6154_v61 = vld [vmem:[#allocation68_spill] sm:$0xff]  ;;  %v2234_v25 = vsel %vm2202_vm7, %v4859_v33, %v2231_v44 }
0x190a   :  { %v1556_v20 = vsel %vm6124_vm1, %v6123_v11, %v6122_v8  ;;  %vm6136_vm1 = vmmov %vm6134_vm0  ;;  %v6147_v11 = vld [vmem:[#allocation212_spill] sm:$0xff] }
0x190b   :  { %v1296_v39 = vadd.f32 %v1290_v16, %v1267_v48  ;;  %v6126_v16 = vld [vmem:[#allocation171_spill] sm:$0xff] }
0x190c   :  { %v1585_v48 = vsel %vm6127_vm2, %v6126_v16, %v6125_v31  ;;  %vm6141_vm2 = vcmask 310272   ;;  %v6148_v31 = vld [vmem:[#allocation46_spill] sm:$0xff] }
0x190d   :  { %v1326_v1 = vadd.f32 %v1320_v24, %v1296_v39  ;;  %v1615_v24 = vsel %vm6129_vm6, %v5969_v19, %v6128_v54  ;;  %v1792_v35 = vsel %vm6141_vm2, %v5985_v47, %v6140_v50  ;;  %vm6143_vm6 = vmmov %vm6141_vm2  ;;  %v6150_v54 = vld [vmem:[#allocation60_spill] sm:$0xff] }
0x190f   :  { %v1355_v2 = vadd.f32 %v1349_v62, %v1326_v1  ;;  %v1644_v62 = vsel %vm6132_vm10, %v6131_v0, %v6130_v10  ;;  %v6152_v10 = vld [vmem:[#allocation64_spill] sm:$0xff]  ;;  %v6153_v0 = vld [vmem:[#allocation66_spill] sm:$0xff] }
0x1911   :  { %v1385_v56 = vadd.f32 %v1379_v29, %v1355_v2  ;;  %v6135_v2 = vld [vmem:[#allocation185_spill] sm:$0xff] }
0x1912   :  { %v1703_v22 = vsel %vm6136_vm1, %v5978_v27, %v6135_v2  ;;  %v6156_v2 = vld [vmem:[#allocation74_spill] sm:$0xff] }
0x1913   :  { %v1414_v21 = vadd.f32 %v1408_v4, %v1385_v56  ;;  %v6137_v56 = vld [vmem:[#allocation189_spill] sm:$0xff] }
0x1914   :  { %v1733_v19 = vsel %vm1730_vm13, %v5981_v9, %v6137_v56 }
0x1915   :  { %v1444_v15 = vadd.f32 %v1438_v26, %v1414_v21  ;;  %v6139_v26 = vld [vmem:[#allocation197_spill] sm:$0xff] }
0x1916   :  { %v1762_v21 = vsel %vm1730_vm13, %v6139_v26, %v6138_v12  ;;  %v6159_v26 = vld [vmem:[#allocation80_spill] sm:$0xff]  ;;  %vm2320_vm13 = vcmask 113664  }
0x1917   :  { %v1473_v32 = vadd.f32 %v1467_v13, %v1444_v15  ;;  %v6142_v15 = vld [vmem:[#allocation201_spill] sm:$0xff] }
0x1918   :  { %v1821_v27 = vsel %vm6143_vm6, %v5987_v46, %v6142_v15  ;;  %v1939_v46 = vsel %vm1907_vm15, %v5992_v28, %v6147_v11  ;;  %v2057_v28 = vsel %vm2025_vm9, %v6153_v0, %v6152_v10 }
0x1919   :  { %v1503_v41 = vadd.f32 %v1497_v43, %v1473_v32  ;;  %v6144_v43 = vld [vmem:[#allocation205_spill] sm:$0xff] }
0x191a   :  { %v1851_v9 = vsel %vm1848_vm14, %v5989_v63, %v6144_v43  ;;  %v1969_v63 = vsel %vm1966_vm12, %v4455_v6, %v6148_v31  ;;  %v6161_v43 = vld [vmem:[#allocation82_spill] sm:$0xff]  ;;  %vm2379_vm14 = vcmask 105472  }
0x191b   :  { %v1532_v45 = vadd.f32 %v1526_v23, %v1503_v41  ;;  %v6146_v41 = vld [vmem:[#allocation209_spill] sm:$0xff] }
0x191c   :  { %v1910_v47 = vsel %vm1907_vm15, %v5991_v14, %v6146_v41  ;;  %vm2438_vm15 = vcmask 97280  }
0x191d   :  { %v1562_v57 = vadd.f32 %v1556_v20, %v1532_v45 }
0x191f   :  { %v1591_v39 = vadd.f32 %v1585_v48, %v1562_v57  ;;  %v6149_v48 = vld [vmem:[#allocation58_spill] sm:$0xff] }
0x1920   :  { %v1998_v37 = vsel %vm1966_vm12, %v4696_v30, %v6149_v48  ;;  %vm2261_vm12 = vcmask 121856  }
0x1921   :  { %v1621_v1 = vadd.f32 %v1615_v24, %v1591_v39  ;;  %v6151_v24 = vld [vmem:[#allocation62_spill] sm:$0xff] }
0x1922   :  { %v2028_v14 = vsel %vm2025_vm9, %v6151_v24, %v6150_v54  ;;  %vm2856_vm9 = vcmask 965632  }
0x1923   :  { %v1650_v29 = vadd.f32 %v1644_v62, %v1621_v1 }
0x1925   :  { %v1680_v4 = vadd.f32 %v1674_v49, %v1650_v29  ;;  %v6155_v49 = vld [vmem:[#allocation70_spill] sm:$0xff] }
0x1926   :  { %v2087_v6 = vsel %vm2084_vm8, %v6155_v49, %v6154_v61  ;;  %v3130_v49 = vld [vmem:[%s5417_s0] sm:$0xff] }
0x1927   :  { %v1709_v42 = vadd.f32 %v1703_v22, %v1680_v4  ;;  %v6157_v22 = vld [vmem:[#allocation72_spill] sm:$0xff] }
0x1928   :  { %v2116_v30 = vsel %vm2084_vm8, %v6157_v22, %v6156_v2 }
0x1929   :  { %v1739_v36 = vadd.f32 %v1733_v19, %v1709_v42  ;;  %v6158_v42 = vld [vmem:[#allocation76_spill] sm:$0xff] }
0x192b   :  { %v1768_v13 = vadd.f32 %v1762_v21, %v1739_v36  ;;  %v6160_v21 = vld [vmem:[#allocation78_spill] sm:$0xff] }
0x192c   :  { %v2175_v36 = vsel %vm2143_vm11, %v6160_v21, %v6159_v26  ;;  %v3135_v26 = vld [vmem:[%s5418_s1] sm:$0xff] }
0x192d   :  { %v1798_v51 = vadd.f32 %v1792_v35, %v1768_v13 }
0x192f   :  { %v1827_v32 = vadd.f32 %v1821_v27, %v1798_v51 }
0x1931   :  { %v1857_v23 = vadd.f32 %v1851_v9, %v1827_v32  ;;  %v2205_v9 = vsel %vm2202_vm7, %v6161_v43, %v4851_v17 }
0x1933   :  { %v1886_v8 = vadd.f32 %v1880_v53, %v1857_v23 }
0x1934   :  { %v2256_v34 = vpop.permute.xlu2 %2255 }
0x1935   :  { %v1916_v20 = vadd.f32 %v1910_v47, %v1886_v8  ;;  %v5106_v8 = vld [vmem:[%s5416_s3] sm:$0xff] }
0x1937   :  { %v1945_v16 = vadd.f32 %v1939_v46, %v1916_v20  ;;  %v3217_v46 = vmov 40  }
0x1938   :  { %3079 = vset.pattern.permute.xlu0 %v3217_v46 }
0x1939   :  { %v1975_v57 = vadd.f32 %v1969_v63, %v1945_v16 }
0x193b   :  { %v2004_v39 = vadd.f32 %v1998_v37, %v1975_v57 }
0x193d   :  { %v2260_v45 = vpop.permute.xlu2 %2259  ;;  %v2034_v62 = vadd.f32 %v2028_v14, %v2004_v39 }
0x193f   :  { %v2063_v29 = vadd.f32 %v2057_v28, %v2034_v62 }
0x1941   :  { %v2093_v4 = vadd.f32 %v2087_v6, %v2063_v29  ;;  %v3131_v29 = vld [vmem:[%s5417_s0 + $0x8] sm:$0xff] }
0x1943   :  { %v2122_v56 = vadd.f32 %v2116_v30, %v2093_v4  ;;  %v3132_v30 = vld [vmem:[%s5417_s0 + $0x10] sm:$0xff] }
0x1945   :  { %v2286_v1 = vpop.permute.xlu2 %2285  ;;  %v2152_v12 = vadd.f32 %v6158_v42, %v2122_v56  ;;  %v3133_v56 = vld [vmem:[%s5417_s0 + $0x18] sm:$0xff]  ;;  %v5145_v42 = vld [vmem:[%s5418_s1 + $0x10] sm:$0xff] }
0x1947   :  { %v2181_v32 = vadd.f32 %v2175_v36, %v2152_v12  ;;  %v3136_v36 = vld [vmem:[%s5418_s1 + $0x8] sm:$0xff] }
0x194c   :  { %v2254_v19 = vpop.permute.xlu1 %2253 }
0x194d   :  { %v2262_v50 = vsel %vm2261_vm12, %v2254_v19, %v2256_v34  ;;  %v2302_v35 = vpop.permute.xlu2 %2301 }
0x194e   :  { %v2268_v13 = vadd.f32 %v2262_v50, %v4870_v59  ;;  %v2304_v15 = vmul.f32 %v4476_v18, %v2302_v35  ;;  %v2305_v27 = vmul.f32 %v4482_v3, %v2302_v35  ;;  %v2306_v51 = vmul.f32 %v4488_v52, %v2302_v35 }
0x194f   :  { %v2211_v18 = vadd.f32 %v2205_v9, %v2181_v32  ;;  %v2307_v47 = vmul.f32 %v4500_v58, %v2302_v35  ;;  %v3137_v35 = vld [vmem:[%s5418_s1 + $0x18] sm:$0xff] }
0x1950   :  { %2316 = vrot.lane.b32.xlu2 %v2306_v51, %s3216_s2  ;;  %2314 = vrot.lane.b32.xlu1 %v2305_v27, %s3216_s2 }
0x1951   :  { %2312 = vrot.lane.b32.xlu0 %v2304_v15, %s3216_s2  ;;  %v2240_v59 = vadd.f32 %v2234_v25, %v2211_v18 }
0x1954   :  { %v2258_v3 = vpop.permute.xlu1 %2257  ;;  %v5093_v53 = vpop.permute.xlu0 %2287 }
0x1955   :  { %v2263_v52 = vsel %vm2261_vm12, %v2256_v34, %v2258_v3  ;;  %v2264_v17 = vsel %vm2261_vm12, %v2258_v3, %v2260_v45  ;;  %v2292_v33 = vsel %vm2261_vm12, %v2286_v1, %v5093_v53 }
0x1956   :  { %v2269_v23 = vadd.f32 %v2263_v52, %v4872_v60  ;;  %v5098_v41 = vadd.f32 %v2264_v17, %v2240_v59 }
0x1958   :  { %v2298_v44 = vadd.f32 %v2292_v33, %v2269_v23  ;;  %2331 = vperm.xlu1 %3078, %v5106_v8  }
0x1959   :  { %2318 = vrot.lane.b32.xlu0 %v2307_v47, %s3216_s2 }
0x195c   :  { %v2284_v34 = vpop.permute.xlu1 %2283 }
0x195d   :  { %v2291_v60 = vsel %vm2261_vm12, %v2284_v34, %v2286_v1 }
0x195e   :  { %v2297_v11 = vadd.f32 %v2291_v60, %v2268_v13 }
0x1964   :  { %v5111_v58 = vpop.permute.xlu1 %2289 }
0x1965   :  { %v2293_v9 = vsel %vm2261_vm12, %v5093_v53, %v5111_v58 }
0x1966   :  { %v2299_v47 = vadd.f32 %v2293_v9, %v5098_v41 }
0x19aa   :  { %v5113_v20 = vpop.permute.xlu2 %2316 }
0x19c2   :  { %v2315_v45 = vpop.permute.xlu1 %2314 }
0x19c3   :  { %v2322_v31 = vsel %vm2320_vm13, %v2315_v45, %v5113_v20  ;;  %v2313_v63 = vpop.permute.xlu0 %2312 }
0x19c4   :  { %v2328_v16 = vadd.f32 %v2322_v31, %v2298_v44  ;;  %v2321_v48 = vsel %vm2320_vm13, %v2313_v63, %v2315_v45 }
0x19c5   :  { %v2327_v37 = vadd.f32 %v2321_v48, %v2297_v11 }
0x19ca   :  { %v2332_v57 = vpop.permute.xlu1 %2331 }
0x19cb   :  { %v2334_v54 = vmul.f32 %v5997_v40, %v2332_v57  ;;  %v2335_v24 = vmul.f32 %v5998_v5, %v2332_v57  ;;  %v2336_v14 = vmul.f32 %v5999_v38, %v2332_v57  ;;  %v2337_v39 = vmul.f32 %v6000_v7, %v2332_v57  ;;  %v2319_v10 = vpop.permute.xlu0 %2318 }
0x19cc   :  { %v3218_v40 = vmov 41   ;;  %v2323_v23 = vsel %vm2320_vm13, %v5113_v20, %v2319_v10 }
0x19cd   :  { %2346 = vrot.lane.b32.xlu1 %v2336_v14, %s3216_s2  ;;  %2342 = vrot.lane.b32.xlu2 %v2334_v54, %s3216_s2  ;;  %v2329_v33 = vadd.f32 %v2323_v23, %v2299_v47 }
0x19ce   :  { %2344 = vrot.lane.b32.xlu0 %v2335_v24, %s3216_s2  ;;  %3080 = vset.pattern.permute.xlu2 %v3218_v40 }
0x19cf   :  { %3081 = vset.pattern.permute.xlu1 %v3218_v40 }
0x19d5   :  { %2348 = vrot.lane.b32.xlu2 %v2337_v39, %s3216_s2 }
0x19d6   :  { %2360 = vperm.xlu0 %3079, %v4944_v55  }
0x19de   :  { %2390 = vperm.xlu0 %3079, %v5106_v8  }
0x1a27   :  { %v2343_v38 = vpop.permute.xlu2 %2342 }
0x1a2f   :  { %v2349_v15 = vpop.permute.xlu2 %2348 }
0x1a3f   :  { %v2347_v5 = vpop.permute.xlu1 %2346 }
0x1a40   :  { %v2345_v0 = vpop.permute.xlu0 %2344  ;;  %v2352_v53 = vsel %vm2320_vm13, %v2347_v5, %v2349_v15 }
0x1a41   :  { %v2350_v28 = vsel %vm2320_vm13, %v2343_v38, %v2345_v0  ;;  %v2351_v62 = vsel %vm2320_vm13, %v2345_v0, %v2347_v5  ;;  %v2358_v44 = vadd.f32 %v2352_v53, %v2329_v33 }
0x1a42   :  { %v2356_v1 = vadd.f32 %v2350_v28, %v2327_v37  ;;  %v2357_v61 = vadd.f32 %v2351_v62, %v2328_v16  ;;  %v3221_v37 = vmov 42  }
0x1a43   :  { %3082 = vset.pattern.permute.xlu0 %v3221_v37 }
0x1a48   :  { %v2361_v7 = vpop.permute.xlu0 %2360 }
0x1a49   :  { %v2363_v6 = vmul.f32 %v3130_v49, %v2361_v7  ;;  %v2364_v2 = vmul.f32 %v3131_v29, %v2361_v7  ;;  %v2365_v4 = vmul.f32 %v3132_v30, %v2361_v7  ;;  %v2366_v19 = vmul.f32 %v3133_v56, %v2361_v7 }
0x1a4a   :  { %v3222_v7 = vmov 43  }
0x1a4b   :  { %2373 = vrot.lane.b32.xlu2 %v2364_v2, %s3219_s7  ;;  %2371 = vrot.lane.b32.xlu1 %v2363_v6, %s3219_s7 }
0x1a50   :  { %v2391_v22 = vpop.permute.xlu0 %2390 }
0x1a51   :  { %v2395_v12 = vmul.f32 %v5145_v42, %v2391_v22  ;;  %v2393_v21 = vmul.f32 %v3135_v26, %v2391_v22  ;;  %v2394_v50 = vmul.f32 %v3136_v36, %v2391_v22  ;;  %v2396_v13 = vmul.f32 %v3137_v35, %v2391_v22 }
0x1a53   :  { %2377 = vrot.lane.b32.xlu2 %v2366_v19, %s3219_s7  ;;  %2375 = vrot.lane.b32.xlu1 %v2365_v4, %s3219_s7  ;;  %v5204_v19 = vld [vmem:[%s5417_s0 + $0x10] sm:$0xff] }
0x1a54   :  { %2405 = vrot.lane.b32.xlu0 %v2395_v12, %s3219_s7 }
0x1a5b   :  { %2403 = vrot.lane.b32.xlu2 %v2394_v50, %s3219_s7  ;;  %2401 = vrot.lane.b32.xlu1 %v2393_v21, %s3219_s7  ;;  %v5213_v21 = vld [vmem:[%s5417_s0 + $0x18] sm:$0xff]  ;;  %v5223_v50 = vld [vmem:[%s5417_s0 + $0x20] sm:$0xff] }
0x1a63   :  { %2419 = vperm.xlu2 %3080, %v4944_v55   ;;  %2407 = vrot.lane.b32.xlu1 %v2396_v13, %s3219_s7 }
0x1a6b   :  { %3083 = vset.pattern.permute.xlu2 %v3222_v7 }
0x1aa5   :  { %v2374_v27 = vpop.permute.xlu2 %2373 }
0x1aad   :  { %v2378_v51 = vpop.permute.xlu2 %2377 }
0x1ab5   :  { %v2404_v43 = vpop.permute.xlu2 %2403 }
0x1abd   :  { %v2372_v32 = vpop.permute.xlu1 %2371  ;;  %v2420_v25 = vpop.permute.xlu2 %2419 }
0x1abe   :  { %v2380_v18 = vsel %vm2379_vm14, %v2372_v32, %v2374_v27  ;;  %v2422_v59 = vmul.f32 %v3130_v49, %v2420_v25  ;;  %v2423_v3 = vmul.f32 %v3131_v29, %v2420_v25  ;;  %v2424_v52 = vmul.f32 %v3132_v30, %v2420_v25 }
0x1abf   :  { %v2386_v17 = vadd.f32 %v2380_v18, %v2356_v1  ;;  %v2425_v60 = vmul.f32 %v3133_v56, %v2420_v25  ;;  %v5199_v56 = vld [vmem:[%s5417_s0 + $0x8] sm:$0xff]  ;;  %v5248_v25 = vld [vmem:[%s5418_s1 + $0x20] sm:$0xff] }
0x1ac0   :  { %2434 = vrot.lane.b32.xlu2 %v2424_v52, %s3220_s23  ;;  %2430 = vrot.lane.b32.xlu0 %v2422_v59, %s3220_s23 }
0x1ac1   :  { %2432 = vrot.lane.b32.xlu1 %v2423_v3, %s3220_s23 }
0x1ac5   :  { %v2376_v34 = vpop.permute.xlu1 %2375 }
0x1ac6   :  { %v2381_v11 = vsel %vm2379_vm14, %v2374_v27, %v2376_v34  ;;  %v2382_v46 = vsel %vm2379_vm14, %v2376_v34, %v2378_v51  ;;  %v5171_v58 = vpop.permute.xlu0 %2405  ;;  %v5234_v51 = vld [vmem:[%s5418_s1 + $0x8] sm:$0xff] }
0x1ac7   :  { %v2387_v20 = vadd.f32 %v2381_v11, %v2357_v61  ;;  %v5173_v45 = vadd.f32 %v2382_v46, %v2358_v44  ;;  %v2410_v41 = vsel %vm2379_vm14, %v2404_v43, %v5171_v58 }
0x1ac8   :  { %2436 = vrot.lane.b32.xlu0 %v2425_v60, %s3220_s23 }
0x1ac9   :  { %v2416_v31 = vadd.f32 %v2410_v41, %v2387_v20  ;;  %2449 = vperm.xlu1 %3081, %v5106_v8  }
0x1acd   :  { %v2402_v63 = vpop.permute.xlu1 %2401 }
0x1ace   :  { %v2409_v16 = vsel %vm2379_vm14, %v2402_v63, %v2404_v43  ;;  %v5239_v43 = vld [vmem:[%s5418_s1 + $0x10] sm:$0xff] }
0x1acf   :  { %v2415_v48 = vadd.f32 %v2409_v16, %v2386_v17 }
0x1ad1   :  { %3084 = vset.pattern.permute.xlu1 %v3222_v7 }
0x1ad5   :  { %v5180_v57 = vpop.permute.xlu1 %2407 }
0x1ad6   :  { %v2411_v47 = vsel %vm2379_vm14, %v5171_v58, %v5180_v57 }
0x1ad7   :  { %v2417_v20 = vadd.f32 %v2411_v47, %v5173_v45 }
0x1b1a   :  { %v5182_v24 = vpop.permute.xlu2 %2434 }
0x1b32   :  { %v2431_v54 = vpop.permute.xlu0 %2430 }
0x1b33   :  { %v2433_v14 = vpop.permute.xlu1 %2432 }
0x1b34   :  { %v2439_v39 = vsel %vm2438_vm15, %v2431_v54, %v2433_v14  ;;  %v2440_v10 = vsel %vm2438_vm15, %v2433_v14, %v5182_v24 }
0x1b35   :  { %v2445_v40 = vadd.f32 %v2439_v39, %v2415_v48  ;;  %v2446_v5 = vadd.f32 %v2440_v10, %v2416_v31 }
0x1b3a   :  { %v2437_v61 = vpop.permute.xlu0 %2436 }
0x1b3b   :  { %v2450_v38 = vpop.permute.xlu1 %2449  ;;  %v2441_v46 = vsel %vm2438_vm15, %v5182_v24, %v2437_v61 }
0x1b3c   :  { %v2452_v0 = vmul.f32 %v3135_v26, %v2450_v38  ;;  %v2453_v28 = vmul.f32 %v3136_v36, %v2450_v38  ;;  %v2454_v62 = vmul.f32 %v5145_v42, %v2450_v38  ;;  %v2455_v1 = vmul.f32 %v3137_v35, %v2450_v38  ;;  %v5218_v36 = vld [vmem:[%s5418_s1 + $0x18] sm:$0xff]  ;;  %s3225_s1 = smov 121  }
0x1b3d   :  { %v2447_v41 = vadd.f32 %v2441_v46, %v2417_v20 }
0x1b3e   :  { %2464 = vrot.lane.b32.xlu1 %v2454_v62, %s3220_s23  ;;  %2462 = vrot.lane.b32.xlu0 %v2453_v28, %s3220_s23 }
0x1b3f   :  { %2460 = vrot.lane.b32.xlu2 %v2452_v0, %s3220_s23 }
0x1b46   :  { %2482 = vperm.xlu0 %3082, %v4944_v55  }
0x1b47   :  { %2466 = vrot.lane.b32.xlu2 %v2455_v1, %s3220_s23 }
0x1b4e   :  { %2515 = vperm.xlu0 %3082, %v5106_v8  }
0x1b99   :  { %v2461_v49 = vpop.permute.xlu2 %2460 }
0x1ba1   :  { %v2467_v59 = vpop.permute.xlu2 %2466 }
0x1bb0   :  { %v2465_v6 = vpop.permute.xlu1 %2464  ;;  %v2463_v29 = vpop.permute.xlu0 %2462 }
0x1bb1   :  { %v2468_v2 = vsel %vm2438_vm15, %v2461_v49, %v2463_v29  ;;  %v2469_v22 = vsel %vm2438_vm15, %v2463_v29, %v2465_v6  ;;  %v2470_v58 = vsel %vm2438_vm15, %v2465_v6, %v2467_v59 }
0x1bb2   :  { %v2474_v30 = vadd.f32 %v2468_v2, %v2445_v40  ;;  %v2475_v4 = vadd.f32 %v2469_v22, %v2446_v5  ;;  %v2476_v31 = vadd.f32 %v2470_v58, %v2447_v41  ;;  %v3223_v5 = vmov 44  }
0x1bb3   :  { %3085 = vset.pattern.permute.xlu0 %v3223_v5 }
0x1bb8   :  { %v2483_v42 = vpop.permute.xlu0 %2482 }
0x1bb9   :  { %v2485_v12 = vmul.f32 %v2483_v42, %v5199_v56  ;;  %v2486_v26 = vmul.f32 %v2483_v42, %v5204_v19  ;;  %v2487_v13 = vmul.f32 %v2483_v42, %v5213_v21  ;;  %v2488_v27 = vmul.f32 %v2483_v42, %v5223_v50 }
0x1bba   :  { %v3224_v42 = vmov 45  }
0x1bbb   :  { %2493 = vrot.lane.b32.xlu1 %v2485_v12, %s3147_s16  ;;  %2495 = vrot.lane.b32.xlu2 %v2486_v26, %s3147_s16 }
0x1bc0   :  { %v2516_v35 = vpop.permute.xlu0 %2515 }
0x1bc1   :  { %v2520_v15 = vmul.f32 %v2516_v35, %v5218_v36  ;;  %v2518_v9 = vmul.f32 %v2516_v35, %v5234_v51  ;;  %v2519_v32 = vmul.f32 %v2516_v35, %v5239_v43  ;;  %v2521_v18 = vmul.f32 %v2516_v35, %v5248_v25 }
0x1bc3   :  { %2497 = vrot.lane.b32.xlu1 %v2487_v13, %s3147_s16  ;;  %2530 = vrot.lane.b32.xlu0 %v2520_v15, %s3147_s16 }
0x1bc4   :  { %2499 = vrot.lane.b32.xlu2 %v2488_v27, %s3147_s16 }
0x1bcb   :  { %2526 = vrot.lane.b32.xlu1 %v2518_v9, %s3147_s16 }
0x1bcc   :  { %2528 = vrot.lane.b32.xlu2 %v2519_v32, %s3147_s16 }
0x1bd3   :  { %2532 = vrot.lane.b32.xlu1 %v2521_v18, %s3147_s16  ;;  %s3229_s16 = smov 120  }
0x1bd4   :  { %2544 = vperm.xlu2 %3083, %v4944_v55  }
0x1bdc   :  { %3086 = vset.pattern.permute.xlu2 %v3224_v42 }
0x1c15   :  { %v2496_v3 = vpop.permute.xlu2 %2495 }
0x1c1e   :  { %v2500_v52 = vpop.permute.xlu2 %2499 }
0x1c26   :  { %v2529_v17 = vpop.permute.xlu2 %2528 }
0x1c2d   :  { %v2494_v23 = vpop.permute.xlu1 %2493 }
0x1c2e   :  { %v2501_v53 = vsel %vm255_vm3, %v2494_v23, %v2496_v3  ;;  %v2545_v33 = vpop.permute.xlu2 %2544 }
0x1c2f   :  { %v2507_v44 = vadd.f32 %v2501_v53, %v2474_v30  ;;  %v2547_v34 = vmul.f32 %v2545_v33, %v5199_v56  ;;  %v2548_v60 = vmul.f32 %v2545_v33, %v5204_v19  ;;  %v2549_v11 = vmul.f32 %v2545_v33, %v5213_v21 }
0x1c30   :  { %v2550_v45 = vmul.f32 %v2545_v33, %v5223_v50 }
0x1c31   :  { %2559 = vrot.lane.b32.xlu2 %v2549_v11, %s3148_s17  ;;  %2557 = vrot.lane.b32.xlu1 %v2548_v60, %s3148_s17 }
0x1c32   :  { %2555 = vrot.lane.b32.xlu0 %v2547_v34, %s3148_s17 }
0x1c35   :  { %v2498_v63 = vpop.permute.xlu1 %2497  ;;  %v5267_v16 = vpop.permute.xlu0 %2530 }
0x1c36   :  { %v2502_v48 = vsel %vm255_vm3, %v2496_v3, %v2498_v63  ;;  %v2503_v37 = vsel %vm255_vm3, %v2498_v63, %v2500_v52  ;;  %v2535_v24 = vsel %vm255_vm3, %v2529_v17, %v5267_v16 }
0x1c37   :  { %v2508_v57 = vadd.f32 %v2502_v48, %v2475_v4  ;;  %v5271_v54 = vadd.f32 %v2503_v37, %v2476_v31 }
0x1c39   :  { %v2541_v14 = vadd.f32 %v2535_v24, %v2508_v57  ;;  %2573 = vperm.xlu1 %3084, %v5106_v8  }
0x1c3a   :  { %2561 = vrot.lane.b32.xlu0 %v2550_v45, %s3148_s17 }
0x1c3d   :  { %v2527_v39 = vpop.permute.xlu1 %2526 }
0x1c3e   :  { %v2534_v10 = vsel %vm255_vm3, %v2527_v39, %v2529_v17 }
0x1c3f   :  { %v2540_v40 = vadd.f32 %v2534_v10, %v2507_v44 }
0x1c41   :  { %3087 = vset.pattern.permute.xlu1 %v3224_v42 }
0x1c45   :  { %v2533_v38 = vpop.permute.xlu1 %2532 }
0x1c46   :  { %v2536_v46 = vsel %vm255_vm3, %v5267_v16, %v2533_v38  ;;  %vm2679_vm3 = vcmask 990208  }
0x1c47   :  { %v2542_v16 = vadd.f32 %v2536_v46, %v5271_v54 }
0x1c8b   :  { %v2560_v0 = vpop.permute.xlu2 %2559 }
0x1ca3   :  { %v2558_v28 = vpop.permute.xlu1 %2557 }
0x1ca4   :  { %v2564_v62 = vsel %vm314_vm4, %v2558_v28, %v2560_v0  ;;  %v2556_v1 = vpop.permute.xlu0 %2555 }
0x1ca5   :  { %v2570_v61 = vadd.f32 %v2564_v62, %v2541_v14  ;;  %v2563_v7 = vsel %vm314_vm4, %v2556_v1, %v2558_v28 }
0x1ca6   :  { %v2569_v49 = vadd.f32 %v2563_v7, %v2540_v40 }
0x1cab   :  { %v2574_v6 = vpop.permute.xlu1 %2573 }
0x1cac   :  { %v2576_v29 = vmul.f32 %v2574_v6, %v5234_v51  ;;  %v2577_v2 = vmul.f32 %v2574_v6, %v5239_v43  ;;  %v2578_v22 = vmul.f32 %v2574_v6, %v5218_v36  ;;  %v2579_v30 = vmul.f32 %v2574_v6, %v5248_v25  ;;  %v2562_v4 = vpop.permute.xlu0 %2561 }
0x1cad   :  { %v2565_v57 = vsel %vm314_vm4, %v2560_v0, %v2562_v4  ;;  %v3227_v6 = vmov 47  }
0x1cae   :  { %2588 = vrot.lane.b32.xlu1 %v2578_v22, %s3148_s17  ;;  %2584 = vrot.lane.b32.xlu2 %v2576_v29, %s3148_s17  ;;  %v2571_v24 = vadd.f32 %v2565_v57, %v2542_v16 }
0x1caf   :  { %2586 = vrot.lane.b32.xlu0 %v2577_v2, %s3148_s17 }
0x1cb6   :  { %2590 = vrot.lane.b32.xlu2 %v2579_v30, %s3148_s17  ;;  %s3230_s17 = smov 119  }
0x1cb7   :  { %2602 = vperm.xlu0 %3085, %v4944_v55  }
0x1cbf   :  { %2631 = vperm.xlu0 %3085, %v5106_v8  }
0x1d08   :  { %v2585_v26 = vpop.permute.xlu2 %2584 }
0x1d10   :  { %v2591_v44 = vpop.permute.xlu2 %2590 }
0x1d20   :  { %v2589_v12 = vpop.permute.xlu1 %2588 }
0x1d21   :  { %v2587_v35 = vpop.permute.xlu0 %2586  ;;  %v2594_v45 = vsel %vm314_vm4, %v2589_v12, %v2591_v44 }
0x1d22   :  { %v2592_v13 = vsel %vm314_vm4, %v2585_v26, %v2587_v35  ;;  %v2593_v15 = vsel %vm314_vm4, %v2587_v35, %v2589_v12  ;;  %v2600_v14 = vadd.f32 %v2594_v45, %v2571_v24  ;;  %vm2738_vm4 = vcmask 982016  }
0x1d23   :  { %v2598_v27 = vadd.f32 %v2592_v13, %v2569_v49  ;;  %v2599_v9 = vadd.f32 %v2593_v15, %v2570_v61  ;;  %v3226_v49 = vmov 46  }
0x1d24   :  { %3088 = vset.pattern.permute.xlu0 %v3226_v49 }
0x1d29   :  { %v2603_v32 = vpop.permute.xlu0 %2602 }
0x1d2a   :  { %v2605_v18 = vmul.f32 %v2603_v32, %v5199_v56  ;;  %v2606_v59 = vmul.f32 %v2603_v32, %v5204_v19  ;;  %v2607_v52 = vmul.f32 %v2603_v32, %v5213_v21  ;;  %v2608_v17 = vmul.f32 %v2603_v32, %v5223_v50 }
0x1d2b   :  { %v3228_v32 = vmov 48  }
0x1d2c   :  { %2615 = vrot.lane.b32.xlu2 %v2606_v59, %s3151_s18  ;;  %2613 = vrot.lane.b32.xlu1 %v2605_v18, %s3151_s18  ;;  %v6162_v18 = vmov 0  }
0x1d31   :  { %v2632_v3 = vpop.permute.xlu0 %2631 }
0x1d32   :  { %v2636_v23 = vmul.f32 %v2632_v3, %v5218_v36  ;;  %v2634_v47 = vmul.f32 %v2632_v3, %v5234_v51  ;;  %v2635_v53 = vmul.f32 %v2632_v3, %v5239_v43  ;;  %v2637_v33 = vmul.f32 %v2632_v3, %v5248_v25 }
0x1d34   :  { %2619 = vrot.lane.b32.xlu2 %v2608_v17, %s3151_s18  ;;  %2617 = vrot.lane.b32.xlu1 %v2607_v52, %s3151_s18 }
0x1d35   :  { %2646 = vrot.lane.b32.xlu0 %v2636_v23, %s3151_s18 }
0x1d3c   :  { %2644 = vrot.lane.b32.xlu2 %v2635_v53, %s3151_s18  ;;  %2642 = vrot.lane.b32.xlu1 %v2634_v47, %s3151_s18 }
0x1d44   :  { %2660 = vperm.xlu2 %3086, %v4944_v55   ;;  %2648 = vrot.lane.b32.xlu1 %v2637_v33, %s3151_s18  ;;  %s3231_s18 = smov 118  }
0x1d4c   :  { %3090 = vset.pattern.permute.xlu2 %v3227_v6 }
0x1d86   :  { %v2616_v34 = vpop.permute.xlu2 %2615 }
0x1d8e   :  { %v2620_v60 = vpop.permute.xlu2 %2619 }
0x1d96   :  { %v2645_v11 = vpop.permute.xlu2 %2644 }
0x1d9e   :  { %v2614_v20 = vpop.permute.xlu1 %2613  ;;  %v2661_v58 = vpop.permute.xlu2 %2660 }
0x1d9f   :  { %v2621_v41 = vsel %vm373_vm5, %v2614_v20, %v2616_v34  ;;  %v2663_v31 = vmul.f32 %v2661_v58, %v5199_v56  ;;  %v2664_v63 = vmul.f32 %v2661_v58, %v5204_v19  ;;  %v2665_v48 = vmul.f32 %v2661_v58, %v5213_v21 }
0x1da0   :  { %v2627_v37 = vadd.f32 %v2621_v41, %v2598_v27  ;;  %v2666_v10 = vmul.f32 %v2661_v58, %v5223_v50 }
0x1da1   :  { %2675 = vrot.lane.b32.xlu2 %v2665_v48, %s3225_s1  ;;  %2671 = vrot.lane.b32.xlu0 %v2663_v31, %s3225_s1 }
0x1da2   :  { %2673 = vrot.lane.b32.xlu1 %v2664_v63, %s3225_s1 }
0x1da6   :  { %v2618_v39 = vpop.permute.xlu1 %2617 }
0x1da7   :  { %v2622_v40 = vsel %vm373_vm5, %v2616_v34, %v2618_v39  ;;  %v2623_v5 = vsel %vm373_vm5, %v2618_v39, %v2620_v60  ;;  %v2647_v38 = vpop.permute.xlu0 %2646 }
0x1da8   :  { %v2628_v0 = vadd.f32 %v2622_v40, %v2599_v9  ;;  %v2629_v28 = vadd.f32 %v2623_v5, %v2600_v14  ;;  %v2651_v62 = vsel %vm373_vm5, %v2645_v11, %v2647_v38 }
0x1da9   :  { %2677 = vrot.lane.b32.xlu0 %v2666_v10, %s3225_s1 }
0x1daa   :  { %v2657_v54 = vadd.f32 %v2651_v62, %v2628_v0  ;;  %2690 = vperm.xlu1 %3087, %v5106_v8  }
0x1dae   :  { %v2643_v1 = vpop.permute.xlu1 %2642 }
0x1daf   :  { %v2650_v61 = vsel %vm373_vm5, %v2643_v1, %v2645_v11 }
0x1db0   :  { %v2656_v7 = vadd.f32 %v2650_v61, %v2627_v37 }
0x1db2   :  { %3089 = vset.pattern.permute.xlu1 %v3226_v49 }
0x1db6   :  { %v2649_v29 = vpop.permute.xlu1 %2648 }
0x1db7   :  { %v2652_v52 = vsel %vm373_vm5, %v2647_v38, %v2649_v29  ;;  %vm2797_vm5 = vcmask 973824  }
0x1db8   :  { %v2658_v23 = vadd.f32 %v2652_v52, %v2629_v28 }
0x1dfb   :  { %v2676_v22 = vpop.permute.xlu2 %2675 }
0x1e13   :  { %v2672_v2 = vpop.permute.xlu0 %2671 }
0x1e14   :  { %v2674_v30 = vpop.permute.xlu1 %2673 }
0x1e15   :  { %v2680_v4 = vsel %vm2679_vm3, %v2672_v2, %v2674_v30  ;;  %v2681_v42 = vsel %vm2679_vm3, %v2674_v30, %v2676_v22  ;;  %v2895_v2 = vld [vmem:[%s5419_s4] sm:$0xff] }
0x1e16   :  { %v2686_v12 = vadd.f32 %v2680_v4, %v2656_v7  ;;  %v2687_v26 = vadd.f32 %v2681_v42, %v2657_v54 }
0x1e1b   :  { %v2678_v3 = vpop.permute.xlu0 %2677 }
0x1e1c   :  { %v2691_v35 = vpop.permute.xlu1 %2690  ;;  %v2682_v17 = vsel %vm2679_vm3, %v2676_v22, %v2678_v3 }
0x1e1d   :  { %v2693_v13 = vmul.f32 %v2691_v35, %v5234_v51  ;;  %v2694_v15 = vmul.f32 %v2691_v35, %v5239_v43  ;;  %v2695_v27 = vmul.f32 %v2691_v35, %v5218_v36  ;;  %v2696_v9 = vmul.f32 %v2691_v35, %v5248_v25 }
0x1e1e   :  { %v2688_v53 = vadd.f32 %v2682_v17, %v2658_v23 }
0x1e1f   :  { %2705 = vrot.lane.b32.xlu1 %v2695_v27, %s3225_s1  ;;  %2703 = vrot.lane.b32.xlu0 %v2694_v15, %s3225_s1 }
0x1e20   :  { %2701 = vrot.lane.b32.xlu2 %v2693_v13, %s3225_s1 }
0x1e27   :  { %2749 = vperm.xlu1 %3089, %v5106_v8   ;;  %2719 = vperm.xlu0 %3088, %v4944_v55  }
0x1e28   :  { %2707 = vrot.lane.b32.xlu2 %v2696_v9, %s3225_s1 }
0x1e2f   :  { %3091 = vset.pattern.permute.xlu1 %v3227_v6  ;;  %3093 = vset.pattern.permute.xlu0 %v3228_v32 }
0x1e30   :  { %2808 = vperm.xlu1 %3091, %v5106_v8   ;;  %2778 = vperm.xlu2 %3090, %v4944_v55  }
0x1e31   :  { %2867 = vperm.xlu0 %3093, %v5106_v8  }
0x1e38   :  { %3092 = vset.pattern.permute.xlu2 %v3228_v32 }
0x1e39   :  { %2837 = vperm.xlu2 %3092, %v4944_v55   ;;  %3095 = vset.pattern.permute.xlu0 %v6162_v18 }
0x1e41   :  { %3094 = vset.pattern.permute.xlu2 %v6162_v18 }
0x1e7a   :  { %v2702_v59 = vpop.permute.xlu2 %2701 }
0x1e82   :  { %v2708_v47 = vpop.permute.xlu2 %2707 }
0x1e8a   :  { %v2779_v16 = vpop.permute.xlu2 %2778 }
0x1e8b   :  { %v2783_v45 = vmul.f32 %v2779_v16, %v5213_v21  ;;  %v2781_v40 = vmul.f32 %v2779_v16, %v5199_v56  ;;  %v2782_v5 = vmul.f32 %v2779_v16, %v5204_v19  ;;  %v2784_v62 = vmul.f32 %v2779_v16, %v5223_v50 }
0x1e91   :  { %v2706_v33 = vpop.permute.xlu1 %2705  ;;  %v2704_v44 = vpop.permute.xlu0 %2703 }
0x1e92   :  { %v2711_v8 = vsel %vm2679_vm3, %v2706_v33, %v2708_v47  ;;  %v2709_v34 = vsel %vm2679_vm3, %v2702_v59, %v2704_v44  ;;  %v2710_v55 = vsel %vm2679_vm3, %v2704_v44, %v2706_v33 }
0x1e93   :  { %v5352_v60 = vadd.f32 %v2711_v8, %v2688_v53  ;;  %v5354_v11 = vadd.f32 %v2709_v34, %v2686_v12  ;;  %v5356_v46 = vadd.f32 %v2710_v55, %v2687_v26  ;;  %v2838_v38 = vpop.permute.xlu2 %2837 }
0x1e94   :  { %v2840_v0 = vmul.f32 %v2838_v38, %v5199_v56  ;;  %v2843_v54 = vmul.f32 %v2838_v38, %v5223_v50  ;;  %v2841_v49 = vmul.f32 %v2838_v38, %v5204_v19  ;;  %v2842_v6 = vmul.f32 %v2838_v38, %v5213_v21 }
0x1e99   :  { %v2750_v20 = vpop.permute.xlu1 %2749  ;;  %v2720_v58 = vpop.permute.xlu0 %2719 }
0x1e9a   :  { %v2752_v41 = vmul.f32 %v2750_v20, %v5234_v51  ;;  %v2722_v31 = vmul.f32 %v2720_v58, %v5199_v56  ;;  %v2723_v63 = vmul.f32 %v2720_v58, %v5204_v19  ;;  %v2755_v48 = vmul.f32 %v2750_v20, %v5248_v25 }
0x1e9b   :  { %v2724_v37 = vmul.f32 %v2720_v58, %v5213_v21  ;;  %v2725_v57 = vmul.f32 %v2720_v58, %v5223_v50  ;;  %v2753_v24 = vmul.f32 %v2750_v20, %v5239_v43  ;;  %v2754_v14 = vmul.f32 %v2750_v20, %v5218_v36 }
0x1e9c   :  { %2760 = vrot.lane.b32.xlu0 %v2752_v41, %s3229_s16  ;;  %2730 = vrot.lane.b32.xlu1 %v2722_v31, %s3229_s16 }
0x1e9d   :  { %2732 = vrot.lane.b32.xlu2 %v2723_v63, %s3229_s16 }
0x1ea2   :  { %v2809_v39 = vpop.permute.xlu1 %2808 }
0x1ea3   :  { %v2812_v10 = vmul.f32 %v2809_v39, %v5239_v43  ;;  %v2811_v28 = vmul.f32 %v2809_v39, %v5234_v51  ;;  %v2813_v1 = vmul.f32 %v2809_v39, %v5218_v36  ;;  %v2814_v61 = vmul.f32 %v2809_v39, %v5248_v25  ;;  %v2868_v7 = vpop.permute.xlu0 %2867 }
0x1ea4   :  { %2766 = vrot.lane.b32.xlu0 %v2755_v48, %s3229_s16  ;;  %2734 = vrot.lane.b32.xlu1 %v2724_v37, %s3229_s16  ;;  %v2872_v56 = vmul.f32 %v2868_v7, %v5218_v36  ;;  %v2870_v29 = vmul.f32 %v2868_v7, %v5234_v51  ;;  %v2871_v50 = vmul.f32 %v2868_v7, %v5239_v43 }
0x1ea5   :  { %2736 = vrot.lane.b32.xlu2 %v2725_v57, %s3229_s16  ;;  %v2873_v22 = vmul.f32 %v2868_v7, %v5248_v25 }
0x1eac   :  { %2793 = vrot.lane.b32.xlu0 %v2783_v45, %s3230_s17  ;;  %2762 = vrot.lane.b32.xlu1 %v2753_v24, %s3229_s16 }
0x1ead   :  { %2764 = vrot.lane.b32.xlu2 %v2754_v14, %s3229_s16 }
0x1eb4   :  { %2821 = vrot.lane.b32.xlu0 %v2812_v10, %s3230_s17  ;;  %2789 = vrot.lane.b32.xlu1 %v2781_v40, %s3230_s17 }
0x1eb5   :  { %2791 = vrot.lane.b32.xlu2 %v2782_v5, %s3230_s17 }
0x1ebc   :  { %2848 = vrot.lane.b32.xlu0 %v2840_v0, %s3231_s18  ;;  %2795 = vrot.lane.b32.xlu1 %v2784_v62, %s3230_s17 }
0x1ebd   :  { %2819 = vrot.lane.b32.xlu2 %v2811_v28, %s3230_s17 }
0x1ec4   :  { %2854 = vrot.lane.b32.xlu0 %v2843_v54, %s3231_s18  ;;  %2823 = vrot.lane.b32.xlu1 %v2813_v1, %s3230_s17 }
0x1ec5   :  { %2825 = vrot.lane.b32.xlu2 %v2814_v61, %s3230_s17 }
0x1ecc   :  { %2882 = vrot.lane.b32.xlu0 %v2872_v56, %s3231_s18  ;;  %2850 = vrot.lane.b32.xlu1 %v2841_v49, %s3231_s18 }
0x1ecd   :  { %2852 = vrot.lane.b32.xlu2 %v2842_v6, %s3231_s18 }
0x1ed4   :  { %2878 = vrot.lane.b32.xlu1 %v2870_v29, %s3231_s18 }
0x1ed5   :  { %2880 = vrot.lane.b32.xlu2 %v2871_v50, %s3231_s18 }
0x1edc   :  { %2884 = vrot.lane.b32.xlu1 %v2873_v22, %s3231_s18 }
0x1edd   :  { %2898 = vperm.xlu2 %3094, %v2895_v2  }
0x1ef7   :  { %v2733_v19 = vpop.permute.xlu2 %2732 }
0x1eff   :  { %v2737_v36 = vpop.permute.xlu2 %2736 }
0x1f07   :  { %v2765_v21 = vpop.permute.xlu2 %2764 }
0x1f0e   :  { %v2761_v30 = vpop.permute.xlu0 %2760  ;;  %v2731_v4 = vpop.permute.xlu1 %2730 }
0x1f0f   :  { %v2792_v42 = vpop.permute.xlu2 %2791  ;;  %v2739_v47 = vsel %vm2738_vm4, %v2731_v4, %v2733_v19 }
0x1f10   :  { %v2745_v34 = vadd.f32 %v2739_v47, %v5354_v11 }
0x1f16   :  { %v2767_v12 = vpop.permute.xlu0 %2766  ;;  %v2735_v51 = vpop.permute.xlu1 %2734 }
0x1f17   :  { %v2820_v26 = vpop.permute.xlu2 %2819  ;;  %v2740_v25 = vsel %vm2738_vm4, %v2733_v19, %v2735_v51  ;;  %v2741_v63 = vsel %vm2738_vm4, %v2735_v51, %v2737_v36  ;;  %v2770_v5 = vsel %vm2738_vm4, %v2765_v21, %v2767_v12 }
0x1f18   :  { %v2746_v52 = vadd.f32 %v2740_v25, %v5356_v46  ;;  %v2747_v24 = vadd.f32 %v2741_v63, %v5352_v60 }
0x1f1a   :  { %v2776_v0 = vadd.f32 %v2770_v5, %v2747_v24 }
0x1f1e   :  { %v2794_v43 = vpop.permute.xlu0 %2793  ;;  %v2763_v35 = vpop.permute.xlu1 %2762 }
0x1f1f   :  { %v2826_v13 = vpop.permute.xlu2 %2825  ;;  %v2769_v59 = vsel %vm2738_vm4, %v2763_v35, %v2765_v21  ;;  %v2768_v33 = vsel %vm2738_vm4, %v2761_v30, %v2763_v35  ;;  %v2799_v44 = vsel %vm2797_vm5, %v2792_v42, %v2794_v43 }
0x1f20   :  { %v2775_v23 = vadd.f32 %v2769_v59, %v2746_v52  ;;  %v2774_v58 = vadd.f32 %v2768_v33, %v2745_v34 }
0x1f22   :  { %v2805_v55 = vadd.f32 %v2799_v44, %v2775_v23 }
0x1f26   :  { %v2822_v15 = vpop.permute.xlu0 %2821  ;;  %v2790_v27 = vpop.permute.xlu1 %2789 }
0x1f27   :  { %v2853_v18 = vpop.permute.xlu2 %2852  ;;  %v2798_v20 = vsel %vm2797_vm5, %v2790_v27, %v2792_v42  ;;  %v2827_v14 = vsel %vm2797_vm5, %v2820_v26, %v2822_v15 }
0x1f28   :  { %v2804_v37 = vadd.f32 %v2798_v20, %v2774_v58 }
0x1f2a   :  { %v2833_v10 = vadd.f32 %v2827_v14, %v2804_v37 }
0x1f2e   :  { %v2849_v9 = vpop.permute.xlu0 %2848  ;;  %v2796_v32 = vpop.permute.xlu1 %2795 }
0x1f2f   :  { %v2881_v53 = vpop.permute.xlu2 %2880  ;;  %v2800_v38 = vsel %vm2797_vm5, %v2794_v43, %v2796_v32 }
0x1f30   :  { %v2806_v60 = vadd.f32 %v2800_v38, %v2776_v0 }
0x1f36   :  { %v2855_v3 = vpop.permute.xlu0 %2854  ;;  %v2824_v17 = vpop.permute.xlu1 %2823 }
0x1f37   :  { %v2828_v8 = vsel %vm2797_vm5, %v2822_v15, %v2824_v17  ;;  %v2899_v45 = vpop.permute.xlu2 %2898  ;;  %v2829_v1 = vsel %vm2797_vm5, %v2824_v17, %v2826_v13  ;;  %v2859_v50 = vsel %vm2856_vm9, %v2853_v18, %v2855_v3 }
0x1f38   :  { %v2834_v41 = vadd.f32 %v2828_v8, %v2805_v55  ;;  %v2835_v49 = vadd.f32 %v2829_v1, %v2806_v60 }
0x1f3a   :  { %v2865_v2 = vadd.f32 %v2859_v50, %v2835_v49 }
0x1f3e   :  { %v2851_v46 = vpop.permute.xlu1 %2850  ;;  %v2883_v31 = vpop.permute.xlu0 %2882 }
0x1f3f   :  { %v2858_v48 = vsel %vm2856_vm9, %v2851_v46, %v2853_v18  ;;  %v2887_v16 = vsel %vm2856_vm9, %v2881_v53, %v2883_v31  ;;  %v2857_v39 = vsel %vm2856_vm9, %v2849_v9, %v2851_v46 }
0x1f40   :  { %v2864_v57 = vadd.f32 %v2858_v48, %v2834_v41  ;;  %v2863_v28 = vadd.f32 %v2857_v39, %v2833_v10 }
0x1f42   :  { %v2893_v11 = vadd.f32 %v2887_v16, %v2864_v57 }
0x1f44   :  { %v2902_v40 = vadd.f32 %v2899_v45, %v2893_v11 }
0x1f46   :  { %v2905_v62 = vsub.f32 0.0, %v2902_v40  ;;  %v2879_v54 = vpop.permute.xlu1 %2878 }
0x1f47   :  { %v2886_v61 = vsel %vm2856_vm9, %v2879_v54, %v2881_v53 }
0x1f48   :  { %v2909_v7 = vmul.f32 1.442695, %v2905_v62  ;;  %v2892_v56 = vadd.f32 %v2886_v61, %v2863_v28 }
0x1f4a   :  { %3096 = vpow2.f32 %v2909_v7  ;;  %v2901_v6 = vadd.f32 %v2899_v45, %v2892_v56 }
0x1f4c   :  { %v2904_v29 = vsub.f32 0.0, %v2901_v6 }
0x1f4e   :  { %v2907_v22 = vmul.f32 1.442695, %v2904_v29  ;;  %v2885_v19 = vpop.permute.xlu1 %2884 }
0x1f4f   :  { %v2888_v36 = vsel %vm2856_vm9, %v2883_v31, %v2885_v19 }
0x1f50   :  { %v3097_v21 = vpop.eup %3096  ;;  %3098 = vpow2.f32 %v2907_v22  ;;  %v2894_v30 = vadd.f32 %v2888_v36, %v2865_v2 }
0x1f51   :  { %v2914_v4 = vadd.f32 1.0, %v3097_v21 }
0x1f52   :  { %v2903_v42 = vadd.f32 %v2899_v45, %v2894_v30 }
0x1f53   :  { %3100 = vrcp.f32 %v2914_v4 }
0x1f54   :  { %v2906_v12 = vsub.f32 0.0, %v2903_v42 }
0x1f56   :  { %v3099_v51 = vpop.eup %3098  ;;  %v2911_v26 = vmul.f32 1.442695, %v2906_v12 }
0x1f57   :  { %v2913_v43 = vadd.f32 1.0, %v3099_v51 }
0x1f58   :  { %3102 = vpow2.f32 %v2911_v26 }
0x1f59   :  { %v3101_v35 = vpop.eup %3100  ;;  %3104 = vrcp.f32 %v2913_v43 }
0x1f5a   :  { %2920 = vst [vmem:[%s5420_s5 + $0x8] sm:$0xff] %v3101_v35 }
0x1f5e   :  { %v3103_v13 = vpop.eup %3102 }
0x1f5f   :  { %v3105_v15 = vpop.eup %3104  ;;  %v2915_v27 = vadd.f32 1.0, %v3103_v13 }
0x1f60   :  { %2919 = vst [vmem:[%s5420_s5] sm:$0xff] %v3105_v15 }
0x1f61   :  { %3106 = vrcp.f32 %v2915_v27 }
0x1f67   :  { %v3107_v9 = vpop.eup %3106 }
0x1f68   :  { %2921 = vst [vmem:[%s5420_s5 + $0x10] sm:$0xff] %v3107_v9 }

</bundles_post_ra>
